<compile_context>
chip_gen: v7x
topology: tpu7x:2x2x1
jax: 0.10.0
libtpu: 0.0.40
codegen_flags: <defaults>
</compile_context>

<pallas_src>
import math

import jax
import jax.numpy as jnp
import numpy as np
from jax import lax
from jax.experimental import pallas as pl
from jax.experimental.pallas import tpu as pltpu

# ---------------- configuration consistent with the module -------------------
SEQ_LEN   = 16   # configs.seq_len
ENC_IN    = 8    # configs.enc_in  (n_vars)
D_MODEL   = 32   # configs.d_model
D_FF      = 64   # configs.d_ff
N_HEADS   = 4    # configs.n_heads
PRED_LEN  = 8    # configs.pred_len
N_PATCHES = 16   # configs.n_patches
TOP_K     = 2    # configs.k_gran
ALPHA     = 0.5  # configs.alpha (LeakyReLU slope)
BATCH     = 2

E_HEAD = D_MODEL // N_HEADS          # 8
BC     = BATCH * ENC_IN              # 16 folded rows (batch * channels)
NEG    = -1e30

# -------------------- static layout of the packed slabs ----------------------
# f32 slab: (F_TOTAL, 32), row offsets multiples of 8
F_WEMB  = 0                            # (16, 32)
F_PE    = F_WEMB + SEQ_LEN             # (16, 32)  positional emb tiled over batch
F_MASK  = F_PE + BC                    # (16, :16) cross-batch block mask (0 / NEG)
F_FOLD  = F_MASK + BC                  # (16, :8)  vstack(I8, I8) diag-block fold
F_WQ    = F_FOLD + BC                  # 4 x (32, :8) per-head query weights
F_WK    = F_WQ + N_HEADS * D_MODEL     # 4 x (32, :8) per-head key weights
F_TOTAL = F_WK + N_HEADS * D_MODEL

# bf16 slab: (W_TOTAL, 64), row offsets multiples of 16
OFF_WENC  = 0                          # (32, 32)
OFF_F1WQ  = OFF_WENC + 32              # (32, 64)
OFF_F1WK  = OFF_F1WQ + 32              # (32, 32)
OFF_F1WV  = OFF_F1WK + 32              # (32, 32)
OFF_F1WO  = OFF_F1WV + 32              # (64, 64)
OFF_F2WQ  = OFF_F1WO + 64              # (64, 32)
OFF_F2WK  = OFF_F2WQ + 64              # (64, 64)
OFF_F2WV  = OFF_F2WK + 64              # (64, 64)
OFF_F2WO  = OFF_F2WV + 64              # (32, 32)
OFF_WFC   = OFF_F2WO + 32              # (32, 8)
OFF_WV    = OFF_WFC + 32               # 4 x (32, :16), lanes 8:16 zero-padded
OFF_WOH   = OFF_WV + N_HEADS * 32      # 4 x (16, :32), rows  8:16 zero-padded
OFF_SEG1  = OFF_WOH + N_HEADS * 16     # (64, :16)
OFF_EXPM1 = OFF_SEG1 + D_FF            # (16, 64)
OFF_G1    = OFF_EXPM1 + 16             # 2 x (32, 64)
OFF_SEG2  = OFF_G1 + 2 * D_MODEL       # (32, :16)
OFF_EXPM2 = OFF_SEG2 + D_MODEL         # (16, :32)
OFF_G2    = OFF_EXPM2 + 16             # 4 x (64, :32)
W_TOTAL   = OFF_G2 + 4 * D_FF

# bias slab: (NB, 1, 64) f32, each entry in lanes [0:width]
B_BQ, B_BK, B_BV = 0, N_HEADS, 2 * N_HEADS
B_BO, B_BENC = 12, 13
B_F1BQ, B_F1BK, B_F1BV, B_F1BO = 14, 15, 16, 17
B_LNG, B_LNB = 18, 19
B_F2BQ, B_F2BK, B_F2BV, B_F2BO = 20, 21, 22, 23
B_BFC = 24
NB = 25


# ------------------------------ kernel ---------------------------------------
def gfan_kernel(x_ref, wf_ref, b_ref, wb_ref, out_ref, attn_ref):
    def bias(i, w):
        return b_ref[i][:, :w]                        # (1, w) broadcast row

    def dot(a, b):
        return jnp.dot(a, b, preferred_element_type=jnp.float32)

    # ---- norm() over time, already in folded (B*C, T) layout ----
    x = x_ref[...].reshape(BC, SEQ_LEN)               # (16, 16)
    mu = jnp.mean(x, axis=1, keepdims=True)
    xc = x - mu
    var = jnp.mean(xc * xc, axis=1, keepdims=True)    # unbiased=False
    std = jnp.sqrt(var + 1e-5)
    xn = xc / std

    # ---- Embedding: relu(x @ W) + positional embedding (f32: feeds top-k) ---
    wemb = wf_ref[pl.ds(F_WEMB, SEQ_LEN), :]           # (16, 32) f32
    pe = wf_ref[pl.ds(F_PE, BC), :]                    # (16, 32) f32
    emb = jnp.maximum(dot(xn, wemb), 0.0) + pe         # (16, 32) f32
    emb_bf = emb.astype(jnp.bfloat16)                  # hoisted cast (v path)

    # ---- Encoder / GAttn: de-batched matmuls + cross-batch block mask ----
    mask = wf_ref[pl.ds(F_MASK, BC), pl.ds(0, BC)]     # (16,16) 0 / NEG
    fold = wf_ref[pl.ds(F_FOLD, BC), pl.ds(0, ENC_IN)]  # (16, 8) vstack(I8, I8)
    scale = 1.0 / math.sqrt(E_HEAD)
    acc = jnp.zeros((BC, D_MODEL), jnp.float32)
    attn_heads = []
    for h in range(N_HEADS):
        wq_h = wf_ref[pl.ds(F_WQ + h * D_MODEL, D_MODEL), pl.ds(0, E_HEAD)]
        wk_h = wf_ref[pl.ds(F_WK + h * D_MODEL, D_MODEL), pl.ds(0, E_HEAD)]
        qh = jnp.maximum(dot(emb, wq_h) + bias(B_BQ + h, E_HEAD), 0.0)   # (16,8)
        kh = dot(emb, wk_h) + bias(B_BK + h, E_HEAD)                     # (16,8)
        # scores: one 2-D matmul; off-batch entries pushed to ~NEG by the mask
        s = lax.dot_general(qh, kh, (((1,), (1,)), ((), ())),
                            preferred_element_type=jnp.float32) + mask   # (16,16)

        # top-k (k=2) keep mask via the k-th largest value; reuse the row max
        # from the first pass as the softmax shift (saves one XLU reduce).
        t = s
        mx = None
        for _ in range(TOP_K - 1):
            cur = jnp.max(t, axis=-1, keepdims=True)
            mx = cur if mx is None else mx
            t = jnp.where(t >= cur, NEG, t)
        kth = jnp.max(t, axis=-1, keepdims=True)
        mx = kth if mx is None else mx
        z = jnp.where(s >= kth, s, NEG) * scale
        ez = jnp.exp(z - scale * mx)                     # row max == scale*mx
        a = ez / jnp.sum(ez, axis=-1, keepdims=True)     # (16,16) f32

        # off-batch attention entries are exactly 0 -> exact f32 fold of the
        # two diagonal 8x8 blocks into lanes 0:8.
        attn_heads.append(dot(a, fold).reshape(BATCH, ENC_IN, ENC_IN))

        # value path: bf16 MXU operands, f32 accumulation (zero-padded blocks)
        wv_h = wb_ref[pl.ds(OFF_WV + h * 32, 32), pl.ds(0, 16)]   # (32,16) bf16
        wo_h = wb_ref[pl.ds(OFF_WOH + h * 16, 16), pl.ds(0, D_MODEL)]  # (16,32)
        vh = jnp.maximum(dot(emb_bf, wv_h) + bias(B_BV + h, 16), 0.0)  # (16,16)
        o_h = dot(a.astype(jnp.bfloat16), vh.astype(jnp.bfloat16))     # (16,16)
        acc = acc + dot(o_h.astype(jnp.bfloat16), wo_h)                # (16,32)

    attn_ref[...] = jnp.stack(attn_heads, axis=1)        # (B, H, C, C), 1 store

    y = emb + acc + bias(B_BO, D_MODEL)                  # Encoder residual

    # ---- GFAN: enc(LeakyReLU(y)) ----
    y = jnp.where(y > 0, y, ALPHA * y)
    y = dot(y.astype(jnp.bfloat16),
            wb_ref[pl.ds(OFF_WENC, D_MODEL), pl.ds(0, D_MODEL)]) + bias(B_BENC, D_MODEL)

    # ---- PWattn with host-precomputed 0/1 patch matrices (MXU segment ops) --
    def pwattn(xin, wq, bq, wk, bk, wv, bv, wo, bo, seg, expm, gs, in_len, out_len):
        ns = in_len // N_PATCHES
        inv = 1.0 / math.sqrt(N_PATCHES)
        xin_bf = xin.astype(jnp.bfloat16)                             # hoisted
        q = jnp.maximum(dot(xin_bf, wq) + bq, 0.0)                    # (16, out)
        k = dot(xin_bf, wk) + bk                                      # (16, in)
        v = jnp.maximum(dot(xin_bf, wv) + bv, 0.0)                    # (16, in)
        kv = jnp.concatenate([k, v], axis=0).astype(jnp.bfloat16)     # one cast
        zs, vreps = [], []
        for s0 in range(ns):                                          # ns <= 4
            rep = dot(kv, gs[s0])                                     # (32, out)
            krep, vrep = rep[:BC], rep[BC:]
            zs.append(dot((q * krep).astype(jnp.bfloat16), seg) * inv)  # (16,16)
            vreps.append(vrep)
        m = zs[0]
        for s0 in range(1, ns):
            m = jnp.maximum(m, zs[s0])
        es = [jnp.exp(z - m) for z in zs]
        den = es[0]
        for s0 in range(1, ns):
            den = den + es[s0]
        rinv = pl.reciprocal(den, approx=True)                        # (16,16)
        vout = jnp.zeros((BC, out_len), jnp.float32)
        for s0 in range(ns):
            vout = vout + dot(es[s0].astype(jnp.bfloat16), expm) * vreps[s0]
        vout = vout * dot(rinv.astype(jnp.bfloat16), expm)
        return q + dot(vout.astype(jnp.bfloat16), wo) + bo

    y1 = pwattn(
        y,
        wb_ref[pl.ds(OFF_F1WQ, D_MODEL), :], bias(B_F1BQ, D_FF),
        wb_ref[pl.ds(OFF_F1WK, D_MODEL), pl.ds(0, D_MODEL)], bias(B_F1BK, D_MODEL),
        wb_ref[pl.ds(OFF_F1WV, D_MODEL), pl.ds(0, D_MODEL)], bias(B_F1BV, D_MODEL),
        wb_ref[pl.ds(OFF_F1WO, D_FF), :], bias(B_F1BO, D_FF),
        wb_ref[pl.ds(OFF_SEG1, D_FF), pl.ds(0, 16)],
        wb_ref[pl.ds(OFF_EXPM1, 16), :],
        [wb_ref[pl.ds(OFF_G1 + s * D_MODEL, D_MODEL), :]
         for s in range(D_MODEL // N_PATCHES)],
        D_MODEL, D_FF)                                   # (16, 64)

    # ELU (alpha=1) then LayerNorm(d_ff); stats in f32
    y1 = jnp.where(y1 > 0, y1, jnp.exp(y1) - 1.0)
    mu1 = jnp.mean(y1, axis=1, keepdims=True)
    yc1 = y1 - mu1
    var1 = jnp.mean(yc1 * yc1, axis=1, keepdims=True)
    y1 = yc1 * lax.rsqrt(var1 + 1e-5) * bias(B_LNG, D_FF) + bias(B_LNB, D_FF)

    y2 = pwattn(
        y1,
        wb_ref[pl.ds(OFF_F2WQ, D_FF), pl.ds(0, D_MODEL)], bias(B_F2BQ, D_MODEL),
        wb_ref[pl.ds(OFF_F2WK, D_FF), :], bias(B_F2BK, D_FF),
        wb_ref[pl.ds(OFF_F2WV, D_FF), :], bias(B_F2BV, D_FF),
        wb_ref[pl.ds(OFF_F2WO, D_MODEL), pl.ds(0, D_MODEL)], bias(B_F2BO, D_MODEL),
        wb_ref[pl.ds(OFF_SEG2, D_MODEL), pl.ds(0, 16)],
        wb_ref[pl.ds(OFF_EXPM2, 16), pl.ds(0, D_MODEL)],
        [wb_ref[pl.ds(OFF_G2 + s * D_FF, D_FF), pl.ds(0, D_MODEL)]
         for s in range(D_FF // N_PATCHES)],
        D_FF, D_MODEL)                                   # (16, 32)

    # ---- final fc + de-norm, still in folded (B*C, pred_len) layout ----
    dec = dot(y2.astype(jnp.bfloat16),
              wb_ref[pl.ds(OFF_WFC, D_MODEL), pl.ds(0, PRED_LEN)]) + bias(B_BFC, PRED_LEN)
    out_ref[...] = (dec * std + mu).reshape(BATCH, ENC_IN, PRED_LEN)   # 1 store


# ------------------------------ host-side packing ----------------------------
def pack_params(p):
    E, P = E_HEAD, N_PATCHES

    # ---------------- f32 slab ----------------
    wf = np.zeros((F_TOTAL, D_MODEL), np.float32)
    wf[F_WEMB:F_WEMB + SEQ_LEN, :] = np.asarray(p['wemb'])
    wf[F_PE:F_PE + BC, :] = np.tile(np.asarray(p['pe']), (BATCH, 1))
    bidx = np.arange(BC) // ENC_IN
    wf[F_MASK:F_MASK + BC, :BC] = np.where(bidx[:, None] == bidx[None, :], 0.0, NEG)
    wf[F_FOLD:F_FOLD + BC, :ENC_IN] = np.tile(np.eye(ENC_IN, dtype=np.float32),
                                              (BATCH, 1))
    wq, wk = np.asarray(p['wq']), np.asarray(p['wk'])
    for h in range(N_HEADS):
        wf[F_WQ + h * D_MODEL:F_WQ + (h + 1) * D_MODEL, :E] = wq[:, h * E:(h + 1) * E]
        wf[F_WK + h * D_MODEL:F_WK + (h + 1) * D_MODEL, :E] = wk[:, h * E:(h + 1) * E]

    # ---------------- bf16 slab ----------------
    wb = np.zeros((W_TOTAL, D_FF), np.float32)

    def put(off, arr):
        a = np.asarray(arr)
        wb[off:off + a.shape[0], :a.shape[1]] = a

    put(OFF_WENC, p['wenc']); put(OFF_F1WQ, p['f1wq']); put(OFF_F1WK, p['f1wk'])
    put(OFF_F1WV, p['f1wv']); put(OFF_F1WO, p['f1wo']); put(OFF_F2WQ, p['f2wq'])
    put(OFF_F2WK, p['f2wk']); put(OFF_F2WV, p['f2wv']); put(OFF_F2WO, p['f2wo'])
    put(OFF_WFC, p['wfc'])
    wv, wo = np.asarray(p['wv']), np.asarray(p['wo'])
    for h in range(N_HEADS):
        put(OFF_WV + h * 32, wv[:, h * E:(h + 1) * E])     # (32,8) in 16-lane block
        put(OFF_WOH + h * 16, wo[h * E:(h + 1) * E, :])    # (8,32) in 16-row block

    def seg_pad(out_len):
        nl = out_len // P
        o = np.arange(out_len)[:, None]
        l = np.arange(16)[None, :]
        return ((l < nl) & (o // P == l)).astype(np.float32)     # (out_len, 16)

    def expm_pad(out_len):
        nl = out_len // P
        l = np.arange(16)[:, None]
        o = np.arange(out_len)[None, :]
        return ((l < nl) & (o // P == l)).astype(np.float32)     # (16, out_len)

    def gmat(in_len, out_len, s0):
        j = np.arange(in_len)[:, None]
        i = np.arange(out_len)[None, :]
        return ((j // P == s0) & (j % P == i % P)).astype(np.float32)

    put(OFF_SEG1, seg_pad(D_FF)); put(OFF_EXPM1, expm_pad(D_FF))
    for s in range(D_MODEL // P):
        put(OFF_G1 + s * D_MODEL, gmat(D_MODEL, D_FF, s))
    put(OFF_SEG2, seg_pad(D_MODEL)); put(OFF_EXPM2, expm_pad(D_MODEL))
    for s in range(D_FF // P):
        put(OFF_G2 + s * D_FF, gmat(D_FF, D_MODEL, s))

    # ---------------- bias slab ----------------
    bias = np.zeros((NB, 1, 64), np.float32)
    bq, bk, bv = np.asarray(p['bq']), np.asarray(p['bk']), np.asarray(p['bv'])
    for h in range(N_HEADS):
        bias[B_BQ + h, 0, :E] = bq[0, h * E:(h + 1) * E]
        bias[B_BK + h, 0, :E] = bk[0, h * E:(h + 1) * E]
        bias[B_BV + h, 0, :E] = bv[0, h * E:(h + 1) * E]

    def putb(i, arr):
        a = np.asarray(arr).reshape(-1)
        bias[i, 0, :a.shape[0]] = a

    putb(B_BO, p['bo']); putb(B_BENC, p['benc'])
    putb(B_F1BQ, p['f1bq']); putb(B_F1BK, p['f1bk'])
    putb(B_F1BV, p['f1bv']); putb(B_F1BO, p['f1bo'])
    putb(B_LNG, p['lng']); putb(B_LNB, p['lnb'])
    putb(B_F2BQ, p['f2bq']); putb(B_F2BK, p['f2bk'])
    putb(B_F2BV, p['f2bv']); putb(B_F2BO, p['f2bo'])
    putb(B_BFC, p['bfc'])

    return (jnp.asarray(wf), jnp.asarray(bias),
            jnp.asarray(wb, dtype=jnp.bfloat16))


# ------------------------------ wrapper --------------------------------------
def make_pallas_forward(params):
    wf32, bias, wbf16 = pack_params(params)

    def full_spec(shape):
        nd = len(shape)
        return pl.BlockSpec(tuple(shape), lambda i, _nd=nd: (0,) * _nd)

    in_specs = [full_spec((BATCH, ENC_IN, SEQ_LEN)),
                full_spec(wf32.shape),
                full_spec(bias.shape),
                full_spec(wbf16.shape)]
    out_specs = [full_spec((BATCH, ENC_IN, PRED_LEN)),
                 full_spec((BATCH, N_HEADS, ENC_IN, ENC_IN))]
    out_shape = [jax.ShapeDtypeStruct((BATCH, ENC_IN, PRED_LEN), jnp.float32),
                 jax.ShapeDtypeStruct((BATCH, N_HEADS, ENC_IN, ENC_IN), jnp.float32)]

    call = pl.pallas_call(
        gfan_kernel,
        grid=(1,),                       # single step; batch folded into rows
        in_specs=in_specs,
        out_specs=out_specs,
        out_shape=out_shape,
        compiler_params=pltpu.CompilerParams(dimension_semantics=("arbitrary",)),
    )

    def fwd(x_enc):
        x_t = jnp.transpose(x_enc, (0, 2, 1))            # (B, C, T): wrapper-side plumbing
        dec_bcp, attn = call(x_t, wf32, bias, wbf16)
        return jnp.transpose(dec_bcp, (0, 2, 1)), attn   # back to (B, pred_len, C)

    return jax.jit(fwd)


# ------------------------------ parameters -----------------------------------
def init_params(key):
    keys = jax.random.split(key, 32)
    it = iter(keys)
    p = {}

    # standard sinusoidal positional embedding, rows 0..enc_in-1
    pos = np.arange(ENC_IN, dtype=np.float32)[:, None]
    div = np.exp(np.arange(0, D_MODEL, 2, dtype=np.float32) *
                 (-math.log(10000.0) / D_MODEL))
    pe = np.zeros((ENC_IN, D_MODEL), dtype=np.float32)
    pe[:, 0::2] = np.sin(pos * div)
    pe[:, 1::2] = np.cos(pos * div)
    p['pe'] = jnp.asarray(pe)

    stdv = 1.0 / math.sqrt(D_MODEL)
    p['wemb'] = jax.random.uniform(next(it), (SEQ_LEN, D_MODEL), jnp.float32, -stdv, stdv)

    def linear(kk, fin, fout):
        k1, k2 = jax.random.split(kk)
        b = 1.0 / math.sqrt(fin)
        return (jax.random.uniform(k1, (fin, fout), jnp.float32, -b, b),
                jax.random.uniform(k2, (1, fout), jnp.float32, -b, b))

    p['wq'], p['bq'] = linear(next(it), D_MODEL, D_MODEL)
    p['wk'], p['bk'] = linear(next(it), D_MODEL, D_MODEL)
    p['wv'], p['bv'] = linear(next(it), D_MODEL, D_MODEL)
    p['wo'], p['bo'] = linear(next(it), D_MODEL, D_MODEL)
    p['wenc'], p['benc'] = linear(next(it), D_MODEL, D_MODEL)
    p['f1wq'], p['f1bq'] = linear(next(it), D_MODEL, D_FF)
    p['f1wk'], p['f1bk'] = linear(next(it), D_MODEL, D_MODEL)
    p['f1wv'], p['f1bv'] = linear(next(it), D_MODEL, D_MODEL)
    p['f1wo'], p['f1bo'] = linear(next(it), D_FF, D_FF)
    p['lng'] = jnp.ones((1, D_FF), jnp.float32)    # LayerNorm default weight
    p['lnb'] = jnp.zeros((1, D_FF), jnp.float32)   # LayerNorm default bias
    p['f2wq'], p['f2bq'] = linear(next(it), D_FF, D_MODEL)
    p['f2wk'], p['f2bk'] = linear(next(it), D_FF, D_FF)
    p['f2wv'], p['f2bv'] = linear(next(it), D_FF, D_FF)
    p['f2wo'], p['f2bo'] = linear(next(it), D_MODEL, D_MODEL)
    p['wfc'], p['bfc'] = linear(next(it), D_MODEL, PRED_LEN)
    return p


# ------------------------------ pure-JAX reference ---------------------------
def reference_forward(x_enc, p):
    mean = jnp.mean(x_enc, axis=1, keepdims=True)
    xc = x_enc - mean
    std = jnp.sqrt(jnp.mean(xc * xc, axis=1, keepdims=True) + 1e-5)
    xn = xc / std
    xt = jnp.transpose(xn, (0, 2, 1))
    emb = jax.nn.relu(xt @ p['wemb']) + p['pe'][None]

    B, C, D = emb.shape
    H, E = N_HEADS, D // N_HEADS
    q = jax.nn.relu(emb @ p['wq'] + p['bq']).reshape(B, C, H, E)
    k = (emb @ p['wk'] + p['bk']).reshape(B, C, H, E)
    v = jax.nn.relu(emb @ p['wv'] + p['bv']).reshape(B, C, H, E)
    scores = jnp.einsum('blhe,bshe->bhls', q, k)
    cnt = jnp.sum((scores[..., None, :] > scores[..., :, None]).astype(jnp.float32), axis=-1)
    scores = jnp.where(cnt < TOP_K, scores, -1e30)
    A = jax.nn.softmax(scores / math.sqrt(E), axis=-1)
    V = jnp.einsum('bhls,bshd->blhd', A, v).reshape(B, C, D)
    y = emb + (V @ p['wo'] + p['bo'])
    y = jnp.where(y > 0, y, ALPHA * y) @ p['wenc'] + p['benc']
    y = y.reshape(B * C, D)

    def pwattn(x, wq, bq, wk, bk, wv, bv, wo, bo, in_len, out_len):
        P = N_PATCHES
        query = jax.nn.relu(x @ wq + bq)
        qs = query.reshape(-1, out_len // P, P)
        ks = (x @ wk + bk).reshape(-1, in_len // P, P)
        vs = jax.nn.relu(x @ wv + bv).reshape(-1, in_len // P, P)
        sc = jnp.einsum('ble,bse->bls', qs, ks) / math.sqrt(P)
        Aa = jax.nn.softmax(sc, axis=-1)
        Vv = jnp.einsum('bls,bse->ble', Aa, vs).reshape(-1, out_len)
        return query + (Vv @ wo + bo)

    y1 = pwattn(y, p['f1wq'], p['f1bq'], p['f1wk'], p['f1bk'],
                p['f1wv'], p['f1bv'], p['f1wo'], p['f1bo'], D_MODEL, D_FF)
    y1 = jnp.where(y1 > 0, y1, jnp.exp(y1) - 1.0)
    mu = jnp.mean(y1, axis=-1, keepdims=True)
    yc2 = y1 - mu
    y1 = yc2 / jnp.sqrt(jnp.mean(yc2 * yc2, axis=-1, keepdims=True) + 1e-5) * p['lng'] + p['lnb']
    y2 = pwattn(y1, p['f2wq'], p['f2bq'], p['f2wk'], p['f2bk'],
                p['f2wv'], p['f2bv'], p['f2wo'], p['f2bo'], D_FF, D_MODEL)
    y2 = y2.reshape(B, C, D)
    dec = y2 @ p['wfc'] + p['bfc']
    dec = jnp.transpose(dec, (0, 2, 1)) * std + mean
    return dec[:, -PRED_LEN:, :], A


# ------------------------------ main ------------------------------------------
if __name__ == "__main__":
    key = jax.random.PRNGKey(0)
    kp, kx = jax.random.split(key)
    params = init_params(kp)
    x_enc = jax.random.normal(kx, (BATCH, SEQ_LEN, ENC_IN), jnp.float32)
    # x_mark_enc / x_dec / x_mark_dec are unused by the PyTorch forward.

    fwd = make_pallas_forward(params)
    dec_out, attn = fwd(x_enc)
    jax.block_until_ready((dec_out, attn))

    assert dec_out.shape == (BATCH, PRED_LEN, ENC_IN)
    assert attn.shape == (BATCH, N_HEADS, ENC_IN, ENC_IN)
    assert bool(jnp.all(jnp.isfinite(dec_out))) and bool(jnp.all(jnp.isfinite(attn)))

    ref_dec, ref_attn = reference_forward(x_enc, params)
    err_d = float(jnp.max(jnp.abs(dec_out - ref_dec)))
    err_a = float(jnp.max(jnp.abs(attn - ref_attn)))
    # attn path is f32 in the kernel (tight); the value path uses bf16 MXU
    # operands, so allow a few 1e-2 absolute error on dec.
    if not (err_d < 1e-1 and err_a < 5e-2):
        raise AssertionError(f"mismatch vs reference: dec={err_d} attn={err_a}")

    print("KERNEL_OK")
</pallas_src>

<mosaic_0001>
module attributes {stable_mosaic.version = 11 : i64} {
  func.func @gfan_kernel(%arg0: i32, %arg1: memref<2x8x16xf32, #tpu.memory_space<vmem>>, %arg2: memref<320x32xf32, #tpu.memory_space<vmem>>, %arg3: memref<25x1x64xf32, #tpu.memory_space<vmem>>, %arg4: memref<1088x64xbf16, #tpu.memory_space<vmem>>, %arg5: memref<2x8x8xf32, #tpu.memory_space<vmem>>, %arg6: memref<2x4x8x8xf32, #tpu.memory_space<vmem>>) attributes {dimension_semantics = [#tpu.dimension_semantics<arbitrary>], iteration_bounds = array<i64: 1>, scalar_prefetch = 0 : i64, scratch_operands = 0 : i64, tpu.core_type = #tpu.core_type<tc>, window_params = [{pipeline_mode = #tpu.pipeline_mode<synchronous>, transform_indices = @transform_0, window_bounds = array<i64: 2, 8, 16>}, {pipeline_mode = #tpu.pipeline_mode<synchronous>, transform_indices = @transform_1, window_bounds = array<i64: 320, 32>}, {pipeline_mode = #tpu.pipeline_mode<synchronous>, transform_indices = @transform_2, window_bounds = array<i64: 25, 1, 64>}, {pipeline_mode = #tpu.pipeline_mode<synchronous>, transform_indices = @transform_3, window_bounds = array<i64: 1088, 64>}, {pipeline_mode = #tpu.pipeline_mode<synchronous>, transform_indices = @transform_4, window_bounds = array<i64: 2, 8, 8>}, {pipeline_mode = #tpu.pipeline_mode<synchronous>, transform_indices = @transform_5, window_bounds = array<i64: 2, 4, 8, 8>}]} {
    %c0 = arith.constant 0 : index
    %c0_0 = arith.constant 0 : index
    %c0_1 = arith.constant 0 : index
    %0 = vector.load %arg1[%c0, %c0_0, %c0_1] : memref<2x8x16xf32, #tpu.memory_space<vmem>>, vector<2x8x16xf32>
    %1 = vector.shape_cast %0 : vector<2x8x16xf32> to vector<16x16xf32>
    %cst = arith.constant dense<0.000000e+00> : vector<16xf32>
    %2 = vector.multi_reduction <add>, %1, %cst [1] : vector<16x16xf32> to vector<16xf32>
    %3 = vector.shape_cast %2 : vector<16xf32> to vector<16x1xf32>
    %cst_2 = arith.constant 1.600000e+01 : f32
    %4 = vector.broadcast %cst_2 : f32 to vector<16x1xf32>
    %5 = arith.divf %3, %4 : vector<16x1xf32>
    %6 = vector.broadcast %5 : vector<16x1xf32> to vector<16x16xf32>
    %7 = arith.subf %1, %6 : vector<16x16xf32>
    %8 = arith.mulf %7, %7 : vector<16x16xf32>
    %cst_3 = arith.constant dense<0.000000e+00> : vector<16xf32>
    %9 = vector.multi_reduction <add>, %8, %cst_3 [1] : vector<16x16xf32> to vector<16xf32>
    %10 = vector.shape_cast %9 : vector<16xf32> to vector<16x1xf32>
    %cst_4 = arith.constant 1.600000e+01 : f32
    %11 = vector.broadcast %cst_4 : f32 to vector<16x1xf32>
    %12 = arith.divf %10, %11 : vector<16x1xf32>
    %cst_5 = arith.constant 9.99999974E-6 : f32
    %13 = vector.broadcast %cst_5 : f32 to vector<16x1xf32>
    %14 = arith.addf %12, %13 : vector<16x1xf32>
    %15 = math.sqrt %14 : vector<16x1xf32>
    %16 = vector.broadcast %15 : vector<16x1xf32> to vector<16x16xf32>
    %17 = arith.divf %7, %16 : vector<16x16xf32>
    %c0_6 = arith.constant 0 : index
    %c0_7 = arith.constant 0 : index
    %18 = vector.load %arg2[%c0_6, %c0_7] : memref<320x32xf32, #tpu.memory_space<vmem>>, vector<16x32xf32>
    %c16 = arith.constant 16 : index
    %c0_8 = arith.constant 0 : index
    %19 = vector.load %arg2[%c16, %c0_8] : memref<320x32xf32, #tpu.memory_space<vmem>>, vector<16x32xf32>
    %cst_9 = arith.constant dense<0.000000e+00> : vector<16x32xf32>
    %20 = tpu.matmul %17, %18, %cst_9 {dimension_numbers = #tpu.dot_dimension_numbers<[1], [0], [0], [1], [0, 0, 1, 1], [], []>} : vector<16x16xf32>, vector<16x32xf32>, vector<16x32xf32> -> vector<16x32xf32>
    %cst_10 = arith.constant 0.000000e+00 : f32
    %21 = vector.broadcast %cst_10 : f32 to vector<16x32xf32>
    %22 = arith.maximumf %20, %21 : vector<16x32xf32>
    %23 = arith.addf %22, %19 : vector<16x32xf32>
    %24 = arith.truncf %23 : vector<16x32xf32> to vector<16x32xbf16>
    %c32 = arith.constant 32 : index
    %c0_11 = arith.constant 0 : index
    %25 = vector.load %arg2[%c32, %c0_11] : memref<320x32xf32, #tpu.memory_space<vmem>>, vector<16x16xf32>
    %c48 = arith.constant 48 : index
    %c0_12 = arith.constant 0 : index
    %26 = vector.load %arg2[%c48, %c0_12] : memref<320x32xf32, #tpu.memory_space<vmem>>, vector<16x8xf32>
    %cst_13 = arith.constant 0.000000e+00 : f32
    %27 = vector.broadcast %cst_13 : f32 to vector<16x32xf32>
    %c64 = arith.constant 64 : index
    %c0_14 = arith.constant 0 : index
    %28 = vector.load %arg2[%c64, %c0_14] : memref<320x32xf32, #tpu.memory_space<vmem>>, vector<32x8xf32>
    %c192 = arith.constant 192 : index
    %c0_15 = arith.constant 0 : index
    %29 = vector.load %arg2[%c192, %c0_15] : memref<320x32xf32, #tpu.memory_space<vmem>>, vector<32x8xf32>
    %cst_16 = arith.constant dense<0.000000e+00> : vector<16x8xf32>
    %30 = tpu.matmul %23, %28, %cst_16 {dimension_numbers = #tpu.dot_dimension_numbers<[1], [0], [0], [1], [0, 0, 1, 1], [], []>} : vector<16x32xf32>, vector<32x8xf32>, vector<16x8xf32> -> vector<16x8xf32>
    %c0_17 = arith.constant 0 : index
    %c0_18 = arith.constant 0 : index
    %c0_19 = arith.constant 0 : index
    %31 = vector.load %arg3[%c0_17, %c0_18, %c0_19] : memref<25x1x64xf32, #tpu.memory_space<vmem>>, vector<1x1x64xf32>
    %32 = vector.shape_cast %31 : vector<1x1x64xf32> to vector<1x64xf32>
    %33 = vector.extract_strided_slice %32 {offsets = [0, 0], sizes = [1, 8], strides = [1, 1]} : vector<1x64xf32> to vector<1x8xf32>
    %34 = vector.broadcast %33 : vector<1x8xf32> to vector<16x8xf32>
    %35 = arith.addf %30, %34 : vector<16x8xf32>
    %cst_20 = arith.constant 0.000000e+00 : f32
    %36 = vector.broadcast %cst_20 : f32 to vector<16x8xf32>
    %37 = arith.maximumf %35, %36 : vector<16x8xf32>
    %cst_21 = arith.constant dense<0.000000e+00> : vector<16x8xf32>
    %38 = tpu.matmul %23, %29, %cst_21 {dimension_numbers = #tpu.dot_dimension_numbers<[1], [0], [0], [1], [0, 0, 1, 1], [], []>} : vector<16x32xf32>, vector<32x8xf32>, vector<16x8xf32> -> vector<16x8xf32>
    %c4 = arith.constant 4 : index
    %c0_22 = arith.constant 0 : index
    %c0_23 = arith.constant 0 : index
    %39 = vector.load %arg3[%c4, %c0_22, %c0_23] : memref<25x1x64xf32, #tpu.memory_space<vmem>>, vector<1x1x64xf32>
    %40 = vector.shape_cast %39 : vector<1x1x64xf32> to vector<1x64xf32>
    %41 = vector.extract_strided_slice %40 {offsets = [0, 0], sizes = [1, 8], strides = [1, 1]} : vector<1x64xf32> to vector<1x8xf32>
    %42 = vector.broadcast %41 : vector<1x8xf32> to vector<16x8xf32>
    %43 = arith.addf %38, %42 : vector<16x8xf32>
    %cst_24 = arith.constant dense<0.000000e+00> : vector<16x16xf32>
    %44 = tpu.matmul %37, %43, %cst_24 {dimension_numbers = #tpu.dot_dimension_numbers<[1], [1], [0], [0], [0, 0, 1, 0], [], []>} : vector<16x8xf32>, vector<16x8xf32>, vector<16x16xf32> -> vector<16x16xf32>
    %45 = arith.addf %44, %25 : vector<16x16xf32>
    %cst_25 = arith.constant dense<0xFF800000> : vector<16xf32>
    %46 = vector.multi_reduction <maximumf>, %45, %cst_25 [1] : vector<16x16xf32> to vector<16xf32>
    %47 = vector.shape_cast %46 : vector<16xf32> to vector<16x1xf32>
    %48 = vector.broadcast %47 : vector<16x1xf32> to vector<16x16xf32>
    %49 = arith.cmpf oge, %45, %48 : vector<16x16xf32>
    %cst_26 = arith.constant -1.000000e+30 : f32
    %50 = vector.broadcast %cst_26 : f32 to vector<16x16xf32>
    %51 = arith.select %49, %50, %45 : vector<16x16xi1>, vector<16x16xf32>
    %cst_27 = arith.constant dense<0xFF800000> : vector<16xf32>
    %52 = vector.multi_reduction <maximumf>, %51, %cst_27 [1] : vector<16x16xf32> to vector<16xf32>
    %53 = vector.shape_cast %52 : vector<16xf32> to vector<16x1xf32>
    %54 = vector.broadcast %53 : vector<16x1xf32> to vector<16x16xf32>
    %55 = arith.cmpf oge, %45, %54 : vector<16x16xf32>
    %cst_28 = arith.constant -1.000000e+30 : f32
    %56 = vector.broadcast %cst_28 : f32 to vector<16x16xf32>
    %57 = arith.select %55, %45, %56 : vector<16x16xi1>, vector<16x16xf32>
    %cst_29 = arith.constant 0.353553385 : f32
    %58 = vector.broadcast %cst_29 : f32 to vector<16x16xf32>
    %59 = arith.mulf %57, %58 : vector<16x16xf32>
    %cst_30 = arith.constant 0.353553385 : f32
    %60 = vector.broadcast %cst_30 : f32 to vector<16x1xf32>
    %61 = arith.mulf %60, %47 : vector<16x1xf32>
    %62 = vector.broadcast %61 : vector<16x1xf32> to vector<16x16xf32>
    %63 = arith.subf %59, %62 : vector<16x16xf32>
    %64 = math.exp %63 : vector<16x16xf32>
    %cst_31 = arith.constant dense<0.000000e+00> : vector<16xf32>
    %65 = vector.multi_reduction <add>, %64, %cst_31 [1] : vector<16x16xf32> to vector<16xf32>
    %66 = vector.shape_cast %65 : vector<16xf32> to vector<16x1xf32>
    %67 = vector.broadcast %66 : vector<16x1xf32> to vector<16x16xf32>
    %68 = arith.divf %64, %67 : vector<16x16xf32>
    %cst_32 = arith.constant dense<0.000000e+00> : vector<16x8xf32>
    %69 = tpu.matmul %68, %26, %cst_32 {dimension_numbers = #tpu.dot_dimension_numbers<[1], [0], [0], [1], [0, 0, 1, 1], [], []>} : vector<16x16xf32>, vector<16x8xf32>, vector<16x8xf32> -> vector<16x8xf32>
    %70 = vector.shape_cast %69 : vector<16x8xf32> to vector<2x8x8xf32>
    %c448 = arith.constant 448 : index
    %c0_33 = arith.constant 0 : index
    %71 = vector.load %arg4[%c448, %c0_33] : memref<1088x64xbf16, #tpu.memory_space<vmem>>, vector<32x16xbf16>
    %c576 = arith.constant 576 : index
    %c0_34 = arith.constant 0 : index
    %72 = vector.load %arg4[%c576, %c0_34] : memref<1088x64xbf16, #tpu.memory_space<vmem>>, vector<16x32xbf16>
    %cst_35 = arith.constant dense<0.000000e+00> : vector<16x16xf32>
    %73 = tpu.matmul %24, %71, %cst_35 {dimension_numbers = #tpu.dot_dimension_numbers<[1], [0], [0], [1], [0, 0, 1, 1], [], []>} : vector<16x32xbf16>, vector<32x16xbf16>, vector<16x16xf32> -> vector<16x16xf32>
    %c8 = arith.constant 8 : index
    %c0_36 = arith.constant 0 : index
    %c0_37 = arith.constant 0 : index
    %74 = vector.load %arg3[%c8, %c0_36, %c0_37] : memref<25x1x64xf32, #tpu.memory_space<vmem>>, vector<1x1x64xf32>
    %75 = vector.shape_cast %74 : vector<1x1x64xf32> to vector<1x64xf32>
    %76 = vector.extract_strided_slice %75 {offsets = [0, 0], sizes = [1, 16], strides = [1, 1]} : vector<1x64xf32> to vector<1x16xf32>
    %77 = vector.broadcast %76 : vector<1x16xf32> to vector<16x16xf32>
    %78 = arith.addf %73, %77 : vector<16x16xf32>
    %cst_38 = arith.constant 0.000000e+00 : f32
    %79 = vector.broadcast %cst_38 : f32 to vector<16x16xf32>
    %80 = arith.maximumf %78, %79 : vector<16x16xf32>
    %81 = arith.truncf %68 : vector<16x16xf32> to vector<16x16xbf16>
    %82 = arith.truncf %80 : vector<16x16xf32> to vector<16x16xbf16>
    %cst_39 = arith.constant dense<0.000000e+00> : vector<16x16xf32>
    %83 = tpu.matmul %81, %82, %cst_39 {dimension_numbers = #tpu.dot_dimension_numbers<[1], [0], [0], [1], [0, 0, 1, 1], [], []>} : vector<16x16xbf16>, vector<16x16xbf16>, vector<16x16xf32> -> vector<16x16xf32>
    %84 = arith.truncf %83 : vector<16x16xf32> to vector<16x16xbf16>
    %cst_40 = arith.constant dense<0.000000e+00> : vector<16x32xf32>
    %85 = tpu.matmul %84, %72, %cst_40 {dimension_numbers = #tpu.dot_dimension_numbers<[1], [0], [0], [1], [0, 0, 1, 1], [], []>} : vector<16x16xbf16>, vector<16x32xbf16>, vector<16x32xf32> -> vector<16x32xf32>
    %86 = arith.addf %27, %85 : vector<16x32xf32>
    %c96 = arith.constant 96 : index
    %c0_41 = arith.constant 0 : index
    %87 = vector.load %arg2[%c96, %c0_41] : memref<320x32xf32, #tpu.memory_space<vmem>>, vector<32x8xf32>
    %c224 = arith.constant 224 : index
    %c0_42 = arith.constant 0 : index
    %88 = vector.load %arg2[%c224, %c0_42] : memref<320x32xf32, #tpu.memory_space<vmem>>, vector<32x8xf32>
    %cst_43 = arith.constant dense<0.000000e+00> : vector<16x8xf32>
    %89 = tpu.matmul %23, %87, %cst_43 {dimension_numbers = #tpu.dot_dimension_numbers<[1], [0], [0], [1], [0, 0, 1, 1], [], []>} : vector<16x32xf32>, vector<32x8xf32>, vector<16x8xf32> -> vector<16x8xf32>
    %c1 = arith.constant 1 : index
    %c0_44 = arith.constant 0 : index
    %c0_45 = arith.constant 0 : index
    %90 = vector.load %arg3[%c1, %c0_44, %c0_45] : memref<25x1x64xf32, #tpu.memory_space<vmem>>, vector<1x1x64xf32>
    %91 = vector.shape_cast %90 : vector<1x1x64xf32> to vector<1x64xf32>
    %92 = vector.extract_strided_slice %91 {offsets = [0, 0], sizes = [1, 8], strides = [1, 1]} : vector<1x64xf32> to vector<1x8xf32>
    %93 = vector.broadcast %92 : vector<1x8xf32> to vector<16x8xf32>
    %94 = arith.addf %89, %93 : vector<16x8xf32>
    %cst_46 = arith.constant 0.000000e+00 : f32
    %95 = vector.broadcast %cst_46 : f32 to vector<16x8xf32>
    %96 = arith.maximumf %94, %95 : vector<16x8xf32>
    %cst_47 = arith.constant dense<0.000000e+00> : vector<16x8xf32>
    %97 = tpu.matmul %23, %88, %cst_47 {dimension_numbers = #tpu.dot_dimension_numbers<[1], [0], [0], [1], [0, 0, 1, 1], [], []>} : vector<16x32xf32>, vector<32x8xf32>, vector<16x8xf32> -> vector<16x8xf32>
    %c5 = arith.constant 5 : index
    %c0_48 = arith.constant 0 : index
    %c0_49 = arith.constant 0 : index
    %98 = vector.load %arg3[%c5, %c0_48, %c0_49] : memref<25x1x64xf32, #tpu.memory_space<vmem>>, vector<1x1x64xf32>
    %99 = vector.shape_cast %98 : vector<1x1x64xf32> to vector<1x64xf32>
    %100 = vector.extract_strided_slice %99 {offsets = [0, 0], sizes = [1, 8], strides = [1, 1]} : vector<1x64xf32> to vector<1x8xf32>
    %101 = vector.broadcast %100 : vector<1x8xf32> to vector<16x8xf32>
    %102 = arith.addf %97, %101 : vector<16x8xf32>
    %cst_50 = arith.constant dense<0.000000e+00> : vector<16x16xf32>
    %103 = tpu.matmul %96, %102, %cst_50 {dimension_numbers = #tpu.dot_dimension_numbers<[1], [1], [0], [0], [0, 0, 1, 0], [], []>} : vector<16x8xf32>, vector<16x8xf32>, vector<16x16xf32> -> vector<16x16xf32>
    %104 = arith.addf %103, %25 : vector<16x16xf32>
    %cst_51 = arith.constant dense<0xFF800000> : vector<16xf32>
    %105 = vector.multi_reduction <maximumf>, %104, %cst_51 [1] : vector<16x16xf32> to vector<16xf32>
    %106 = vector.shape_cast %105 : vector<16xf32> to vector<16x1xf32>
    %107 = vector.broadcast %106 : vector<16x1xf32> to vector<16x16xf32>
    %108 = arith.cmpf oge, %104, %107 : vector<16x16xf32>
    %cst_52 = arith.constant -1.000000e+30 : f32
    %109 = vector.broadcast %cst_52 : f32 to vector<16x16xf32>
    %110 = arith.select %108, %109, %104 : vector<16x16xi1>, vector<16x16xf32>
    %cst_53 = arith.constant dense<0xFF800000> : vector<16xf32>
    %111 = vector.multi_reduction <maximumf>, %110, %cst_53 [1] : vector<16x16xf32> to vector<16xf32>
    %112 = vector.shape_cast %111 : vector<16xf32> to vector<16x1xf32>
    %113 = vector.broadcast %112 : vector<16x1xf32> to vector<16x16xf32>
    %114 = arith.cmpf oge, %104, %113 : vector<16x16xf32>
    %cst_54 = arith.constant -1.000000e+30 : f32
    %115 = vector.broadcast %cst_54 : f32 to vector<16x16xf32>
    %116 = arith.select %114, %104, %115 : vector<16x16xi1>, vector<16x16xf32>
    %cst_55 = arith.constant 0.353553385 : f32
    %117 = vector.broadcast %cst_55 : f32 to vector<16x16xf32>
    %118 = arith.mulf %116, %117 : vector<16x16xf32>
    %cst_56 = arith.constant 0.353553385 : f32
    %119 = vector.broadcast %cst_56 : f32 to vector<16x1xf32>
    %120 = arith.mulf %119, %106 : vector<16x1xf32>
    %121 = vector.broadcast %120 : vector<16x1xf32> to vector<16x16xf32>
    %122 = arith.subf %118, %121 : vector<16x16xf32>
    %123 = math.exp %122 : vector<16x16xf32>
    %cst_57 = arith.constant dense<0.000000e+00> : vector<16xf32>
    %124 = vector.multi_reduction <add>, %123, %cst_57 [1] : vector<16x16xf32> to vector<16xf32>
    %125 = vector.shape_cast %124 : vector<16xf32> to vector<16x1xf32>
    %126 = vector.broadcast %125 : vector<16x1xf32> to vector<16x16xf32>
    %127 = arith.divf %123, %126 : vector<16x16xf32>
    %cst_58 = arith.constant dense<0.000000e+00> : vector<16x8xf32>
    %128 = tpu.matmul %127, %26, %cst_58 {dimension_numbers = #tpu.dot_dimension_numbers<[1], [0], [0], [1], [0, 0, 1, 1], [], []>} : vector<16x16xf32>, vector<16x8xf32>, vector<16x8xf32> -> vector<16x8xf32>
    %129 = vector.shape_cast %128 : vector<16x8xf32> to vector<2x8x8xf32>
    %c480 = arith.constant 480 : index
    %c0_59 = arith.constant 0 : index
    %130 = vector.load %arg4[%c480, %c0_59] : memref<1088x64xbf16, #tpu.memory_space<vmem>>, vector<32x16xbf16>
    %c592 = arith.constant 592 : index
    %c0_60 = arith.constant 0 : index
    %131 = vector.load %arg4[%c592, %c0_60] : memref<1088x64xbf16, #tpu.memory_space<vmem>>, vector<16x32xbf16>
    %cst_61 = arith.constant dense<0.000000e+00> : vector<16x16xf32>
    %132 = tpu.matmul %24, %130, %cst_61 {dimension_numbers = #tpu.dot_dimension_numbers<[1], [0], [0], [1], [0, 0, 1, 1], [], []>} : vector<16x32xbf16>, vector<32x16xbf16>, vector<16x16xf32> -> vector<16x16xf32>
    %c9 = arith.constant 9 : index
    %c0_62 = arith.constant 0 : index
    %c0_63 = arith.constant 0 : index
    %133 = vector.load %arg3[%c9, %c0_62, %c0_63] : memref<25x1x64xf32, #tpu.memory_space<vmem>>, vector<1x1x64xf32>
    %134 = vector.shape_cast %133 : vector<1x1x64xf32> to vector<1x64xf32>
    %135 = vector.extract_strided_slice %134 {offsets = [0, 0], sizes = [1, 16], strides = [1, 1]} : vector<1x64xf32> to vector<1x16xf32>
    %136 = vector.broadcast %135 : vector<1x16xf32> to vector<16x16xf32>
    %137 = arith.addf %132, %136 : vector<16x16xf32>
    %cst_64 = arith.constant 0.000000e+00 : f32
    %138 = vector.broadcast %cst_64 : f32 to vector<16x16xf32>
    %139 = arith.maximumf %137, %138 : vector<16x16xf32>
    %140 = arith.truncf %127 : vector<16x16xf32> to vector<16x16xbf16>
    %141 = arith.truncf %139 : vector<16x16xf32> to vector<16x16xbf16>
    %cst_65 = arith.constant dense<0.000000e+00> : vector<16x16xf32>
    %142 = tpu.matmul %140, %141, %cst_65 {dimension_numbers = #tpu.dot_dimension_numbers<[1], [0], [0], [1], [0, 0, 1, 1], [], []>} : vector<16x16xbf16>, vector<16x16xbf16>, vector<16x16xf32> -> vector<16x16xf32>
    %143 = arith.truncf %142 : vector<16x16xf32> to vector<16x16xbf16>
    %cst_66 = arith.constant dense<0.000000e+00> : vector<16x32xf32>
    %144 = tpu.matmul %143, %131, %cst_66 {dimension_numbers = #tpu.dot_dimension_numbers<[1], [0], [0], [1], [0, 0, 1, 1], [], []>} : vector<16x16xbf16>, vector<16x32xbf16>, vector<16x32xf32> -> vector<16x32xf32>
    %145 = arith.addf %86, %144 : vector<16x32xf32>
    %c128 = arith.constant 128 : index
    %c0_67 = arith.constant 0 : index
    %146 = vector.load %arg2[%c128, %c0_67] : memref<320x32xf32, #tpu.memory_space<vmem>>, vector<32x8xf32>
    %c256 = arith.constant 256 : index
    %c0_68 = arith.constant 0 : index
    %147 = vector.load %arg2[%c256, %c0_68] : memref<320x32xf32, #tpu.memory_space<vmem>>, vector<32x8xf32>
    %cst_69 = arith.constant dense<0.000000e+00> : vector<16x8xf32>
    %148 = tpu.matmul %23, %146, %cst_69 {dimension_numbers = #tpu.dot_dimension_numbers<[1], [0], [0], [1], [0, 0, 1, 1], [], []>} : vector<16x32xf32>, vector<32x8xf32>, vector<16x8xf32> -> vector<16x8xf32>
    %c2 = arith.constant 2 : index
    %c0_70 = arith.constant 0 : index
    %c0_71 = arith.constant 0 : index
    %149 = vector.load %arg3[%c2, %c0_70, %c0_71] : memref<25x1x64xf32, #tpu.memory_space<vmem>>, vector<1x1x64xf32>
    %150 = vector.shape_cast %149 : vector<1x1x64xf32> to vector<1x64xf32>
    %151 = vector.extract_strided_slice %150 {offsets = [0, 0], sizes = [1, 8], strides = [1, 1]} : vector<1x64xf32> to vector<1x8xf32>
    %152 = vector.broadcast %151 : vector<1x8xf32> to vector<16x8xf32>
    %153 = arith.addf %148, %152 : vector<16x8xf32>
    %cst_72 = arith.constant 0.000000e+00 : f32
    %154 = vector.broadcast %cst_72 : f32 to vector<16x8xf32>
    %155 = arith.maximumf %153, %154 : vector<16x8xf32>
    %cst_73 = arith.constant dense<0.000000e+00> : vector<16x8xf32>
    %156 = tpu.matmul %23, %147, %cst_73 {dimension_numbers = #tpu.dot_dimension_numbers<[1], [0], [0], [1], [0, 0, 1, 1], [], []>} : vector<16x32xf32>, vector<32x8xf32>, vector<16x8xf32> -> vector<16x8xf32>
    %c6 = arith.constant 6 : index
    %c0_74 = arith.constant 0 : index
    %c0_75 = arith.constant 0 : index
    %157 = vector.load %arg3[%c6, %c0_74, %c0_75] : memref<25x1x64xf32, #tpu.memory_space<vmem>>, vector<1x1x64xf32>
    %158 = vector.shape_cast %157 : vector<1x1x64xf32> to vector<1x64xf32>
    %159 = vector.extract_strided_slice %158 {offsets = [0, 0], sizes = [1, 8], strides = [1, 1]} : vector<1x64xf32> to vector<1x8xf32>
    %160 = vector.broadcast %159 : vector<1x8xf32> to vector<16x8xf32>
    %161 = arith.addf %156, %160 : vector<16x8xf32>
    %cst_76 = arith.constant dense<0.000000e+00> : vector<16x16xf32>
    %162 = tpu.matmul %155, %161, %cst_76 {dimension_numbers = #tpu.dot_dimension_numbers<[1], [1], [0], [0], [0, 0, 1, 0], [], []>} : vector<16x8xf32>, vector<16x8xf32>, vector<16x16xf32> -> vector<16x16xf32>
    %163 = arith.addf %162, %25 : vector<16x16xf32>
    %cst_77 = arith.constant dense<0xFF800000> : vector<16xf32>
    %164 = vector.multi_reduction <maximumf>, %163, %cst_77 [1] : vector<16x16xf32> to vector<16xf32>
    %165 = vector.shape_cast %164 : vector<16xf32> to vector<16x1xf32>
    %166 = vector.broadcast %165 : vector<16x1xf32> to vector<16x16xf32>
    %167 = arith.cmpf oge, %163, %166 : vector<16x16xf32>
    %cst_78 = arith.constant -1.000000e+30 : f32
    %168 = vector.broadcast %cst_78 : f32 to vector<16x16xf32>
    %169 = arith.select %167, %168, %163 : vector<16x16xi1>, vector<16x16xf32>
    %cst_79 = arith.constant dense<0xFF800000> : vector<16xf32>
    %170 = vector.multi_reduction <maximumf>, %169, %cst_79 [1] : vector<16x16xf32> to vector<16xf32>
    %171 = vector.shape_cast %170 : vector<16xf32> to vector<16x1xf32>
    %172 = vector.broadcast %171 : vector<16x1xf32> to vector<16x16xf32>
    %173 = arith.cmpf oge, %163, %172 : vector<16x16xf32>
    %cst_80 = arith.constant -1.000000e+30 : f32
    %174 = vector.broadcast %cst_80 : f32 to vector<16x16xf32>
    %175 = arith.select %173, %163, %174 : vector<16x16xi1>, vector<16x16xf32>
    %cst_81 = arith.constant 0.353553385 : f32
    %176 = vector.broadcast %cst_81 : f32 to vector<16x16xf32>
    %177 = arith.mulf %175, %176 : vector<16x16xf32>
    %cst_82 = arith.constant 0.353553385 : f32
    %178 = vector.broadcast %cst_82 : f32 to vector<16x1xf32>
    %179 = arith.mulf %178, %165 : vector<16x1xf32>
    %180 = vector.broadcast %179 : vector<16x1xf32> to vector<16x16xf32>
    %181 = arith.subf %177, %180 : vector<16x16xf32>
    %182 = math.exp %181 : vector<16x16xf32>
    %cst_83 = arith.constant dense<0.000000e+00> : vector<16xf32>
    %183 = vector.multi_reduction <add>, %182, %cst_83 [1] : vector<16x16xf32> to vector<16xf32>
    %184 = vector.shape_cast %183 : vector<16xf32> to vector<16x1xf32>
    %185 = vector.broadcast %184 : vector<16x1xf32> to vector<16x16xf32>
    %186 = arith.divf %182, %185 : vector<16x16xf32>
    %cst_84 = arith.constant dense<0.000000e+00> : vector<16x8xf32>
    %187 = tpu.matmul %186, %26, %cst_84 {dimension_numbers = #tpu.dot_dimension_numbers<[1], [0], [0], [1], [0, 0, 1, 1], [], []>} : vector<16x16xf32>, vector<16x8xf32>, vector<16x8xf32> -> vector<16x8xf32>
    %188 = vector.shape_cast %187 : vector<16x8xf32> to vector<2x8x8xf32>
    %c512 = arith.constant 512 : index
    %c0_85 = arith.constant 0 : index
    %189 = vector.load %arg4[%c512, %c0_85] : memref<1088x64xbf16, #tpu.memory_space<vmem>>, vector<32x16xbf16>
    %c608 = arith.constant 608 : index
    %c0_86 = arith.constant 0 : index
    %190 = vector.load %arg4[%c608, %c0_86] : memref<1088x64xbf16, #tpu.memory_space<vmem>>, vector<16x32xbf16>
    %cst_87 = arith.constant dense<0.000000e+00> : vector<16x16xf32>
    %191 = tpu.matmul %24, %189, %cst_87 {dimension_numbers = #tpu.dot_dimension_numbers<[1], [0], [0], [1], [0, 0, 1, 1], [], []>} : vector<16x32xbf16>, vector<32x16xbf16>, vector<16x16xf32> -> vector<16x16xf32>
    %c10 = arith.constant 10 : index
    %c0_88 = arith.constant 0 : index
    %c0_89 = arith.constant 0 : index
    %192 = vector.load %arg3[%c10, %c0_88, %c0_89] : memref<25x1x64xf32, #tpu.memory_space<vmem>>, vector<1x1x64xf32>
    %193 = vector.shape_cast %192 : vector<1x1x64xf32> to vector<1x64xf32>
    %194 = vector.extract_strided_slice %193 {offsets = [0, 0], sizes = [1, 16], strides = [1, 1]} : vector<1x64xf32> to vector<1x16xf32>
    %195 = vector.broadcast %194 : vector<1x16xf32> to vector<16x16xf32>
    %196 = arith.addf %191, %195 : vector<16x16xf32>
    %cst_90 = arith.constant 0.000000e+00 : f32
    %197 = vector.broadcast %cst_90 : f32 to vector<16x16xf32>
    %198 = arith.maximumf %196, %197 : vector<16x16xf32>
    %199 = arith.truncf %186 : vector<16x16xf32> to vector<16x16xbf16>
    %200 = arith.truncf %198 : vector<16x16xf32> to vector<16x16xbf16>
    %cst_91 = arith.constant dense<0.000000e+00> : vector<16x16xf32>
    %201 = tpu.matmul %199, %200, %cst_91 {dimension_numbers = #tpu.dot_dimension_numbers<[1], [0], [0], [1], [0, 0, 1, 1], [], []>} : vector<16x16xbf16>, vector<16x16xbf16>, vector<16x16xf32> -> vector<16x16xf32>
    %202 = arith.truncf %201 : vector<16x16xf32> to vector<16x16xbf16>
    %cst_92 = arith.constant dense<0.000000e+00> : vector<16x32xf32>
    %203 = tpu.matmul %202, %190, %cst_92 {dimension_numbers = #tpu.dot_dimension_numbers<[1], [0], [0], [1], [0, 0, 1, 1], [], []>} : vector<16x16xbf16>, vector<16x32xbf16>, vector<16x32xf32> -> vector<16x32xf32>
    %204 = arith.addf %145, %203 : vector<16x32xf32>
    %c160 = arith.constant 160 : index
    %c0_93 = arith.constant 0 : index
    %205 = vector.load %arg2[%c160, %c0_93] : memref<320x32xf32, #tpu.memory_space<vmem>>, vector<32x8xf32>
    %c288 = arith.constant 288 : index
    %c0_94 = arith.constant 0 : index
    %206 = vector.load %arg2[%c288, %c0_94] : memref<320x32xf32, #tpu.memory_space<vmem>>, vector<32x8xf32>
    %cst_95 = arith.constant dense<0.000000e+00> : vector<16x8xf32>
    %207 = tpu.matmul %23, %205, %cst_95 {dimension_numbers = #tpu.dot_dimension_numbers<[1], [0], [0], [1], [0, 0, 1, 1], [], []>} : vector<16x32xf32>, vector<32x8xf32>, vector<16x8xf32> -> vector<16x8xf32>
    %c3 = arith.constant 3 : index
    %c0_96 = arith.constant 0 : index
    %c0_97 = arith.constant 0 : index
    %208 = vector.load %arg3[%c3, %c0_96, %c0_97] : memref<25x1x64xf32, #tpu.memory_space<vmem>>, vector<1x1x64xf32>
    %209 = vector.shape_cast %208 : vector<1x1x64xf32> to vector<1x64xf32>
    %210 = vector.extract_strided_slice %209 {offsets = [0, 0], sizes = [1, 8], strides = [1, 1]} : vector<1x64xf32> to vector<1x8xf32>
    %211 = vector.broadcast %210 : vector<1x8xf32> to vector<16x8xf32>
    %212 = arith.addf %207, %211 : vector<16x8xf32>
    %cst_98 = arith.constant 0.000000e+00 : f32
    %213 = vector.broadcast %cst_98 : f32 to vector<16x8xf32>
    %214 = arith.maximumf %212, %213 : vector<16x8xf32>
    %cst_99 = arith.constant dense<0.000000e+00> : vector<16x8xf32>
    %215 = tpu.matmul %23, %206, %cst_99 {dimension_numbers = #tpu.dot_dimension_numbers<[1], [0], [0], [1], [0, 0, 1, 1], [], []>} : vector<16x32xf32>, vector<32x8xf32>, vector<16x8xf32> -> vector<16x8xf32>
    %c7 = arith.constant 7 : index
    %c0_100 = arith.constant 0 : index
    %c0_101 = arith.constant 0 : index
    %216 = vector.load %arg3[%c7, %c0_100, %c0_101] : memref<25x1x64xf32, #tpu.memory_space<vmem>>, vector<1x1x64xf32>
    %217 = vector.shape_cast %216 : vector<1x1x64xf32> to vector<1x64xf32>
    %218 = vector.extract_strided_slice %217 {offsets = [0, 0], sizes = [1, 8], strides = [1, 1]} : vector<1x64xf32> to vector<1x8xf32>
    %219 = vector.broadcast %218 : vector<1x8xf32> to vector<16x8xf32>
    %220 = arith.addf %215, %219 : vector<16x8xf32>
    %cst_102 = arith.constant dense<0.000000e+00> : vector<16x16xf32>
    %221 = tpu.matmul %214, %220, %cst_102 {dimension_numbers = #tpu.dot_dimension_numbers<[1], [1], [0], [0], [0, 0, 1, 0], [], []>} : vector<16x8xf32>, vector<16x8xf32>, vector<16x16xf32> -> vector<16x16xf32>
    %222 = arith.addf %221, %25 : vector<16x16xf32>
    %cst_103 = arith.constant dense<0xFF800000> : vector<16xf32>
    %223 = vector.multi_reduction <maximumf>, %222, %cst_103 [1] : vector<16x16xf32> to vector<16xf32>
    %224 = vector.shape_cast %223 : vector<16xf32> to vector<16x1xf32>
    %225 = vector.broadcast %224 : vector<16x1xf32> to vector<16x16xf32>
    %226 = arith.cmpf oge, %222, %225 : vector<16x16xf32>
    %cst_104 = arith.constant -1.000000e+30 : f32
    %227 = vector.broadcast %cst_104 : f32 to vector<16x16xf32>
    %228 = arith.select %226, %227, %222 : vector<16x16xi1>, vector<16x16xf32>
    %cst_105 = arith.constant dense<0xFF800000> : vector<16xf32>
    %229 = vector.multi_reduction <maximumf>, %228, %cst_105 [1] : vector<16x16xf32> to vector<16xf32>
    %230 = vector.shape_cast %229 : vector<16xf32> to vector<16x1xf32>
    %231 = vector.broadcast %230 : vector<16x1xf32> to vector<16x16xf32>
    %232 = arith.cmpf oge, %222, %231 : vector<16x16xf32>
    %cst_106 = arith.constant -1.000000e+30 : f32
    %233 = vector.broadcast %cst_106 : f32 to vector<16x16xf32>
    %234 = arith.select %232, %222, %233 : vector<16x16xi1>, vector<16x16xf32>
    %cst_107 = arith.constant 0.353553385 : f32
    %235 = vector.broadcast %cst_107 : f32 to vector<16x16xf32>
    %236 = arith.mulf %234, %235 : vector<16x16xf32>
    %cst_108 = arith.constant 0.353553385 : f32
    %237 = vector.broadcast %cst_108 : f32 to vector<16x1xf32>
    %238 = arith.mulf %237, %224 : vector<16x1xf32>
    %239 = vector.broadcast %238 : vector<16x1xf32> to vector<16x16xf32>
    %240 = arith.subf %236, %239 : vector<16x16xf32>
    %241 = math.exp %240 : vector<16x16xf32>
    %cst_109 = arith.constant dense<0.000000e+00> : vector<16xf32>
    %242 = vector.multi_reduction <add>, %241, %cst_109 [1] : vector<16x16xf32> to vector<16xf32>
    %243 = vector.shape_cast %242 : vector<16xf32> to vector<16x1xf32>
    %244 = vector.broadcast %243 : vector<16x1xf32> to vector<16x16xf32>
    %245 = arith.divf %241, %244 : vector<16x16xf32>
    %cst_110 = arith.constant dense<0.000000e+00> : vector<16x8xf32>
    %246 = tpu.matmul %245, %26, %cst_110 {dimension_numbers = #tpu.dot_dimension_numbers<[1], [0], [0], [1], [0, 0, 1, 1], [], []>} : vector<16x16xf32>, vector<16x8xf32>, vector<16x8xf32> -> vector<16x8xf32>
    %247 = vector.shape_cast %246 : vector<16x8xf32> to vector<2x8x8xf32>
    %c544 = arith.constant 544 : index
    %c0_111 = arith.constant 0 : index
    %248 = vector.load %arg4[%c544, %c0_111] : memref<1088x64xbf16, #tpu.memory_space<vmem>>, vector<32x16xbf16>
    %c624 = arith.constant 624 : index
    %c0_112 = arith.constant 0 : index
    %249 = vector.load %arg4[%c624, %c0_112] : memref<1088x64xbf16, #tpu.memory_space<vmem>>, vector<16x32xbf16>
    %cst_113 = arith.constant dense<0.000000e+00> : vector<16x16xf32>
    %250 = tpu.matmul %24, %248, %cst_113 {dimension_numbers = #tpu.dot_dimension_numbers<[1], [0], [0], [1], [0, 0, 1, 1], [], []>} : vector<16x32xbf16>, vector<32x16xbf16>, vector<16x16xf32> -> vector<16x16xf32>
    %c11 = arith.constant 11 : index
    %c0_114 = arith.constant 0 : index
    %c0_115 = arith.constant 0 : index
    %251 = vector.load %arg3[%c11, %c0_114, %c0_115] : memref<25x1x64xf32, #tpu.memory_space<vmem>>, vector<1x1x64xf32>
    %252 = vector.shape_cast %251 : vector<1x1x64xf32> to vector<1x64xf32>
    %253 = vector.extract_strided_slice %252 {offsets = [0, 0], sizes = [1, 16], strides = [1, 1]} : vector<1x64xf32> to vector<1x16xf32>
    %254 = vector.broadcast %253 : vector<1x16xf32> to vector<16x16xf32>
    %255 = arith.addf %250, %254 : vector<16x16xf32>
    %cst_116 = arith.constant 0.000000e+00 : f32
    %256 = vector.broadcast %cst_116 : f32 to vector<16x16xf32>
    %257 = arith.maximumf %255, %256 : vector<16x16xf32>
    %258 = arith.truncf %245 : vector<16x16xf32> to vector<16x16xbf16>
    %259 = arith.truncf %257 : vector<16x16xf32> to vector<16x16xbf16>
    %cst_117 = arith.constant dense<0.000000e+00> : vector<16x16xf32>
    %260 = tpu.matmul %258, %259, %cst_117 {dimension_numbers = #tpu.dot_dimension_numbers<[1], [0], [0], [1], [0, 0, 1, 1], [], []>} : vector<16x16xbf16>, vector<16x16xbf16>, vector<16x16xf32> -> vector<16x16xf32>
    %261 = arith.truncf %260 : vector<16x16xf32> to vector<16x16xbf16>
    %cst_118 = arith.constant dense<0.000000e+00> : vector<16x32xf32>
    %262 = tpu.matmul %261, %249, %cst_118 {dimension_numbers = #tpu.dot_dimension_numbers<[1], [0], [0], [1], [0, 0, 1, 1], [], []>} : vector<16x16xbf16>, vector<16x32xbf16>, vector<16x32xf32> -> vector<16x32xf32>
    %263 = arith.addf %204, %262 : vector<16x32xf32>
    %264 = vector.shape_cast %70 : vector<2x8x8xf32> to vector<2x1x8x8xf32>
    %265 = vector.shape_cast %129 : vector<2x8x8xf32> to vector<2x1x8x8xf32>
    %266 = vector.shape_cast %188 : vector<2x8x8xf32> to vector<2x1x8x8xf32>
    %267 = vector.shape_cast %247 : vector<2x8x8xf32> to vector<2x1x8x8xf32>
    %268 = tpu.concatenate %264, %265, %266, %267 in 1 : vector<2x1x8x8xf32>, vector<2x1x8x8xf32>, vector<2x1x8x8xf32>, vector<2x1x8x8xf32> -> vector<2x4x8x8xf32>
    %c0_119 = arith.constant 0 : index
    %c0_120 = arith.constant 0 : index
    %c0_121 = arith.constant 0 : index
    %c0_122 = arith.constant 0 : index
    %269 = vector.load %arg6[%c0_119, %c0_120, %c0_121, %c0_122] : memref<2x4x8x8xf32, #tpu.memory_space<vmem>>, vector<2x4x8x8xf32>
    tpu.vector_store %arg6[%c0_119, %c0_120, %c0_121, %c0_122], %268 {strides = array<i32>} : memref<2x4x8x8xf32, #tpu.memory_space<vmem>>, vector<2x4x8x8xf32>,
    %270 = arith.addf %23, %263 : vector<16x32xf32>
    %c12 = arith.constant 12 : index
    %c0_123 = arith.constant 0 : index
    %c0_124 = arith.constant 0 : index
    %271 = vector.load %arg3[%c12, %c0_123, %c0_124] : memref<25x1x64xf32, #tpu.memory_space<vmem>>, vector<1x1x64xf32>
    %272 = vector.shape_cast %271 : vector<1x1x64xf32> to vector<1x64xf32>
    %273 = vector.extract_strided_slice %272 {offsets = [0, 0], sizes = [1, 32], strides = [1, 1]} : vector<1x64xf32> to vector<1x32xf32>
    %274 = vector.broadcast %273 : vector<1x32xf32> to vector<16x32xf32>
    %275 = arith.addf %270, %274 : vector<16x32xf32>
    %cst_125 = arith.constant 0.000000e+00 : f32
    %276 = vector.broadcast %cst_125 : f32 to vector<16x32xf32>
    %277 = arith.cmpf ogt, %275, %276 : vector<16x32xf32>
    %cst_126 = arith.constant 5.000000e-01 : f32
    %278 = vector.broadcast %cst_126 : f32 to vector<16x32xf32>
    %279 = arith.mulf %278, %275 : vector<16x32xf32>
    %280 = arith.select %277, %275, %279 : vector<16x32xi1>, vector<16x32xf32>
    %281 = arith.truncf %280 : vector<16x32xf32> to vector<16x32xbf16>
    %c0_127 = arith.constant 0 : index
    %c0_128 = arith.constant 0 : index
    %282 = vector.load %arg4[%c0_127, %c0_128] : memref<1088x64xbf16, #tpu.memory_space<vmem>>, vector<32x32xbf16>
    %cst_129 = arith.constant dense<0.000000e+00> : vector<16x32xf32>
    %283 = tpu.matmul %281, %282, %cst_129 {dimension_numbers = #tpu.dot_dimension_numbers<[1], [0], [0], [1], [0, 0, 1, 1], [], []>} : vector<16x32xbf16>, vector<32x32xbf16>, vector<16x32xf32> -> vector<16x32xf32>
    %c13 = arith.constant 13 : index
    %c0_130 = arith.constant 0 : index
    %c0_131 = arith.constant 0 : index
    %284 = vector.load %arg3[%c13, %c0_130, %c0_131] : memref<25x1x64xf32, #tpu.memory_space<vmem>>, vector<1x1x64xf32>
    %285 = vector.shape_cast %284 : vector<1x1x64xf32> to vector<1x64xf32>
    %286 = vector.extract_strided_slice %285 {offsets = [0, 0], sizes = [1, 32], strides = [1, 1]} : vector<1x64xf32> to vector<1x32xf32>
    %287 = vector.broadcast %286 : vector<1x32xf32> to vector<16x32xf32>
    %288 = arith.addf %283, %287 : vector<16x32xf32>
    %c32_132 = arith.constant 32 : index
    %c0_133 = arith.constant 0 : index
    %289 = vector.load %arg4[%c32_132, %c0_133] : memref<1088x64xbf16, #tpu.memory_space<vmem>>, vector<32x64xbf16>
    %c14 = arith.constant 14 : index
    %c0_134 = arith.constant 0 : index
    %c0_135 = arith.constant 0 : index
    %290 = vector.load %arg3[%c14, %c0_134, %c0_135] : memref<25x1x64xf32, #tpu.memory_space<vmem>>, vector<1x1x64xf32>
    %291 = vector.shape_cast %290 : vector<1x1x64xf32> to vector<1x64xf32>
    %c64_136 = arith.constant 64 : index
    %c0_137 = arith.constant 0 : index
    %292 = vector.load %arg4[%c64_136, %c0_137] : memref<1088x64xbf16, #tpu.memory_space<vmem>>, vector<32x32xbf16>
    %c15 = arith.constant 15 : index
    %c0_138 = arith.constant 0 : index
    %c0_139 = arith.constant 0 : index
    %293 = vector.load %arg3[%c15, %c0_138, %c0_139] : memref<25x1x64xf32, #tpu.memory_space<vmem>>, vector<1x1x64xf32>
    %294 = vector.shape_cast %293 : vector<1x1x64xf32> to vector<1x64xf32>
    %295 = vector.extract_strided_slice %294 {offsets = [0, 0], sizes = [1, 32], strides = [1, 1]} : vector<1x64xf32> to vector<1x32xf32>
    %c96_140 = arith.constant 96 : index
    %c0_141 = arith.constant 0 : index
    %296 = vector.load %arg4[%c96_140, %c0_141] : memref<1088x64xbf16, #tpu.memory_space<vmem>>, vector<32x32xbf16>
    %c16_142 = arith.constant 16 : index
    %c0_143 = arith.constant 0 : index
    %c0_144 = arith.constant 0 : index
    %297 = vector.load %arg3[%c16_142, %c0_143, %c0_144] : memref<25x1x64xf32, #tpu.memory_space<vmem>>, vector<1x1x64xf32>
    %298 = vector.shape_cast %297 : vector<1x1x64xf32> to vector<1x64xf32>
    %299 = vector.extract_strided_slice %298 {offsets = [0, 0], sizes = [1, 32], strides = [1, 1]} : vector<1x64xf32> to vector<1x32xf32>
    %c128_145 = arith.constant 128 : index
    %c0_146 = arith.constant 0 : index
    %300 = vector.load %arg4[%c128_145, %c0_146] : memref<1088x64xbf16, #tpu.memory_space<vmem>>, vector<64x64xbf16>
    %c17 = arith.constant 17 : index
    %c0_147 = arith.constant 0 : index
    %c0_148 = arith.constant 0 : index
    %301 = vector.load %arg3[%c17, %c0_147, %c0_148] : memref<25x1x64xf32, #tpu.memory_space<vmem>>, vector<1x1x64xf32>
    %302 = vector.shape_cast %301 : vector<1x1x64xf32> to vector<1x64xf32>
    %c640 = arith.constant 640 : index
    %c0_149 = arith.constant 0 : index
    %303 = vector.load %arg4[%c640, %c0_149] : memref<1088x64xbf16, #tpu.memory_space<vmem>>, vector<64x16xbf16>
    %c704 = arith.constant 704 : index
    %c0_150 = arith.constant 0 : index
    %304 = vector.load %arg4[%c704, %c0_150] : memref<1088x64xbf16, #tpu.memory_space<vmem>>, vector<16x64xbf16>
    %c720 = arith.constant 720 : index
    %c0_151 = arith.constant 0 : index
    %305 = vector.load %arg4[%c720, %c0_151] : memref<1088x64xbf16, #tpu.memory_space<vmem>>, vector<32x64xbf16>
    %c752 = arith.constant 752 : index
    %c0_152 = arith.constant 0 : index
    %306 = vector.load %arg4[%c752, %c0_152] : memref<1088x64xbf16, #tpu.memory_space<vmem>>, vector<32x64xbf16>
    %307 = arith.truncf %288 : vector<16x32xf32> to vector<16x32xbf16>
    %cst_153 = arith.constant dense<0.000000e+00> : vector<16x64xf32>
    %308 = tpu.matmul %307, %289, %cst_153 {dimension_numbers = #tpu.dot_dimension_numbers<[1], [0], [0], [1], [0, 0, 1, 1], [], []>} : vector<16x32xbf16>, vector<32x64xbf16>, vector<16x64xf32> -> vector<16x64xf32>
    %309 = vector.broadcast %291 : vector<1x64xf32> to vector<16x64xf32>
    %310 = arith.addf %308, %309 : vector<16x64xf32>
    %cst_154 = arith.constant 0.000000e+00 : f32
    %311 = vector.broadcast %cst_154 : f32 to vector<16x64xf32>
    %312 = arith.maximumf %310, %311 : vector<16x64xf32>
    %cst_155 = arith.constant dense<0.000000e+00> : vector<16x32xf32>
    %313 = tpu.matmul %307, %292, %cst_155 {dimension_numbers = #tpu.dot_dimension_numbers<[1], [0], [0], [1], [0, 0, 1, 1], [], []>} : vector<16x32xbf16>, vector<32x32xbf16>, vector<16x32xf32> -> vector<16x32xf32>
    %314 = vector.broadcast %295 : vector<1x32xf32> to vector<16x32xf32>
    %315 = arith.addf %313, %314 : vector<16x32xf32>
    %cst_156 = arith.constant dense<0.000000e+00> : vector<16x32xf32>
    %316 = tpu.matmul %307, %296, %cst_156 {dimension_numbers = #tpu.dot_dimension_numbers<[1], [0], [0], [1], [0, 0, 1, 1], [], []>} : vector<16x32xbf16>, vector<32x32xbf16>, vector<16x32xf32> -> vector<16x32xf32>
    %317 = vector.broadcast %299 : vector<1x32xf32> to vector<16x32xf32>
    %318 = arith.addf %316, %317 : vector<16x32xf32>
    %cst_157 = arith.constant 0.000000e+00 : f32
    %319 = vector.broadcast %cst_157 : f32 to vector<16x32xf32>
    %320 = arith.maximumf %318, %319 : vector<16x32xf32>
    %321 = tpu.concatenate %315, %320 in 0 : vector<16x32xf32>, vector<16x32xf32> -> vector<32x32xf32>
    %322 = arith.truncf %321 : vector<32x32xf32> to vector<32x32xbf16>
    %cst_158 = arith.constant dense<0.000000e+00> : vector<32x64xf32>
    %323 = tpu.matmul %322, %305, %cst_158 {dimension_numbers = #tpu.dot_dimension_numbers<[1], [0], [0], [1], [0, 0, 1, 1], [], []>} : vector<32x32xbf16>, vector<32x64xbf16>, vector<32x64xf32> -> vector<32x64xf32>
    %324 = vector.extract_strided_slice %323 {offsets = [0, 0], sizes = [16, 64], strides = [1, 1]} : vector<32x64xf32> to vector<16x64xf32>
    %325 = vector.extract_strided_slice %323 {offsets = [16, 0], sizes = [16, 64], strides = [1, 1]} : vector<32x64xf32> to vector<16x64xf32>
    %326 = arith.mulf %312, %324 : vector<16x64xf32>
    %327 = arith.truncf %326 : vector<16x64xf32> to vector<16x64xbf16>
    %cst_159 = arith.constant dense<0.000000e+00> : vector<16x16xf32>
    %328 = tpu.matmul %327, %303, %cst_159 {dimension_numbers = #tpu.dot_dimension_numbers<[1], [0], [0], [1], [0, 0, 1, 1], [], []>} : vector<16x64xbf16>, vector<64x16xbf16>, vector<16x16xf32> -> vector<16x16xf32>
    %cst_160 = arith.constant 2.500000e-01 : f32
    %329 = vector.broadcast %cst_160 : f32 to vector<16x16xf32>
    %330 = arith.mulf %328, %329 : vector<16x16xf32>
    %cst_161 = arith.constant dense<0.000000e+00> : vector<32x64xf32>
    %331 = tpu.matmul %322, %306, %cst_161 {dimension_numbers = #tpu.dot_dimension_numbers<[1], [0], [0], [1], [0, 0, 1, 1], [], []>} : vector<32x32xbf16>, vector<32x64xbf16>, vector<32x64xf32> -> vector<32x64xf32>
    %332 = vector.extract_strided_slice %331 {offsets = [0, 0], sizes = [16, 64], strides = [1, 1]} : vector<32x64xf32> to vector<16x64xf32>
    %333 = vector.extract_strided_slice %331 {offsets = [16, 0], sizes = [16, 64], strides = [1, 1]} : vector<32x64xf32> to vector<16x64xf32>
    %334 = arith.mulf %312, %332 : vector<16x64xf32>
    %335 = arith.truncf %334 : vector<16x64xf32> to vector<16x64xbf16>
    %cst_162 = arith.constant dense<0.000000e+00> : vector<16x16xf32>
    %336 = tpu.matmul %335, %303, %cst_162 {dimension_numbers = #tpu.dot_dimension_numbers<[1], [0], [0], [1], [0, 0, 1, 1], [], []>} : vector<16x64xbf16>, vector<64x16xbf16>, vector<16x16xf32> -> vector<16x16xf32>
    %cst_163 = arith.constant 2.500000e-01 : f32
    %337 = vector.broadcast %cst_163 : f32 to vector<16x16xf32>
    %338 = arith.mulf %336, %337 : vector<16x16xf32>
    %339 = arith.maximumf %330, %338 : vector<16x16xf32>
    %340 = arith.subf %330, %339 : vector<16x16xf32>
    %341 = math.exp %340 : vector<16x16xf32>
    %342 = arith.subf %338, %339 : vector<16x16xf32>
    %343 = math.exp %342 : vector<16x16xf32>
    %344 = arith.addf %341, %343 : vector<16x16xf32>
    %345 = tpu.reciprocal %344 {approx = true} : vector<16x16xf32> -> vector<16x16xf32>
    %cst_164 = arith.constant 0.000000e+00 : f32
    %346 = vector.broadcast %cst_164 : f32 to vector<16x64xf32>
    %347 = arith.truncf %341 : vector<16x16xf32> to vector<16x16xbf16>
    %cst_165 = arith.constant dense<0.000000e+00> : vector<16x64xf32>
    %348 = tpu.matmul %347, %304, %cst_165 {dimension_numbers = #tpu.dot_dimension_numbers<[1], [0], [0], [1], [0, 0, 1, 1], [], []>} : vector<16x16xbf16>, vector<16x64xbf16>, vector<16x64xf32> -> vector<16x64xf32>
    %349 = arith.mulf %348, %325 : vector<16x64xf32>
    %350 = arith.addf %346, %349 : vector<16x64xf32>
    %351 = arith.truncf %343 : vector<16x16xf32> to vector<16x16xbf16>
    %cst_166 = arith.constant dense<0.000000e+00> : vector<16x64xf32>
    %352 = tpu.matmul %351, %304, %cst_166 {dimension_numbers = #tpu.dot_dimension_numbers<[1], [0], [0], [1], [0, 0, 1, 1], [], []>} : vector<16x16xbf16>, vector<16x64xbf16>, vector<16x64xf32> -> vector<16x64xf32>
    %353 = arith.mulf %352, %333 : vector<16x64xf32>
    %354 = arith.addf %350, %353 : vector<16x64xf32>
    %355 = arith.truncf %345 : vector<16x16xf32> to vector<16x16xbf16>
    %cst_167 = arith.constant dense<0.000000e+00> : vector<16x64xf32>
    %356 = tpu.matmul %355, %304, %cst_167 {dimension_numbers = #tpu.dot_dimension_numbers<[1], [0], [0], [1], [0, 0, 1, 1], [], []>} : vector<16x16xbf16>, vector<16x64xbf16>, vector<16x64xf32> -> vector<16x64xf32>
    %357 = arith.mulf %354, %356 : vector<16x64xf32>
    %358 = arith.truncf %357 : vector<16x64xf32> to vector<16x64xbf16>
    %cst_168 = arith.constant dense<0.000000e+00> : vector<16x64xf32>
    %359 = tpu.matmul %358, %300, %cst_168 {dimension_numbers = #tpu.dot_dimension_numbers<[1], [0], [0], [1], [0, 0, 1, 1], [], []>} : vector<16x64xbf16>, vector<64x64xbf16>, vector<16x64xf32> -> vector<16x64xf32>
    %360 = arith.addf %312, %359 : vector<16x64xf32>
    %361 = vector.broadcast %302 : vector<1x64xf32> to vector<16x64xf32>
    %362 = arith.addf %360, %361 : vector<16x64xf32>
    %cst_169 = arith.constant 0.000000e+00 : f32
    %363 = vector.broadcast %cst_169 : f32 to vector<16x64xf32>
    %364 = arith.cmpf ogt, %362, %363 : vector<16x64xf32>
    %365 = math.exp %362 : vector<16x64xf32>
    %cst_170 = arith.constant 1.000000e+00 : f32
    %366 = vector.broadcast %cst_170 : f32 to vector<16x64xf32>
    %367 = arith.subf %365, %366 : vector<16x64xf32>
    %368 = arith.select %364, %362, %367 : vector<16x64xi1>, vector<16x64xf32>
    %cst_171 = arith.constant dense<0.000000e+00> : vector<16xf32>
    %369 = vector.multi_reduction <add>, %368, %cst_171 [1] : vector<16x64xf32> to vector<16xf32>
    %370 = vector.shape_cast %369 : vector<16xf32> to vector<16x1xf32>
    %cst_172 = arith.constant 6.400000e+01 : f32
    %371 = vector.broadcast %cst_172 : f32 to vector<16x1xf32>
    %372 = arith.divf %370, %371 : vector<16x1xf32>
    %373 = vector.broadcast %372 : vector<16x1xf32> to vector<16x64xf32>
    %374 = arith.subf %368, %373 : vector<16x64xf32>
    %375 = arith.mulf %374, %374 : vector<16x64xf32>
    %cst_173 = arith.constant dense<0.000000e+00> : vector<16xf32>
    %376 = vector.multi_reduction <add>, %375, %cst_173 [1] : vector<16x64xf32> to vector<16xf32>
    %377 = vector.shape_cast %376 : vector<16xf32> to vector<16x1xf32>
    %cst_174 = arith.constant 6.400000e+01 : f32
    %378 = vector.broadcast %cst_174 : f32 to vector<16x1xf32>
    %379 = arith.divf %377, %378 : vector<16x1xf32>
    %cst_175 = arith.constant 9.99999974E-6 : f32
    %380 = vector.broadcast %cst_175 : f32 to vector<16x1xf32>
    %381 = arith.addf %379, %380 : vector<16x1xf32>
    %382 = math.rsqrt %381 : vector<16x1xf32>
    %383 = vector.broadcast %382 : vector<16x1xf32> to vector<16x64xf32>
    %384 = arith.mulf %374, %383 : vector<16x64xf32>
    %c18 = arith.constant 18 : index
    %c0_176 = arith.constant 0 : index
    %c0_177 = arith.constant 0 : index
    %385 = vector.load %arg3[%c18, %c0_176, %c0_177] : memref<25x1x64xf32, #tpu.memory_space<vmem>>, vector<1x1x64xf32>
    %386 = vector.shape_cast %385 : vector<1x1x64xf32> to vector<1x64xf32>
    %387 = vector.broadcast %386 : vector<1x64xf32> to vector<16x64xf32>
    %388 = arith.mulf %384, %387 : vector<16x64xf32>
    %c19 = arith.constant 19 : index
    %c0_178 = arith.constant 0 : index
    %c0_179 = arith.constant 0 : index
    %389 = vector.load %arg3[%c19, %c0_178, %c0_179] : memref<25x1x64xf32, #tpu.memory_space<vmem>>, vector<1x1x64xf32>
    %390 = vector.shape_cast %389 : vector<1x1x64xf32> to vector<1x64xf32>
    %391 = vector.broadcast %390 : vector<1x64xf32> to vector<16x64xf32>
    %392 = arith.addf %388, %391 : vector<16x64xf32>
    %c192_180 = arith.constant 192 : index
    %c0_181 = arith.constant 0 : index
    %393 = vector.load %arg4[%c192_180, %c0_181] : memref<1088x64xbf16, #tpu.memory_space<vmem>>, vector<64x32xbf16>
    %c20 = arith.constant 20 : index
    %c0_182 = arith.constant 0 : index
    %c0_183 = arith.constant 0 : index
    %394 = vector.load %arg3[%c20, %c0_182, %c0_183] : memref<25x1x64xf32, #tpu.memory_space<vmem>>, vector<1x1x64xf32>
    %395 = vector.shape_cast %394 : vector<1x1x64xf32> to vector<1x64xf32>
    %396 = vector.extract_strided_slice %395 {offsets = [0, 0], sizes = [1, 32], strides = [1, 1]} : vector<1x64xf32> to vector<1x32xf32>
    %c256_184 = arith.constant 256 : index
    %c0_185 = arith.constant 0 : index
    %397 = vector.load %arg4[%c256_184, %c0_185] : memref<1088x64xbf16, #tpu.memory_space<vmem>>, vector<64x64xbf16>
    %c21 = arith.constant 21 : index
    %c0_186 = arith.constant 0 : index
    %c0_187 = arith.constant 0 : index
    %398 = vector.load %arg3[%c21, %c0_186, %c0_187] : memref<25x1x64xf32, #tpu.memory_space<vmem>>, vector<1x1x64xf32>
    %399 = vector.shape_cast %398 : vector<1x1x64xf32> to vector<1x64xf32>
    %c320 = arith.constant 320 : index
    %c0_188 = arith.constant 0 : index
    %400 = vector.load %arg4[%c320, %c0_188] : memref<1088x64xbf16, #tpu.memory_space<vmem>>, vector<64x64xbf16>
    %c22 = arith.constant 22 : index
    %c0_189 = arith.constant 0 : index
    %c0_190 = arith.constant 0 : index
    %401 = vector.load %arg3[%c22, %c0_189, %c0_190] : memref<25x1x64xf32, #tpu.memory_space<vmem>>, vector<1x1x64xf32>
    %402 = vector.shape_cast %401 : vector<1x1x64xf32> to vector<1x64xf32>
    %c384 = arith.constant 384 : index
    %c0_191 = arith.constant 0 : index
    %403 = vector.load %arg4[%c384, %c0_191] : memref<1088x64xbf16, #tpu.memory_space<vmem>>, vector<32x32xbf16>
    %c23 = arith.constant 23 : index
    %c0_192 = arith.constant 0 : index
    %c0_193 = arith.constant 0 : index
    %404 = vector.load %arg3[%c23, %c0_192, %c0_193] : memref<25x1x64xf32, #tpu.memory_space<vmem>>, vector<1x1x64xf32>
    %405 = vector.shape_cast %404 : vector<1x1x64xf32> to vector<1x64xf32>
    %406 = vector.extract_strided_slice %405 {offsets = [0, 0], sizes = [1, 32], strides = [1, 1]} : vector<1x64xf32> to vector<1x32xf32>
    %c784 = arith.constant 784 : index
    %c0_194 = arith.constant 0 : index
    %407 = vector.load %arg4[%c784, %c0_194] : memref<1088x64xbf16, #tpu.memory_space<vmem>>, vector<32x16xbf16>
    %c816 = arith.constant 816 : index
    %c0_195 = arith.constant 0 : index
    %408 = vector.load %arg4[%c816, %c0_195] : memref<1088x64xbf16, #tpu.memory_space<vmem>>, vector<16x32xbf16>
    %c832 = arith.constant 832 : index
    %c0_196 = arith.constant 0 : index
    %409 = vector.load %arg4[%c832, %c0_196] : memref<1088x64xbf16, #tpu.memory_space<vmem>>, vector<64x32xbf16>
    %c896 = arith.constant 896 : index
    %c0_197 = arith.constant 0 : index
    %410 = vector.load %arg4[%c896, %c0_197] : memref<1088x64xbf16, #tpu.memory_space<vmem>>, vector<64x32xbf16>
    %c960 = arith.constant 960 : index
    %c0_198 = arith.constant 0 : index
    %411 = vector.load %arg4[%c960, %c0_198] : memref<1088x64xbf16, #tpu.memory_space<vmem>>, vector<64x32xbf16>
    %c1024 = arith.constant 1024 : index
    %c0_199 = arith.constant 0 : index
    %412 = vector.load %arg4[%c1024, %c0_199] : memref<1088x64xbf16, #tpu.memory_space<vmem>>, vector<64x32xbf16>
    %413 = arith.truncf %392 : vector<16x64xf32> to vector<16x64xbf16>
    %cst_200 = arith.constant dense<0.000000e+00> : vector<16x32xf32>
    %414 = tpu.matmul %413, %393, %cst_200 {dimension_numbers = #tpu.dot_dimension_numbers<[1], [0], [0], [1], [0, 0, 1, 1], [], []>} : vector<16x64xbf16>, vector<64x32xbf16>, vector<16x32xf32> -> vector<16x32xf32>
    %415 = vector.broadcast %396 : vector<1x32xf32> to vector<16x32xf32>
    %416 = arith.addf %414, %415 : vector<16x32xf32>
    %cst_201 = arith.constant 0.000000e+00 : f32
    %417 = vector.broadcast %cst_201 : f32 to vector<16x32xf32>
    %418 = arith.maximumf %416, %417 : vector<16x32xf32>
    %cst_202 = arith.constant dense<0.000000e+00> : vector<16x64xf32>
    %419 = tpu.matmul %413, %397, %cst_202 {dimension_numbers = #tpu.dot_dimension_numbers<[1], [0], [0], [1], [0, 0, 1, 1], [], []>} : vector<16x64xbf16>, vector<64x64xbf16>, vector<16x64xf32> -> vector<16x64xf32>
    %420 = vector.broadcast %399 : vector<1x64xf32> to vector<16x64xf32>
    %421 = arith.addf %419, %420 : vector<16x64xf32>
    %cst_203 = arith.constant dense<0.000000e+00> : vector<16x64xf32>
    %422 = tpu.matmul %413, %400, %cst_203 {dimension_numbers = #tpu.dot_dimension_numbers<[1], [0], [0], [1], [0, 0, 1, 1], [], []>} : vector<16x64xbf16>, vector<64x64xbf16>, vector<16x64xf32> -> vector<16x64xf32>
    %423 = vector.broadcast %402 : vector<1x64xf32> to vector<16x64xf32>
    %424 = arith.addf %422, %423 : vector<16x64xf32>
    %cst_204 = arith.constant 0.000000e+00 : f32
    %425 = vector.broadcast %cst_204 : f32 to vector<16x64xf32>
    %426 = arith.maximumf %424, %425 : vector<16x64xf32>
    %427 = tpu.concatenate %421, %426 in 0 : vector<16x64xf32>, vector<16x64xf32> -> vector<32x64xf32>
    %428 = arith.truncf %427 : vector<32x64xf32> to vector<32x64xbf16>
    %cst_205 = arith.constant dense<0.000000e+00> : vector<32x32xf32>
    %429 = tpu.matmul %428, %409, %cst_205 {dimension_numbers = #tpu.dot_dimension_numbers<[1], [0], [0], [1], [0, 0, 1, 1], [], []>} : vector<32x64xbf16>, vector<64x32xbf16>, vector<32x32xf32> -> vector<32x32xf32>
    %430 = vector.extract_strided_slice %429 {offsets = [0, 0], sizes = [16, 32], strides = [1, 1]} : vector<32x32xf32> to vector<16x32xf32>
    %431 = vector.extract_strided_slice %429 {offsets = [16, 0], sizes = [16, 32], strides = [1, 1]} : vector<32x32xf32> to vector<16x32xf32>
    %432 = arith.mulf %418, %430 : vector<16x32xf32>
    %433 = arith.truncf %432 : vector<16x32xf32> to vector<16x32xbf16>
    %cst_206 = arith.constant dense<0.000000e+00> : vector<16x16xf32>
    %434 = tpu.matmul %433, %407, %cst_206 {dimension_numbers = #tpu.dot_dimension_numbers<[1], [0], [0], [1], [0, 0, 1, 1], [], []>} : vector<16x32xbf16>, vector<32x16xbf16>, vector<16x16xf32> -> vector<16x16xf32>
    %cst_207 = arith.constant 2.500000e-01 : f32
    %435 = vector.broadcast %cst_207 : f32 to vector<16x16xf32>
    %436 = arith.mulf %434, %435 : vector<16x16xf32>
    %cst_208 = arith.constant dense<0.000000e+00> : vector<32x32xf32>
    %437 = tpu.matmul %428, %410, %cst_208 {dimension_numbers = #tpu.dot_dimension_numbers<[1], [0], [0], [1], [0, 0, 1, 1], [], []>} : vector<32x64xbf16>, vector<64x32xbf16>, vector<32x32xf32> -> vector<32x32xf32>
    %438 = vector.extract_strided_slice %437 {offsets = [0, 0], sizes = [16, 32], strides = [1, 1]} : vector<32x32xf32> to vector<16x32xf32>
    %439 = vector.extract_strided_slice %437 {offsets = [16, 0], sizes = [16, 32], strides = [1, 1]} : vector<32x32xf32> to vector<16x32xf32>
    %440 = arith.mulf %418, %438 : vector<16x32xf32>
    %441 = arith.truncf %440 : vector<16x32xf32> to vector<16x32xbf16>
    %cst_209 = arith.constant dense<0.000000e+00> : vector<16x16xf32>
    %442 = tpu.matmul %441, %407, %cst_209 {dimension_numbers = #tpu.dot_dimension_numbers<[1], [0], [0], [1], [0, 0, 1, 1], [], []>} : vector<16x32xbf16>, vector<32x16xbf16>, vector<16x16xf32> -> vector<16x16xf32>
    %cst_210 = arith.constant 2.500000e-01 : f32
    %443 = vector.broadcast %cst_210 : f32 to vector<16x16xf32>
    %444 = arith.mulf %442, %443 : vector<16x16xf32>
    %cst_211 = arith.constant dense<0.000000e+00> : vector<32x32xf32>
    %445 = tpu.matmul %428, %411, %cst_211 {dimension_numbers = #tpu.dot_dimension_numbers<[1], [0], [0], [1], [0, 0, 1, 1], [], []>} : vector<32x64xbf16>, vector<64x32xbf16>, vector<32x32xf32> -> vector<32x32xf32>
    %446 = vector.extract_strided_slice %445 {offsets = [0, 0], sizes = [16, 32], strides = [1, 1]} : vector<32x32xf32> to vector<16x32xf32>
    %447 = vector.extract_strided_slice %445 {offsets = [16, 0], sizes = [16, 32], strides = [1, 1]} : vector<32x32xf32> to vector<16x32xf32>
    %448 = arith.mulf %418, %446 : vector<16x32xf32>
    %449 = arith.truncf %448 : vector<16x32xf32> to vector<16x32xbf16>
    %cst_212 = arith.constant dense<0.000000e+00> : vector<16x16xf32>
    %450 = tpu.matmul %449, %407, %cst_212 {dimension_numbers = #tpu.dot_dimension_numbers<[1], [0], [0], [1], [0, 0, 1, 1], [], []>} : vector<16x32xbf16>, vector<32x16xbf16>, vector<16x16xf32> -> vector<16x16xf32>
    %cst_213 = arith.constant 2.500000e-01 : f32
    %451 = vector.broadcast %cst_213 : f32 to vector<16x16xf32>
    %452 = arith.mulf %450, %451 : vector<16x16xf32>
    %cst_214 = arith.constant dense<0.000000e+00> : vector<32x32xf32>
    %453 = tpu.matmul %428, %412, %cst_214 {dimension_numbers = #tpu.dot_dimension_numbers<[1], [0], [0], [1], [0, 0, 1, 1], [], []>} : vector<32x64xbf16>, vector<64x32xbf16>, vector<32x32xf32> -> vector<32x32xf32>
    %454 = vector.extract_strided_slice %453 {offsets = [0, 0], sizes = [16, 32], strides = [1, 1]} : vector<32x32xf32> to vector<16x32xf32>
    %455 = vector.extract_strided_slice %453 {offsets = [16, 0], sizes = [16, 32], strides = [1, 1]} : vector<32x32xf32> to vector<16x32xf32>
    %456 = arith.mulf %418, %454 : vector<16x32xf32>
    %457 = arith.truncf %456 : vector<16x32xf32> to vector<16x32xbf16>
    %cst_215 = arith.constant dense<0.000000e+00> : vector<16x16xf32>
    %458 = tpu.matmul %457, %407, %cst_215 {dimension_numbers = #tpu.dot_dimension_numbers<[1], [0], [0], [1], [0, 0, 1, 1], [], []>} : vector<16x32xbf16>, vector<32x16xbf16>, vector<16x16xf32> -> vector<16x16xf32>
    %cst_216 = arith.constant 2.500000e-01 : f32
    %459 = vector.broadcast %cst_216 : f32 to vector<16x16xf32>
    %460 = arith.mulf %458, %459 : vector<16x16xf32>
    %461 = arith.maximumf %436, %444 : vector<16x16xf32>
    %462 = arith.maximumf %461, %452 : vector<16x16xf32>
    %463 = arith.maximumf %462, %460 : vector<16x16xf32>
    %464 = arith.subf %436, %463 : vector<16x16xf32>
    %465 = math.exp %464 : vector<16x16xf32>
    %466 = arith.subf %444, %463 : vector<16x16xf32>
    %467 = math.exp %466 : vector<16x16xf32>
    %468 = arith.subf %452, %463 : vector<16x16xf32>
    %469 = math.exp %468 : vector<16x16xf32>
    %470 = arith.subf %460, %463 : vector<16x16xf32>
    %471 = math.exp %470 : vector<16x16xf32>
    %472 = arith.addf %465, %467 : vector<16x16xf32>
    %473 = arith.addf %472, %469 : vector<16x16xf32>
    %474 = arith.addf %473, %471 : vector<16x16xf32>
    %475 = tpu.reciprocal %474 {approx = true} : vector<16x16xf32> -> vector<16x16xf32>
    %cst_217 = arith.constant 0.000000e+00 : f32
    %476 = vector.broadcast %cst_217 : f32 to vector<16x32xf32>
    %477 = arith.truncf %465 : vector<16x16xf32> to vector<16x16xbf16>
    %cst_218 = arith.constant dense<0.000000e+00> : vector<16x32xf32>
    %478 = tpu.matmul %477, %408, %cst_218 {dimension_numbers = #tpu.dot_dimension_numbers<[1], [0], [0], [1], [0, 0, 1, 1], [], []>} : vector<16x16xbf16>, vector<16x32xbf16>, vector<16x32xf32> -> vector<16x32xf32>
    %479 = arith.mulf %478, %431 : vector<16x32xf32>
    %480 = arith.addf %476, %479 : vector<16x32xf32>
    %481 = arith.truncf %467 : vector<16x16xf32> to vector<16x16xbf16>
    %cst_219 = arith.constant dense<0.000000e+00> : vector<16x32xf32>
    %482 = tpu.matmul %481, %408, %cst_219 {dimension_numbers = #tpu.dot_dimension_numbers<[1], [0], [0], [1], [0, 0, 1, 1], [], []>} : vector<16x16xbf16>, vector<16x32xbf16>, vector<16x32xf32> -> vector<16x32xf32>
    %483 = arith.mulf %482, %439 : vector<16x32xf32>
    %484 = arith.addf %480, %483 : vector<16x32xf32>
    %485 = arith.truncf %469 : vector<16x16xf32> to vector<16x16xbf16>
    %cst_220 = arith.constant dense<0.000000e+00> : vector<16x32xf32>
    %486 = tpu.matmul %485, %408, %cst_220 {dimension_numbers = #tpu.dot_dimension_numbers<[1], [0], [0], [1], [0, 0, 1, 1], [], []>} : vector<16x16xbf16>, vector<16x32xbf16>, vector<16x32xf32> -> vector<16x32xf32>
    %487 = arith.mulf %486, %447 : vector<16x32xf32>
    %488 = arith.addf %484, %487 : vector<16x32xf32>
    %489 = arith.truncf %471 : vector<16x16xf32> to vector<16x16xbf16>
    %cst_221 = arith.constant dense<0.000000e+00> : vector<16x32xf32>
    %490 = tpu.matmul %489, %408, %cst_221 {dimension_numbers = #tpu.dot_dimension_numbers<[1], [0], [0], [1], [0, 0, 1, 1], [], []>} : vector<16x16xbf16>, vector<16x32xbf16>, vector<16x32xf32> -> vector<16x32xf32>
    %491 = arith.mulf %490, %455 : vector<16x32xf32>
    %492 = arith.addf %488, %491 : vector<16x32xf32>
    %493 = arith.truncf %475 : vector<16x16xf32> to vector<16x16xbf16>
    %cst_222 = arith.constant dense<0.000000e+00> : vector<16x32xf32>
    %494 = tpu.matmul %493, %408, %cst_222 {dimension_numbers = #tpu.dot_dimension_numbers<[1], [0], [0], [1], [0, 0, 1, 1], [], []>} : vector<16x16xbf16>, vector<16x32xbf16>, vector<16x32xf32> -> vector<16x32xf32>
    %495 = arith.mulf %492, %494 : vector<16x32xf32>
    %496 = arith.truncf %495 : vector<16x32xf32> to vector<16x32xbf16>
    %cst_223 = arith.constant dense<0.000000e+00> : vector<16x32xf32>
    %497 = tpu.matmul %496, %403, %cst_223 {dimension_numbers = #tpu.dot_dimension_numbers<[1], [0], [0], [1], [0, 0, 1, 1], [], []>} : vector<16x32xbf16>, vector<32x32xbf16>, vector<16x32xf32> -> vector<16x32xf32>
    %498 = arith.addf %418, %497 : vector<16x32xf32>
    %499 = vector.broadcast %406 : vector<1x32xf32> to vector<16x32xf32>
    %500 = arith.addf %498, %499 : vector<16x32xf32>
    %501 = arith.truncf %500 : vector<16x32xf32> to vector<16x32xbf16>
    %c416 = arith.constant 416 : index
    %c0_224 = arith.constant 0 : index
    %502 = vector.load %arg4[%c416, %c0_224] : memref<1088x64xbf16, #tpu.memory_space<vmem>>, vector<32x8xbf16>
    %cst_225 = arith.constant dense<0.000000e+00> : vector<16x8xf32>
    %503 = tpu.matmul %501, %502, %cst_225 {dimension_numbers = #tpu.dot_dimension_numbers<[1], [0], [0], [1], [0, 0, 1, 1], [], []>} : vector<16x32xbf16>, vector<32x8xbf16>, vector<16x8xf32> -> vector<16x8xf32>
    %c24 = arith.constant 24 : index
    %c0_226 = arith.constant 0 : index
    %c0_227 = arith.constant 0 : index
    %504 = vector.load %arg3[%c24, %c0_226, %c0_227] : memref<25x1x64xf32, #tpu.memory_space<vmem>>, vector<1x1x64xf32>
    %505 = vector.shape_cast %504 : vector<1x1x64xf32> to vector<1x64xf32>
    %506 = vector.extract_strided_slice %505 {offsets = [0, 0], sizes = [1, 8], strides = [1, 1]} : vector<1x64xf32> to vector<1x8xf32>
    %507 = vector.broadcast %506 : vector<1x8xf32> to vector<16x8xf32>
    %508 = arith.addf %503, %507 : vector<16x8xf32>
    %509 = vector.broadcast %15 : vector<16x1xf32> to vector<16x8xf32>
    %510 = arith.mulf %508, %509 : vector<16x8xf32>
    %511 = vector.broadcast %5 : vector<16x1xf32> to vector<16x8xf32>
    %512 = arith.addf %510, %511 : vector<16x8xf32>
    %513 = vector.shape_cast %512 : vector<16x8xf32> to vector<2x8x8xf32>
    %c0_228 = arith.constant 0 : index
    %c0_229 = arith.constant 0 : index
    %c0_230 = arith.constant 0 : index
    %514 = vector.load %arg5[%c0_228, %c0_229, %c0_230] : memref<2x8x8xf32, #tpu.memory_space<vmem>>, vector<2x8x8xf32>
    tpu.vector_store %arg5[%c0_228, %c0_229, %c0_230], %513 {strides = array<i32>} : memref<2x8x8xf32, #tpu.memory_space<vmem>>, vector<2x8x8xf32>,
    return
  }
  func.func @transform_0(%arg0: i32) -> (i32, i32, i32) {
    %c0_i32 = arith.constant 0 : i32
    %c0_i32_0 = arith.constant 0 : i32
    %c0_i32_1 = arith.constant 0 : i32
    %c0_i32_2 = arith.constant 0 : i32
    return %c0_i32, %c0_i32_0, %c0_i32_1 : i32, i32, i32
  }
  func.func @transform_1(%arg0: i32) -> (i32, i32) {
    %c0_i32 = arith.constant 0 : i32
    %c0_i32_0 = arith.constant 0 : i32
    %c0_i32_1 = arith.constant 0 : i32
    return %c0_i32, %c0_i32_0 : i32, i32
  }
  func.func @transform_2(%arg0: i32) -> (i32, i32, i32) {
    %c0_i32 = arith.constant 0 : i32
    %c0_i32_0 = arith.constant 0 : i32
    %c0_i32_1 = arith.constant 0 : i32
    %c0_i32_2 = arith.constant 0 : i32
    return %c0_i32, %c0_i32_0, %c0_i32_1 : i32, i32, i32
  }
  func.func @transform_3(%arg0: i32) -> (i32, i32) {
    %c0_i32 = arith.constant 0 : i32
    %c0_i32_0 = arith.constant 0 : i32
    %c0_i32_1 = arith.constant 0 : i32
    return %c0_i32, %c0_i32_0 : i32, i32
  }
  func.func @transform_4(%arg0: i32) -> (i32, i32, i32) {
    %c0_i32 = arith.constant 0 : i32
    %c0_i32_0 = arith.constant 0 : i32
    %c0_i32_1 = arith.constant 0 : i32
    %c0_i32_2 = arith.constant 0 : i32
    return %c0_i32, %c0_i32_0, %c0_i32_1 : i32, i32, i32
  }
  func.func @transform_5(%arg0: i32) -> (i32, i32, i32, i32) {
    %c0_i32 = arith.constant 0 : i32
    %c0_i32_0 = arith.constant 0 : i32
    %c0_i32_1 = arith.constant 0 : i32
    %c0_i32_2 = arith.constant 0 : i32
    %c0_i32_3 = arith.constant 0 : i32
    return %c0_i32, %c0_i32_0, %c0_i32_1, %c0_i32_2 : i32, i32, i32, i32
  }
}

</mosaic_0001>

<bundles_post_ra>
// kernel: fwd.1
= control target key start
LH: loop header
LB: loop body
LE: loop exit
PB: predicated region body
PF: predicated region fallthrough
CT: control target
= control target key end

     0   :  { %11 = vsyncpa [#allocation3], 0  ;;  %s6461_s0 = inlined_call_operand.hbm [shape: f32[2,8,16], index: 0, kind: input, shape index: {}]   ;;  %s6462_s1 = inlined_call_operand.hbm [shape: f32[320,32], index: 1, kind: input, shape index: {}]   ;;  %s6463_s2 = inlined_call_operand.hbm [shape: f32[25,1,64], index: 2, kind: input, shape index: {}]   ;;  %s6464_s3 = inlined_call_operand.hbm [shape: bf16[1088,64], index: 3, kind: input, shape index: {}]   ;;  %s6465_s4 = inlined_call_operand.vmem [shape: f32[2,8,8], index: 4, kind: output, shape index: {0}]   ;;  %s6466_s5 = inlined_call_operand.hbm [shape: f32[2,4,8,8], index: 5, kind: output, shape index: {1}]  }
   0x1   :  { %12 = vsyncpa [#allocation6], 0 }
   0x2   :  { %13 = vsyncpa [#allocation9], 0 }
   0x3   :  { %14 = vsyncpa [#allocation4], 0  ;;  %s5854_s18 = smov [#allocation5]   ;;  %s5855_s20 = smov [#allocation2]  }
   0x4   :  { %s32_s19 = sshll.u32 %s5854_s18, 4  ;;  %s20_s21 = sshll.u32 %s5855_s20, 4  ;;  %s33_s19 = int_to_ptr.vmem [resolvable:$true] %s32_s19  ;;  %s5897_s21 = int_to_ptr.vmem [resolvable:$true] %s20_s21 }
   0x5   :  { %s5736_s24 = scalar_lea.hbm %s6462_s1, 5120 }
   0x6   :  { %p5737_p0 = scmp.ne.s32.totalorder %s6462_s1, %s5736_s24  ;;  %p5740_p1 = scmp.lt.u32.totalorder %s5736_s24, %s6462_s1 }
   0x8   :  { %p5742_p2 = pnand %p5740_p1, %p5737_p0 }
   0xa   :  { %5745 = shalt.err (!%p5742_p2)
}
   0xb   :  { %s5746_s29 = scalar_lea.vmem %s33_s19, 5120  ;;  %p5751_p4 = scmp.lt.s32.totalorder %s33_s19, %s33_s19 }
   0xc   :  { %p5747_p3 = scmp.ne.s32.totalorder %s33_s19, %s5746_s29  ;;  %p5752_p5 = scmp.lt.s32.totalorder %s5746_s29, %s5746_s29 }
   0xe   :  { %p5753_p6 = por %p5752_p5, %p5751_p4 }
  0x10   :  { %p5754_p7 = pnand %p5753_p6, %p5747_p3 }
  0x12   :  { %5757 = shalt.err (!%p5754_p7)
}
  0x13   :  { %s5856_s30 = smov 128   ;;  %s5857_s6 = smov 8  }
  0x14   :  { %38 = dma.hbm_to_vmem [thread:$0]  %s6462_s1, 5120, %s33_s19, [#allocation6], %s5856_s30, %s5856_s30, %s5857_s6  }
  0x15   :  { %s5758_s11 = scalar_lea.hbm %s6461_s0, 256 }
  0x16   :  { %p5759_p8 = scmp.ne.s32.totalorder %s6461_s0, %s5758_s11  ;;  %p5762_p9 = scmp.lt.u32.totalorder %s5758_s11, %s6461_s0 }
  0x18   :  { %p5764_p10 = pnand %p5762_p9, %p5759_p8 }
  0x1a   :  { %5767 = shalt.err (!%p5764_p10)
}
  0x1b   :  { %s5768_s16 = scalar_lea.vmem %s5897_s21, 256  ;;  %p5773_p12 = scmp.lt.s32.totalorder %s5897_s21, %s5897_s21 }
  0x1c   :  { %p5769_p11 = scmp.ne.s32.totalorder %s5897_s21, %s5768_s16  ;;  %p5774_p13 = scmp.lt.s32.totalorder %s5768_s16, %s5768_s16 }
  0x1e   :  { %p5775_p0 = por %p5774_p13, %p5773_p12 }
  0x20   :  { %p5776_p1 = pnand %p5775_p0, %p5769_p11 }
  0x22   :  { %5779 = shalt.err (!%p5776_p1)
}
  0x23   :  { %26 = dma.hbm_to_vmem [thread:$0]  %s6461_s0, 256, %s5897_s21, [#allocation3], %s5856_s30, %s5856_s30, %s5857_s6  }
  0x24   :  { %s5858_s18 = smov [#allocation7]   ;;  %s5780_s23 = scalar_lea.hbm %s6463_s2, 400 }
  0x25   :  { %s44_s19 = sshll.u32 %s5858_s18, 4  ;;  %p5781_p2 = scmp.ne.s32.totalorder %s6463_s2, %s5780_s23  ;;  %s45_s19 = int_to_ptr.vmem [resolvable:$true] %s44_s19 }
  0x26   :  { %p5784_p3 = scmp.lt.u32.totalorder %s5780_s23, %s6463_s2 }
  0x28   :  { %p5786_p4 = pnand %p5784_p3, %p5781_p2 }
  0x2a   :  { %5789 = shalt.err (!%p5786_p4)
}
  0x2b   :  { %s5790_s28 = scalar_lea.vmem %s45_s19, 400  ;;  %s5794_s0 = scalar_lea.vmem %s45_s19, 416 }
  0x2c   :  { %p5791_p5 = scmp.ne.s32.totalorder %s45_s19, %s5790_s28  ;;  %p5795_p6 = scmp.lt.s32.totalorder %s45_s19, %s45_s19 }
  0x2d   :  { %p5796_p7 = scmp.lt.s32.totalorder %s5794_s0, %s5790_s28 }
  0x2f   :  { %p5797_p8 = por %p5796_p7, %p5795_p6 }
  0x31   :  { %p5798_p9 = pnand %p5797_p8, %p5791_p5 }
  0x33   :  { %5801 = shalt.err (!%p5798_p9)
}
  0x34   :  { %s5859_s21 = smov 16   ;;  %s5860_s29 = smov 1  }
  0x35   :  { %50 = dma.hbm_to_vmem [thread:$0]  %s6463_s2, 400, %s45_s19, [#allocation6], %s5859_s21, %s5859_s21, %s5860_s29  }
  0x36   :  { %s5861_s9 = smov [#allocation8]   ;;  %s5802_s13 = scalar_lea.hbm %s6464_s3, 8704 }
  0x37   :  { %s56_s10 = sshll.u32 %s5861_s9, 4  ;;  %p5803_p10 = scmp.ne.s32.totalorder %s6464_s3, %s5802_s13  ;;  %s57_s10 = int_to_ptr.vmem [resolvable:$true] %s56_s10 }
  0x38   :  { %p5806_p11 = scmp.lt.u32.totalorder %s5802_s13, %s6464_s3 }
  0x3a   :  { %p5808_p12 = pnand %p5806_p11, %p5803_p10 }
  0x3c   :  { %5811 = shalt.err (!%p5808_p12)
}
  0x3d   :  { %s5812_s17 = scalar_lea.vmem %s57_s10, 8704  ;;  %p5817_p0 = scmp.lt.s32.totalorder %s57_s10, %s57_s10 }
  0x3e   :  { %p5813_p13 = scmp.ne.s32.totalorder %s57_s10, %s5812_s17  ;;  %p5818_p1 = scmp.lt.s32.totalorder %s5812_s17, %s5812_s17 }
  0x40   :  { %p5819_p2 = por %p5818_p1, %p5817_p0 }
  0x42   :  { %p5820_p3 = pnand %p5819_p2, %p5813_p13 }
  0x44   :  { %5823 = shalt.err (!%p5820_p3)
}
  0x45   :  { %s5862_s2 = smov 64   ;;  %s5863_s18 = smov 4  }
  0x46   :  { %62 = dma.hbm_to_vmem [thread:$0]  %s6464_s3, 8704, %s57_s10, [#allocation9], %s5862_s2, %s5862_s2, %s5863_s18  }
  0x47   :  { %5846 = dma.done.wait [#allocation3], 256  }
  0x48   :  { %5847 = vsyncadd [#allocation3], 4294967040 }
  0x49   :  { %5848 = dma.done.wait [#allocation6], 5520  }
  0x4a   :  { %5849 = vsyncadd [#allocation6], 4294961776 }
  0x4b   :  { %5850 = dma.done.wait [#allocation9], 8704  }
  0x4c   :  { %5851 = vsyncadd [#allocation9], 4294958592  ;;  %vm78_vm0 = vcmask 130048   ;;  %v76_v0 = vld [vmem:[#allocation2] sm:$0xff]  ;;  %v77_v1 = vld [vmem:[#allocation2 + $0x8] sm:$0xff]  ;;  %vm229_vm5 = vcmask 261120  }
  0x4d   :  { %v79_v2 = vsel %vm78_vm0, %v76_v0, 0.0  ;;  %v82_v3 = vsel %vm78_vm0, %v77_v1, 0.0  ;;  %v120_v14 = vld [vmem:[#allocation5] sm:$0xff]  ;;  %v121_v15 = vld [vmem:[#allocation5 + $0x8] sm:$0xff]  ;;  %v216_v43 = vld [vmem:[#allocation5 + $0x50] sm:$0xff]  ;;  %vm396_vm6 = vcmask 64512  }
  0x4e   :  { %80 = vadd.xlane.f32.xlu0 %v79_v2  ;;  %v5467_v16 = vpack.c.bf16 %v121_v15, %v120_v14  ;;  %v214_v17 = vld [vmem:[#allocation5 + $0x40] sm:$0xff]  ;;  %v215_v18 = vld [vmem:[#allocation5 + $0x48] sm:$0xff]  ;;  %v217_v44 = vld [vmem:[#allocation5 + $0x58] sm:$0xff]  ;;  %vm5865_vm12 = vmmov 0   ;;  %s5866_s3 = smov [#allocation10]  }
  0x4f   :  { %v218_v19 = vld [vmem:[#allocation5 + $0xc0] sm:$0xff]  ;;  %v5471_v20 = vpack.c.bf16 %v215_v18, %v214_v17  ;;  %v219_v21 = vld [vmem:[#allocation5 + $0xc8] sm:$0xff]  ;;  %v220_v45 = vld [vmem:[#allocation5 + $0xd0] sm:$0xff]  ;;  %v5475_v46 = vpack.c.bf16 %v217_v44, %v216_v43  ;;  %v5864_v44 = vmov 0.0   ;;  %s4551_s22 = sshll.u32 %s5866_s3, 4  ;;  %s4552_s22 = int_to_ptr.vmem [resolvable:$true] %s4551_s22 }
  0x50   :  { %5468 = vmatprep.subr.bf16.mxu0 %v5467_v16  ;;  %v5479_v22 = vpack.c.bf16 %v219_v21, %v218_v19  ;;  %v221_v47 = vld [vmem:[#allocation5 + $0xd8] sm:$0xff]  ;;  %v122_v51 = vld [vmem:[#allocation5 + $0x10] sm:$0xff]  ;;  %v4572_v57 = vld [vmem:[#allocation7 + $0x4] ss:$0 sm:$0xff]  ;;  %s5824_s23 = scalar_lea.vmem %s4552_s22, 1024  ;;  %p5829_p5 = scmp.lt.s32.totalorder %s4552_s22, %s4552_s22 }
  0x51   :  { %5470 = vmatpush3.bf16.msra.mxu0 %v5467_v16  ;;  %5472 = vmatprep.subr.bf16.mxu1 %v5471_v20  ;;  %v5483_v48 = vpack.c.bf16 %v221_v47, %v220_v45  ;;  %v123_v53 = vld [vmem:[#allocation5 + $0x18] sm:$0xff]  ;;  %v4569_v58 = vld [vmem:[#allocation7] ss:$0 sm:$0xff]  ;;  %vm5990_vm7 = vmpackc.low %vm396_vm6, %vm396_vm6  ;;  %p5825_p4 = scmp.ne.s32.totalorder %s4552_s22, %s5824_s23  ;;  %p5830_p6 = scmp.lt.s32.totalorder %s5824_s23, %s5824_s23 }
  0x52   :  { %83 = vadd.xlane.f32.xlu0 %v82_v3  ;;  %5480 = vmatprep.subr.bf16.mxu0 %v5479_v22 }
  0x53   :  { %5474 = vmatpush3.bf16.msra.mxu1 %v5471_v20  ;;  %p5831_p7 = por %p5830_p6, %p5829_p5 }
  0x54   :  { %5476 = vmatprep.subr.bf16.mxu1 %v5475_v46 }
  0x55   :  { %p5832_p8 = pnand %p5831_p7, %p5825_p4 }
  0x57   :  { %5478 = vmatpush3.bf16.msra.mxu1 %v5475_v46 }
  0xdb   :  { %v81_v4 = vpop.xlane.xlu0 %80 }
  0xdc   :  { %v5960_v5 = vmul.f32 0.0625, %v81_v4 }
  0xde   :  { %v88_v6 = vsub.f32 %v76_v0, %v5960_v5 }
  0xdf   :  { %v84_v7 = vpop.xlane.xlu0 %83 }
  0xe0   :  { %v5963_v8 = vmul.f32 0.0625, %v84_v7  ;;  %v90_v9 = vmul.f32 %v88_v6, %v88_v6 }
  0xe2   :  { %v89_v10 = vsub.f32 %v77_v1, %v5963_v8  ;;  %v92_v11 = vsel %vm78_vm0, %v90_v9, 0.0  ;;  %v6000_v9 = vld [vmem:[#allocation5 + $0x28] sm:$0xff] }
  0xe3   :  { %93 = vadd.xlane.f32.xlu1 %v92_v11 }
  0xe4   :  { %v91_v12 = vmul.f32 %v89_v10, %v89_v10 }
  0xe6   :  { %v95_v13 = vsel %vm78_vm0, %v91_v12, 0.0 }
  0xe7   :  { %96 = vadd.xlane.f32.xlu1 %v95_v13 }
 0x170   :  { %v94_v23 = vpop.xlane.xlu1 %93 }
 0x171   :  { %v98_v24 = vmul.f32 0.0625, %v94_v23 }
 0x173   :  { %v100_v25 = vadd.f32 1e-05, %v98_v24 }
 0x174   :  { %v97_v26 = vpop.xlane.xlu1 %96 }
 0x175   :  { %5656 = vrsqrt.f32 %v100_v25  ;;  %v99_v27 = vmul.f32 0.0625, %v97_v26  ;;  %vm104_vm1 = vcmp.eq.f32.partialorder %v100_v25, inf  ;;  %v107_v31 = vand.u32 2147483648, %v100_v25 }
 0x176   :  { %vm106_vm2 = vcmp.eq.f32.partialorder %v100_v25, 0.0 }
 0x177   :  { %v101_v28 = vadd.f32 1e-05, %v99_v27 }
 0x179   :  { %5658 = vrsqrt.f32 %v101_v28  ;;  %vm111_vm3 = vcmp.eq.f32.partialorder %v101_v28, inf  ;;  %v114_v36 = vand.u32 2147483648, %v101_v28  ;;  %vm113_vm4 = vcmp.eq.f32.partialorder %v101_v28, 0.0 }
 0x17f   :  { %v5657_v29 = vpop.eup %5656 }
 0x180   :  { %v103_v30 = vmul.f32 %v5657_v29, %v100_v25 }
 0x182   :  { %v105_v32 = vsel %vm104_vm1, %v100_v25, %v103_v30 }
 0x183   :  { %v5659_v33 = vpop.eup %5658  ;;  %v5968_v34 = vsel %vm106_vm2, %v107_v31, %v105_v32 }
 0x184   :  { %v110_v35 = vmul.f32 %v5659_v33, %v101_v28  ;;  %5660 = vrcp.f32 %v5968_v34 }
 0x186   :  { %v112_v37 = vsel %vm111_vm3, %v101_v28, %v110_v35 }
 0x187   :  { %v5971_v38 = vsel %vm113_vm4, %v114_v36, %v112_v37 }
 0x188   :  { %5662 = vrcp.f32 %v5971_v38 }
 0x18e   :  { %v5661_v39 = vpop.eup %5660 }
 0x18f   :  { %v117_v40 = vmul.f32 %v5661_v39, %v88_v6 }
 0x191   :  { %4976 = vmatprep.mubr.msk.f32.mxu0 %vm78_vm0, %v117_v40 }
 0x192   :  { %v5663_v41 = vpop.eup %5662 }
 0x193   :  { %v119_v42 = vmul.f32 %v5663_v41, %v89_v10  ;;  %v6002_v10 = vld [vmem:[#allocation5 + $0x20] sm:$0xff]  ;;  %v212_v41 = vld [vmem:[#allocation5 + $0x30] sm:$0xff] }
 0x195   :  { %4977 = vmatmul.mubr.msk.f32.vlgmr.msra.gmra.mrb[0].mxu0 %vm78_vm0, %v119_v42  ;;  %v213_v42 = vld [vmem:[#allocation5 + $0x38] sm:$0xff] }
 0x196   :  { %5482 = vmatpush3.bf16.msra.mxu0 %v5479_v22  ;;  %v6012_v43 = vpack.c.bf16 %v213_v42, %v212_v41 }
 0x197   :  { %5484 = vmatprep.subr.bf16.mxu0 %v5483_v48 }
 0x19a   :  { %5486 = vmatpush3.bf16.msra.mxu0 %v5483_v48 }
 0x19b   :  { %5494 = vmatprep.subr.bf16.mxu0 %v6012_v43 }
 0x268   :  { %v4978_v49 = vpop.f32.mrb[0].mxu0 }
 0x269   :  { %v206_v50 = vmax.f32 %v4978_v49, 0.0  ;;  %v196_v52 = vpop.f32.mrb[1].mxu0 }
 0x26a   :  { %v205_v54 = vmax.f32 %v196_v52, 0.0 }
 0x26b   :  { %v5978_v56 = vadd.f32 %v206_v50, %v123_v53  ;;  %v728_v53 = vld [vmem:[#allocation5 + $0xe0] sm:$0xff] }
 0x26c   :  { %v5976_v55 = vadd.f32 %v205_v54, %v122_v51  ;;  %v5588_v51 = vld [vmem:[#allocation8 + $0xe0] sm:$0xff]   ;;  %v729_v54 = vld [vmem:[#allocation5 + $0xe8] sm:$0xff] }
 0x26e   :  { %4987 = vmatprep.mubr.msk.f32.mxu1 %vm229_vm5, %v5976_v55  ;;  %4998 = vmatprep.mubr.msk.f32.mxu0 %vm229_vm5, %v5976_v55 }
 0x26f   :  { %4988 = vmatmul.mubr.msk.f32.vlgmr.msra.gmra.mrb[0].mxu1 %vm229_vm5, %v5978_v56  ;;  %4999 = vmatmul.mubr.msk.f32.vlgmr.msra.gmra.mrb[2].mxu0 %vm229_vm5, %v5978_v56 }
 0x270   :  { %5496 = vmatpush3.bf16.msra.mxu0 %v6012_v43 }
 0x271   :  { %5015 = vmatprep.subr.bf16.mxu0 %v5864_v44 }
 0x342   :  { %v4989_v59 = vpop.f32.mrb[0].mxu1  ;;  %v5000_v60 = vpop.f32.mrb[2].mxu0 }
 0x343   :  { %v393_v61 = vadd.f32 %v5000_v60, %v4572_v57  ;;  %v302_v62 = vpop.f32.mrb[1].mxu1  ;;  %v387_v63 = vpop.f32.mrb[3].mxu0  ;;  %v308_v6 = vadd.f32 %v4989_v59, %v4569_v58  ;;  %v730_v59 = vld [vmem:[#allocation5 + $0xf0] sm:$0xff]  ;;  %v731_v60 = vld [vmem:[#allocation5 + $0xf8] sm:$0xff] }
 0x344   :  { %v303_v0 = vadd.f32 %v4569_v58, %v302_v62  ;;  %v388_v1 = vadd.f32 %v4572_v57, %v387_v63  ;;  %v5589_v57 = vld [vmem:[#allocation8 + $0xe8] sm:$0xff]   ;;  %v5505_v58 = vpack.c.bf16 %v729_v54, %v728_v53  ;;  %v5509_v62 = vpack.c.bf16 %v731_v60, %v730_v59 }
 0x345   :  { %v312_v7 = vmax.f32 %v308_v6, 0.0 }
 0x346   :  { %v311_v3 = vmax.f32 %v303_v0, 0.0  ;;  %v5487_v4 = vpack.c.bf16 %v393_v61, %v388_v1  ;;  %v6027_v61 = vpack.c.bf16 %v5978_v56, %v5976_v55  ;;  %v4581_v1 = vld [vmem:[#allocation7 + $0x8] ss:$0 sm:$0xff] }
 0x348   :  { %5489 = vmatprep.subr.msk.bf16.mxu1 %vm5990_vm7, %v5487_v4  ;;  %5005 = vmatprep.mubr.msk.f32.mxu1 %vm396_vm6, %v311_v3 }
 0x349   :  { %5492 = vmatpush3.bf16.xpose.msk.msra.mxu1 %vm5990_vm7, %v5487_v4 }
 0x34a   :  { %5023 = vmatprep.subr.bf16.mxu1 %v5864_v44 }
 0x350   :  { %5006 = vmatmul.mubr.msk.f32.vlgmr.msra.gmra.mrb[2].mxu1 %vm396_vm6, %v312_v7 }
 0x351   :  { %5025 = vmatprep.mubr.msk.bf16.mxu1 %vm5865_vm12, %v5864_v44 }
 0x423   :  { %v5007_v11 = vpop.f32.mrb[2].mxu1 }
 0x424   :  { %v481_v12 = vadd.f32 %v5007_v11, %v6000_v9  ;;  %v475_v13 = vpop.f32.mrb[3].mxu1 }
 0x425   :  { %v476_v14 = vadd.f32 %v475_v13, %v6002_v10  ;;  %v724_v13 = vld [vmem:[#allocation5 + $0x60] sm:$0xff] }
 0x426   :  { %v487_v15 = vsel %vm78_vm0, %v481_v12, -inf }
 0x427   :  { %488 = vmax.xlane.f32.xlu1 %v487_v15  ;;  %v484_v16 = vsel %vm78_vm0, %v476_v14, -inf }
 0x428   :  { %485 = vmax.xlane.f32.xlu0 %v484_v16 }
 0x4b4   :  { %v489_v17 = vpop.xlane.xlu1 %488 }
 0x4b5   :  { %vm491_vm8 = vcmp.ge.f32.partialorder %v481_v12, %v489_v17  ;;  %v486_v18 = vpop.xlane.xlu0 %485  ;;  %v507_v26 = vmul.f32 0.35355338, %v489_v17  ;;  %v4589_v17 = vld [vmem:[#allocation7 + $0x5] ss:$0 sm:$0xff] }
 0x4b6   :  { %vm490_vm9 = vcmp.ge.f32.partialorder %v476_v14, %v486_v18  ;;  %v493_v19 = vsel %vm491_vm8, -1e+30, %v481_v12  ;;  %v506_v29 = vmul.f32 0.35355338, %v486_v18 }
 0x4b7   :  { %v497_v20 = vsel %vm78_vm0, %v493_v19, -inf  ;;  %v492_v21 = vsel %vm490_vm9, -1e+30, %v476_v14 }
 0x4b8   :  { %498 = vmax.xlane.f32.xlu1 %v497_v20  ;;  %v494_v22 = vsel %vm78_vm0, %v492_v21, -inf  ;;  %v726_v20 = vld [vmem:[#allocation5 + $0x70] sm:$0xff]  ;;  %v727_v21 = vld [vmem:[#allocation5 + $0x78] sm:$0xff] }
 0x4b9   :  { %495 = vmax.xlane.f32.xlu0 %v494_v22 }
 0x545   :  { %v499_v23 = vpop.xlane.xlu1 %498 }
 0x546   :  { %vm501_vm10 = vcmp.ge.f32.partialorder %v481_v12, %v499_v23  ;;  %v496_v24 = vpop.xlane.xlu0 %495 }
 0x547   :  { %v503_v25 = vsel %vm501_vm10, %v481_v12, -1e+30  ;;  %vm500_vm11 = vcmp.ge.f32.partialorder %v476_v14, %v496_v24 }
 0x548   :  { %v505_v27 = vmul.f32 0.35355338, %v503_v25  ;;  %v502_v28 = vsel %vm500_vm11, %v476_v14, -1e+30  ;;  %v725_v14 = vld [vmem:[#allocation5 + $0x68] sm:$0xff] }
 0x549   :  { %v504_v30 = vmul.f32 0.35355338, %v502_v28  ;;  %v5497_v18 = vpack.c.bf16 %v725_v14, %v724_v13 }
 0x54a   :  { %v509_v31 = vsub.f32 %v505_v27, %v507_v26  ;;  %v5501_v26 = vpack.c.bf16 %v727_v21, %v726_v20 }
 0x54b   :  { %v508_v32 = vsub.f32 %v504_v30, %v506_v29 }
 0x54c   :  { %v512_v33 = vmul.f32 1.442695, %v509_v31 }
 0x54d   :  { %v510_v35 = vmul.f32 1.442695, %v508_v32 }
 0x54e   :  { %5664 = vpow2.f32 %v512_v33  ;;  %v4586_v33 = vld [vmem:[#allocation7 + $0x1] ss:$0 sm:$0xff] }
 0x54f   :  { %5666 = vpow2.f32 %v510_v35 }
 0x558   :  { %v5665_v36 = vpop.eup %5664 }
 0x559   :  { %v5667_v37 = vpop.eup %5666  ;;  %v517_v39 = vsel %vm78_vm0, %v5665_v36, 0.0 }
 0x55a   :  { %518 = vadd.xlane.f32.xlu1 %v517_v39  ;;  %v514_v40 = vsel %vm78_vm0, %v5667_v37, 0.0 }
 0x55b   :  { %515 = vadd.xlane.f32.xlu0 %v514_v40 }
 0x5e7   :  { %v519_v45 = vpop.xlane.xlu1 %518 }
 0x5e8   :  { %5668 = vrcp.f32 %v519_v45  ;;  %v516_v46 = vpop.xlane.xlu0 %515 }
 0x5e9   :  { %5670 = vrcp.f32 %v516_v46 }
 0x5f2   :  { %v5669_v47 = vpop.eup %5668 }
 0x5f3   :  { %v5671_v48 = vpop.eup %5670  ;;  %v523_v49 = vmul.f32 %v5669_v47, %v5665_v36 }
 0x5f4   :  { %v521_v50 = vmul.f32 %v5671_v48, %v5667_v37 }
 0x5f6   :  { %5012 = vmatprep.mubr.msk.f32.mxu0 %vm78_vm0, %v521_v50  ;;  %v677_v52 = vpack.c.bf16 %v523_v49, %v521_v50 }
 0x5f7   :  { %5013 = vmatmul.mubr.msk.f32.vlgmr.msra.gmra.mrb[4].mxu0 %vm78_vm0, %v523_v49 }
 0x5f8   :  { %5016 = vmatpush3.bf16.msra.mxu0 %v5588_v51  ;;  %5019 = vmatprep.mubr.msk.bf16.mxu0 %vm5865_vm12, %v5864_v44 }
 0x5f9   :  { %5017 = vmatprep.subr.bf16.mxu0 %v5864_v44 }
 0x5fc   :  { %5018 = vmatpush3.bf16.msra.mxu0 %v5589_v57 }
 0x5fd   :  { %5506 = vmatprep.subr.bf16.mxu0 %v5505_v58 }
 0x5ff   :  { %5020 = vmatmul.mubr.msk.bf16.vlgmr.msra.gmra.mrb[8].mxu0 %vm229_vm5, %v6027_v61 }
 0x600   :  { %5508 = vmatpush3.bf16.msra.mxu0 %v5505_v58  ;;  %5048 = vmatprep.mubr.msk.f32.mxu0 %vm229_vm5, %v5976_v55 }
 0x601   :  { %5510 = vmatprep.subr.bf16.mxu0 %v5509_v62 }
 0x604   :  { %5512 = vmatpush3.bf16.msra.mxu0 %v5509_v62 }
 0x605   :  { %5520 = vmatprep.subr.bf16.mxu0 %v6012_v43 }
 0x607   :  { %5049 = vmatmul.mubr.msk.f32.vlgmr.msra.gmra.mrb[6].mxu0 %vm229_vm5, %v5978_v56 }
 0x608   :  { %5522 = vmatpush3.bf16.msra.mxu0 %v6012_v43 }
 0x609   :  { %5065 = vmatprep.subr.bf16.mxu0 %v5864_v44 }
 0x6ca   :  { %v5014_v63 = vpop.f32.mrb[4].mxu0 }
 0x6cb   :  { %2432 = vst.msk [vmem:[#allocation10 + $0x20] sm:$0xff] %vm396_vm6, %v5014_v63  ;;  %v596_v0 = vpop.f32.mrb[5].mxu0 }
 0x6cc   :  { %2428 = vst.msk [vmem:[#allocation10] sm:$0xff] %vm396_vm6, %v596_v0 }
 0x6d2   :  { %v668_v3 = vpop.f32.mrb[8].mxu0 }
 0x6d3   :  { %v669_v4 = vadd.f32 %v4581_v1, %v668_v3  ;;  %v5021_v6 = vpop.f32.mrb[9].mxu0 }
 0x6d4   :  { %v671_v7 = vpop.f32.mrb[10].mxu0 }
 0x6d5   :  { %v672_v11 = vadd.f32 %v4581_v1, %v671_v7  ;;  %v5022_v12 = vpop.f32.mrb[11].mxu0  ;;  %v675_v15 = vmax.f32 %v669_v4, 0.0 }
 0x6d7   :  { %v676_v16 = vmax.f32 %v672_v11, 0.0 }
 0x6d9   :  { %v678_v19 = vpack.c.bf16 %v676_v16, %v675_v15 }
 0x6da   :  { %v5050_v22 = vpop.f32.mrb[6].mxu0 }
 0x6db   :  { %v897_v23 = vadd.f32 %v5050_v22, %v4589_v17  ;;  %5024 = vmatpush3.bf16.msra.mxu1 %v678_v19  ;;  %v891_v24 = vpop.f32.mrb[7].mxu0  ;;  %v5590_v22 = vld [vmem:[#allocation8 + $0xf0] sm:$0xff]  }
 0x6dc   :  { %v892_v25 = vadd.f32 %v4589_v17, %v891_v24  ;;  %5498 = vmatprep.subr.bf16.mxu1 %v5497_v18  ;;  %v5591_v24 = vld [vmem:[#allocation8 + $0xf8] sm:$0xff]  }
 0x6de   :  { %v5513_v27 = vpack.c.bf16 %v897_v23, %v892_v25  ;;  %5026 = vmatmul.mubr.msk.bf16.vlgmr.msra.gmra.mrb[4].mxu1 %vm78_vm0, %v677_v52  ;;  %v1328_v25 = vld [vmem:[#allocation5 + $0x100] sm:$0xff] }
 0x6df   :  { %5500 = vmatpush3.bf16.msra.mxu1 %v5497_v18  ;;  %5037 = vmatprep.mubr.msk.f32.mxu1 %vm229_vm5, %v5976_v55 }
 0x6e0   :  { %5502 = vmatprep.subr.bf16.mxu1 %v5501_v26 }
 0x6e3   :  { %5504 = vmatpush3.bf16.msra.mxu1 %v5501_v26  ;;  %v1329_v26 = vld [vmem:[#allocation5 + $0x108] sm:$0xff] }
 0x6e4   :  { %5515 = vmatprep.subr.msk.bf16.mxu1 %vm5990_vm7, %v5513_v27 }
 0x6e6   :  { %5038 = vmatmul.mubr.msk.f32.vlgmr.msra.gmra.mrb[8].mxu1 %vm229_vm5, %v5978_v56 }
 0x6ec   :  { %5518 = vmatpush3.bf16.xpose.msk.msra.mxu1 %vm5990_vm7, %v5513_v27  ;;  %v5592_v27 = vld [vmem:[#allocation8 + $0x120] sm:$0xff]  }
 0x6ed   :  { %5073 = vmatprep.subr.bf16.mxu1 %v5864_v44 }
 0x7b1   :  { %v6050_v28 = vpop.f32.mrb[4].mxu1 }
 0x7b2   :  { %v5027_v29 = vpop.f32.mrb[5].mxu1 }
 0x7b3   :  { %v6052_v30 = vpop.f32.mrb[6].mxu1  ;;  %v5531_v29 = vpack.c.bf16 %v1329_v26, %v1328_v25 }
 0x7b4   :  { %v723_v31 = vpack.c.bf16 %v6052_v30, %v6050_v28  ;;  %v5028_v32 = vpop.f32.mrb[7].mxu1  ;;  %v4598_v30 = vld [vmem:[#allocation7 + $0x9] ss:$0 sm:$0xff] }
 0x7b5   :  { %v1330_v32 = vld [vmem:[#allocation5 + $0x110] sm:$0xff] }
 0x7b9   :  { %v5039_v35 = vpop.f32.mrb[8].mxu1 }
 0x7ba   :  { %v812_v36 = vadd.f32 %v5039_v35, %v4586_v33  ;;  %v806_v37 = vpop.f32.mrb[9].mxu1 }
 0x7bb   :  { %v807_v39 = vadd.f32 %v4586_v33, %v806_v37  ;;  %v1331_v33 = vld [vmem:[#allocation5 + $0x118] sm:$0xff] }
 0x7bc   :  { %v816_v41 = vmax.f32 %v812_v36, 0.0  ;;  %v5535_v35 = vpack.c.bf16 %v1331_v33, %v1330_v32 }
 0x7bd   :  { %v815_v40 = vmax.f32 %v807_v39, 0.0 }
 0x7bf   :  { %5055 = vmatprep.mubr.msk.f32.mxu1 %vm396_vm6, %v815_v40 }
 0x7c0   :  { %5056 = vmatmul.mubr.msk.f32.vlgmr.msra.gmra.mrb[10].mxu1 %vm396_vm6, %v816_v41 }
 0x7c1   :  { %5075 = vmatprep.mubr.msk.bf16.mxu1 %vm5865_vm12, %v5864_v44 }
 0x893   :  { %v5057_v42 = vpop.f32.mrb[10].mxu1 }
 0x894   :  { %v984_v45 = vadd.f32 %v5057_v42, %v6000_v9  ;;  %v978_v46 = vpop.f32.mrb[11].mxu1 }
 0x895   :  { %v979_v47 = vadd.f32 %v978_v46, %v6002_v10 }
 0x896   :  { %v990_v48 = vsel %vm78_vm0, %v984_v45, -inf }
 0x897   :  { %991 = vmax.xlane.f32.xlu1 %v990_v48  ;;  %v987_v49 = vsel %vm78_vm0, %v979_v47, -inf }
 0x898   :  { %988 = vmax.xlane.f32.xlu0 %v987_v49 }
 0x924   :  { %v992_v50 = vpop.xlane.xlu1 %991 }
 0x925   :  { %vm994_vm13 = vcmp.ge.f32.partialorder %v984_v45, %v992_v50  ;;  %v989_v51 = vpop.xlane.xlu0 %988  ;;  %v1010_v62 = vmul.f32 0.35355338, %v992_v50  ;;  %v5593_v50 = vld [vmem:[#allocation8 + $0x128] sm:$0xff]  }
 0x926   :  { %vm993_vm14 = vcmp.ge.f32.partialorder %v979_v47, %v989_v51  ;;  %v996_v52 = vsel %vm994_vm13, -1e+30, %v984_v45  ;;  %v1009_v1 = vmul.f32 0.35355338, %v989_v51 }
 0x927   :  { %v1000_v53 = vsel %vm78_vm0, %v996_v52, -inf  ;;  %v995_v54 = vsel %vm993_vm14, -1e+30, %v979_v47 }
 0x928   :  { %1001 = vmax.xlane.f32.xlu1 %v1000_v53  ;;  %v997_v57 = vsel %vm78_vm0, %v995_v54, -inf  ;;  %v4610_v53 = vld [vmem:[#allocation7 + $0x6] ss:$0 sm:$0xff] }
 0x929   :  { %998 = vmax.xlane.f32.xlu0 %v997_v57 }
 0x9b5   :  { %v1002_v58 = vpop.xlane.xlu1 %1001 }
 0x9b6   :  { %vm1004_vm15 = vcmp.ge.f32.partialorder %v984_v45, %v1002_v58  ;;  %v999_v59 = vpop.xlane.xlu0 %998 }
 0x9b7   :  { %v1006_v60 = vsel %vm1004_vm15, %v984_v45, -1e+30  ;;  %vm1003_vm1 = vcmp.ge.f32.partialorder %v979_v47, %v999_v59  ;;  %vm2850_vm15 = vcmask 523264  }
 0x9b8   :  { %v1008_v63 = vmul.f32 0.35355338, %v1006_v60  ;;  %v1005_v0 = vsel %vm1003_vm1, %v979_v47, -1e+30 }
 0x9b9   :  { %v1007_v3 = vmul.f32 0.35355338, %v1005_v0 }
 0x9ba   :  { %v1012_v4 = vsub.f32 %v1008_v63, %v1010_v62  ;;  %v1324_v62 = vld [vmem:[#allocation5 + $0x80] sm:$0xff]  ;;  %v1325_v63 = vld [vmem:[#allocation5 + $0x88] sm:$0xff] }
 0x9bb   :  { %v1011_v6 = vsub.f32 %v1007_v3, %v1009_v1  ;;  %v5523_v0 = vpack.c.bf16 %v1325_v63, %v1324_v62  ;;  %v1326_v3 = vld [vmem:[#allocation5 + $0x90] sm:$0xff] }
 0x9bc   :  { %v1015_v7 = vmul.f32 1.442695, %v1012_v4  ;;  %v1327_v4 = vld [vmem:[#allocation5 + $0x98] sm:$0xff] }
 0x9bd   :  { %v1013_v11 = vmul.f32 1.442695, %v1011_v6 }
 0x9be   :  { %5672 = vpow2.f32 %v1015_v7 }
 0x9bf   :  { %5674 = vpow2.f32 %v1013_v11 }
 0x9c8   :  { %v5673_v12 = vpop.eup %5672 }
 0x9c9   :  { %v5675_v13 = vpop.eup %5674  ;;  %v1020_v14 = vsel %vm78_vm0, %v5673_v12, 0.0 }
 0x9ca   :  { %1021 = vadd.xlane.f32.xlu1 %v1020_v14  ;;  %v1017_v15 = vsel %vm78_vm0, %v5675_v13, 0.0 }
 0x9cb   :  { %1018 = vadd.xlane.f32.xlu0 %v1017_v15 }
 0xa57   :  { %v1022_v16 = vpop.xlane.xlu1 %1021 }
 0xa58   :  { %5676 = vrcp.f32 %v1022_v16  ;;  %v1019_v17 = vpop.xlane.xlu0 %1018 }
 0xa59   :  { %5678 = vrcp.f32 %v1019_v17 }
 0xa62   :  { %v5677_v18 = vpop.eup %5676 }
 0xa63   :  { %v5679_v19 = vpop.eup %5678  ;;  %v1026_v20 = vmul.f32 %v5677_v18, %v5673_v12 }
 0xa64   :  { %v1024_v21 = vmul.f32 %v5679_v19, %v5675_v13  ;;  %v5527_v13 = vpack.c.bf16 %v1327_v4, %v1326_v3 }
 0xa66   :  { %5062 = vmatprep.mubr.msk.f32.mxu0 %vm78_vm0, %v1024_v21  ;;  %v1177_v23 = vpack.c.bf16 %v1026_v20, %v1024_v21 }
 0xa67   :  { %5063 = vmatmul.mubr.msk.f32.vlgmr.msra.gmra.mrb[12].mxu0 %vm78_vm0, %v1026_v20  ;;  %v4607_v20 = vld [vmem:[#allocation7 + $0x2] ss:$0 sm:$0xff] }
 0xa68   :  { %5066 = vmatpush3.bf16.msra.mxu0 %v5590_v22  ;;  %5069 = vmatprep.mubr.msk.bf16.mxu0 %vm5865_vm12, %v5864_v44 }
 0xa69   :  { %5067 = vmatprep.subr.bf16.mxu0 %v5864_v44 }
 0xa6c   :  { %5068 = vmatpush3.bf16.msra.mxu0 %v5591_v24 }
 0xa6d   :  { %5085 = vmatprep.subr.bf16.mxu0 %v5864_v44 }
 0xa6f   :  { %5070 = vmatmul.mubr.msk.bf16.vlgmr.msra.gmra.mrb[16].mxu0 %vm229_vm5, %v6027_v61 }
 0xa70   :  { %5086 = vmatpush3.bf16.msra.mxu0 %v5592_v27  ;;  %5087 = vmatprep.mubr.msk.bf16.mxu0 %vm5865_vm12, %v5864_v44 }
 0xa71   :  { %5532 = vmatprep.subr.bf16.mxu0 %v5531_v29 }
 0xa77   :  { %5088 = vmatmul.mubr.msk.bf16.vlgmr.msra.gmra.mrb[20].mxu0 %vm78_vm0, %v723_v31 }
 0xa78   :  { %5534 = vmatpush3.bf16.msra.mxu0 %v5531_v29  ;;  %5110 = vmatprep.mubr.msk.f32.mxu0 %vm229_vm5, %v5976_v55 }
 0xa79   :  { %5536 = vmatprep.subr.bf16.mxu0 %v5535_v35 }
 0xa7c   :  { %5538 = vmatpush3.bf16.msra.mxu0 %v5535_v35 }
 0xa7d   :  { %5546 = vmatprep.subr.bf16.mxu0 %v6012_v43 }
 0xa7f   :  { %5111 = vmatmul.mubr.msk.f32.vlgmr.msra.gmra.mrb[14].mxu0 %vm229_vm5, %v5978_v56 }
 0xa80   :  { %5548 = vmatpush3.bf16.msra.mxu0 %v6012_v43 }
 0xa81   :  { %5127 = vmatprep.subr.bf16.mxu0 %v5864_v44 }
 0xb3a   :  { %v5064_v36 = vpop.f32.mrb[12].mxu0 }
 0xb3b   :  { %2433 = vst.msk [vmem:[#allocation10 + $0x28] sm:$0xff] %vm396_vm6, %v5064_v36  ;;  %v1099_v28 = vpop.f32.mrb[13].mxu0 }
 0xb3c   :  { %2429 = vst.msk [vmem:[#allocation10 + $0x8] sm:$0xff] %vm396_vm6, %v1099_v28 }
 0xb42   :  { %v1168_v31 = vpop.f32.mrb[16].mxu0 }
 0xb43   :  { %v1169_v37 = vadd.f32 %v4598_v30, %v1168_v31  ;;  %v5071_v39 = vpop.f32.mrb[17].mxu0 }
 0xb44   :  { %v1171_v40 = vpop.f32.mrb[18].mxu0 }
 0xb45   :  { %v1172_v41 = vadd.f32 %v4598_v30, %v1171_v40  ;;  %v5072_v42 = vpop.f32.mrb[19].mxu0  ;;  %v1175_v45 = vmax.f32 %v1169_v37, 0.0 }
 0xb47   :  { %v1176_v46 = vmax.f32 %v1172_v41, 0.0 }
 0xb49   :  { %v1178_v47 = vpack.c.bf16 %v1176_v46, %v1175_v45 }
 0xb4a   :  { %v1317_v48 = vpop.f32.mrb[20].mxu0 }
 0xb4b   :  { %5074 = vmatpush3.bf16.msra.mxu1 %v1178_v47  ;;  %v5089_v49 = vpop.f32.mrb[21].mxu0 }
 0xb4c   :  { %v1320_v51 = vpop.f32.mrb[22].mxu0  ;;  %5079 = vmatprep.subr.bf16.mxu1 %v5864_v44 }
 0xb4d   :  { %v5090_v52 = vpop.f32.mrb[23].mxu0 }
 0xb4e   :  { %5076 = vmatmul.mubr.msk.bf16.vlgmr.msra.gmra.mrb[12].mxu1 %vm78_vm0, %v1177_v23 }
 0xb4f   :  { %5080 = vmatpush3.bf16.msra.mxu1 %v5593_v50  ;;  %5081 = vmatprep.mubr.msk.bf16.mxu1 %vm5865_vm12, %v5864_v44 }
 0xb50   :  { %5524 = vmatprep.subr.bf16.mxu1 %v5523_v0 }
 0xb52   :  { %v5112_v54 = vpop.f32.mrb[14].mxu0 }
 0xb53   :  { %v1497_v57 = vadd.f32 %v5112_v54, %v4610_v53  ;;  %v1491_v58 = vpop.f32.mrb[15].mxu0 }
 0xb54   :  { %v1492_v59 = vadd.f32 %v4610_v53, %v1491_v58 }
 0xb56   :  { %v5539_v60 = vpack.c.bf16 %v1497_v57, %v1492_v59 }
 0xc21   :  { %v1216_v1 = vpop.f32.mrb[12].mxu1 }
 0xc22   :  { %v5077_v6 = vpop.f32.mrb[13].mxu1 }
 0xc23   :  { %v1219_v7 = vpop.f32.mrb[14].mxu1  ;;  %v5594_v6 = vld [vmem:[#allocation8 + $0x100] sm:$0xff]  }
 0xc24   :  { %v1223_v11 = vpack.c.bf16 %v1219_v7, %v1216_v1  ;;  %v5078_v12 = vpop.f32.mrb[15].mxu1 }
 0xc25   :  { %v1877_v12 = vld [vmem:[#allocation5 + $0xa8] sm:$0xff] }
 0xc26   :  { %5082 = vmatmul.mubr.msk.bf16.vlgmr.msra.gmra.mrb[16].mxu1 %vm78_vm0, %v1223_v11  ;;  %v1876_v11 = vld [vmem:[#allocation5 + $0xa0] sm:$0xff] }
 0xc27   :  { %5526 = vmatpush3.bf16.msra.mxu1 %v5523_v0  ;;  %5099 = vmatprep.mubr.msk.f32.mxu1 %vm229_vm5, %v5976_v55 }
 0xc28   :  { %5528 = vmatprep.subr.bf16.mxu1 %v5527_v13 }
 0xc2b   :  { %5530 = vmatpush3.bf16.msra.mxu1 %v5527_v13  ;;  %v5595_v13 = vld [vmem:[#allocation8 + $0x108] sm:$0xff]  }
 0xc2c   :  { %5541 = vmatprep.subr.msk.bf16.mxu1 %vm5990_vm7, %v5539_v60 }
 0xc2e   :  { %5100 = vmatmul.mubr.msk.f32.vlgmr.msra.gmra.mrb[20].mxu1 %vm229_vm5, %v5978_v56 }
 0xc34   :  { %5544 = vmatpush3.bf16.xpose.msk.msra.mxu1 %vm5990_vm7, %v5539_v60 }
 0xc35   :  { %5135 = vmatprep.subr.bf16.mxu1 %v5864_v44 }
 0xcf9   :  { %v1267_v14 = vpop.f32.mrb[16].mxu1 }
 0xcfa   :  { %v6105_v15 = vadd.f32 %v1317_v48, %v1267_v14  ;;  %v5083_v16 = vpop.f32.mrb[17].mxu1  ;;  %v5549_v14 = vpack.c.bf16 %v1877_v12, %v1876_v11 }
 0xcfb   :  { %v1270_v17 = vpop.f32.mrb[18].mxu1  ;;  %v1878_v16 = vld [vmem:[#allocation5 + $0xb0] sm:$0xff] }
 0xcfc   :  { %v6107_v18 = vadd.f32 %v1320_v51, %v1270_v17  ;;  %v5084_v19 = vpop.f32.mrb[19].mxu1  ;;  %v1879_v17 = vld [vmem:[#allocation5 + $0xb8] sm:$0xff] }
 0xcfd   :  { %v5553_v19 = vpack.c.bf16 %v1879_v17, %v1878_v16  ;;  %v4638_v16 = vld [vmem:[#allocation7 + $0xb] ss:$0 sm:$0xff] }
 0xd01   :  { %v5101_v21 = vpop.f32.mrb[20].mxu1 }
 0xd02   :  { %v1412_v22 = vadd.f32 %v5101_v21, %v4607_v20  ;;  %v1406_v23 = vpop.f32.mrb[21].mxu1 }
 0xd03   :  { %v1407_v24 = vadd.f32 %v4607_v20, %v1406_v23 }
 0xd04   :  { %v1416_v26 = vmax.f32 %v1412_v22, 0.0  ;;  %v4619_v22 = vld [vmem:[#allocation7 + $0xa] ss:$0 sm:$0xff] }
 0xd05   :  { %v1415_v25 = vmax.f32 %v1407_v24, 0.0 }
 0xd07   :  { %5117 = vmatprep.mubr.msk.f32.mxu1 %vm396_vm6, %v1415_v25 }
 0xd08   :  { %5118 = vmatmul.mubr.msk.f32.vlgmr.msra.gmra.mrb[22].mxu1 %vm396_vm6, %v1416_v26 }
 0xd09   :  { %5137 = vmatprep.mubr.msk.bf16.mxu1 %vm5865_vm12, %v5864_v44 }
 0xddb   :  { %v5119_v27 = vpop.f32.mrb[22].mxu1 }
 0xddc   :  { %v1584_v29 = vadd.f32 %v5119_v27, %v6000_v9  ;;  %v1578_v32 = vpop.f32.mrb[23].mxu1 }
 0xddd   :  { %v1579_v33 = vadd.f32 %v1578_v32, %v6002_v10 }
 0xdde   :  { %v1590_v35 = vsel %vm78_vm0, %v1584_v29, -inf }
 0xddf   :  { %1591 = vmax.xlane.f32.xlu1 %v1590_v35  ;;  %v1587_v36 = vsel %vm78_vm0, %v1579_v33, -inf  ;;  %v4626_v35 = vld [vmem:[#allocation7 + $0x3] ss:$0 sm:$0xff] }
 0xde0   :  { %1588 = vmax.xlane.f32.xlu0 %v1587_v36 }
 0xe6c   :  { %v1592_v28 = vpop.xlane.xlu1 %1591 }
 0xe6d   :  { %vm1594_vm2 = vcmp.ge.f32.partialorder %v1584_v29, %v1592_v28  ;;  %v1589_v30 = vpop.xlane.xlu0 %1588  ;;  %v1610_v46 = vmul.f32 0.35355338, %v1592_v28 }
 0xe6e   :  { %vm1593_vm3 = vcmp.ge.f32.partialorder %v1579_v33, %v1589_v30  ;;  %v1596_v31 = vsel %vm1594_vm2, -1e+30, %v1584_v29  ;;  %v1609_v49 = vmul.f32 0.35355338, %v1589_v30 }
 0xe6f   :  { %v1600_v37 = vsel %vm78_vm0, %v1596_v31, -inf  ;;  %v1595_v39 = vsel %vm1593_vm3, -1e+30, %v1579_v33 }
 0xe70   :  { %1601 = vmax.xlane.f32.xlu1 %v1600_v37  ;;  %v1597_v40 = vsel %vm78_vm0, %v1595_v39, -inf  ;;  %v5596_v37 = vld [vmem:[#allocation8 + $0x130] sm:$0xff]  }
 0xe71   :  { %1598 = vmax.xlane.f32.xlu0 %v1597_v40 }
 0xefd   :  { %v1602_v41 = vpop.xlane.xlu1 %1601 }
 0xefe   :  { %vm1604_vm4 = vcmp.ge.f32.partialorder %v1584_v29, %v1602_v41  ;;  %v1599_v42 = vpop.xlane.xlu0 %1598  ;;  %v1880_v41 = vld [vmem:[#allocation5 + $0x120] sm:$0xff] }
 0xeff   :  { %v1606_v45 = vsel %vm1604_vm4, %v1584_v29, -1e+30  ;;  %vm1603_vm8 = vcmp.ge.f32.partialorder %v1579_v33, %v1599_v42  ;;  %v1881_v42 = vld [vmem:[#allocation5 + $0x128] sm:$0xff] }
 0xf00   :  { %v1608_v47 = vmul.f32 0.35355338, %v1606_v45  ;;  %v1605_v48 = vsel %vm1603_vm8, %v1579_v33, -1e+30  ;;  %v5557_v45 = vpack.c.bf16 %v1881_v42, %v1880_v41 }
 0xf01   :  { %v1607_v50 = vmul.f32 0.35355338, %v1605_v48  ;;  %v1883_v48 = vld [vmem:[#allocation5 + $0x138] sm:$0xff] }
 0xf02   :  { %v1612_v51 = vsub.f32 %v1608_v47, %v1610_v46  ;;  %v1882_v47 = vld [vmem:[#allocation5 + $0x130] sm:$0xff] }
 0xf03   :  { %v1611_v52 = vsub.f32 %v1607_v50, %v1609_v49 }
 0xf04   :  { %v1615_v53 = vmul.f32 1.442695, %v1612_v51 }
 0xf05   :  { %v1613_v54 = vmul.f32 1.442695, %v1611_v52 }
 0xf06   :  { %5680 = vpow2.f32 %v1615_v53  ;;  %v5561_v53 = vpack.c.bf16 %v1883_v48, %v1882_v47 }
 0xf07   :  { %5682 = vpow2.f32 %v1613_v54 }
 0xf10   :  { %v5681_v57 = vpop.eup %5680 }
 0xf11   :  { %v5683_v58 = vpop.eup %5682  ;;  %v1620_v59 = vsel %vm78_vm0, %v5681_v57, 0.0 }
 0xf12   :  { %1621 = vadd.xlane.f32.xlu1 %v1620_v59  ;;  %v1617_v60 = vsel %vm78_vm0, %v5683_v58, 0.0 }
 0xf13   :  { %1618 = vadd.xlane.f32.xlu0 %v1617_v60 }
 0xf9f   :  { %v1622_v62 = vpop.xlane.xlu1 %1621 }
 0xfa0   :  { %5684 = vrcp.f32 %v1622_v62  ;;  %v1619_v63 = vpop.xlane.xlu0 %1618 }
 0xfa1   :  { %5686 = vrcp.f32 %v1619_v63  ;;  %v4629_v63 = vld [vmem:[#allocation7 + $0x7] ss:$0 sm:$0xff] }
 0xfaa   :  { %v5685_v0 = vpop.eup %5684 }
 0xfab   :  { %v5687_v1 = vpop.eup %5686  ;;  %v1626_v3 = vmul.f32 %v5685_v0, %v5681_v57 }
 0xfac   :  { %v1624_v4 = vmul.f32 %v5687_v1, %v5683_v58 }
 0xfae   :  { %5124 = vmatprep.mubr.msk.f32.mxu0 %vm78_vm0, %v1624_v4  ;;  %v1777_v7 = vpack.c.bf16 %v1626_v3, %v1624_v4 }
 0xfaf   :  { %5125 = vmatmul.mubr.msk.f32.vlgmr.msra.gmra.mrb[24].mxu0 %vm78_vm0, %v1626_v3 }
 0xfb0   :  { %5128 = vmatpush3.bf16.msra.mxu0 %v5594_v6  ;;  %5131 = vmatprep.mubr.msk.bf16.mxu0 %vm5865_vm12, %v5864_v44 }
 0xfb1   :  { %5129 = vmatprep.subr.bf16.mxu0 %v5864_v44 }
 0xfb4   :  { %5130 = vmatpush3.bf16.msra.mxu0 %v5595_v13 }
 0xfb5   :  { %5550 = vmatprep.subr.bf16.mxu0 %v5549_v14 }
 0xfb7   :  { %5132 = vmatmul.mubr.msk.bf16.vlgmr.msra.gmra.mrb[28].mxu0 %vm229_vm5, %v6027_v61 }
 0xfb8   :  { %5552 = vmatpush3.bf16.msra.mxu0 %v5549_v14  ;;  %5155 = vmatprep.mubr.msk.f32.mxu0 %vm229_vm5, %v5976_v55 }
 0xfb9   :  { %5554 = vmatprep.subr.bf16.mxu0 %v5553_v19 }
 0xfbc   :  { %5556 = vmatpush3.bf16.msra.mxu0 %v5553_v19 }
 0xfbf   :  { %5156 = vmatmul.mubr.msk.f32.vlgmr.msra.gmra.mrb[26].mxu0 %vm229_vm5, %v5978_v56 }
0x1082   :  { %v5126_v20 = vpop.f32.mrb[24].mxu0 }
0x1083   :  { %2434 = vst.msk [vmem:[#allocation10 + $0x30] sm:$0xff] %vm396_vm6, %v5126_v20  ;;  %v1699_v21 = vpop.f32.mrb[25].mxu0 }
0x1084   :  { %2430 = vst.msk [vmem:[#allocation10 + $0x10] sm:$0xff] %vm396_vm6, %v1699_v21 }
0x108a   :  { %v1768_v23 = vpop.f32.mrb[28].mxu0 }
0x108b   :  { %v1769_v24 = vadd.f32 %v4619_v22, %v1768_v23  ;;  %v5133_v25 = vpop.f32.mrb[29].mxu0 }
0x108c   :  { %v1771_v26 = vpop.f32.mrb[30].mxu0 }
0x108d   :  { %v1772_v27 = vadd.f32 %v4619_v22, %v1771_v26  ;;  %v5134_v29 = vpop.f32.mrb[31].mxu0  ;;  %v1775_v32 = vmax.f32 %v1769_v24, 0.0 }
0x108f   :  { %v1776_v33 = vmax.f32 %v1772_v27, 0.0 }
0x1091   :  { %v1778_v36 = vpack.c.bf16 %v1776_v33, %v1775_v32 }
0x1092   :  { %v5157_v28 = vpop.f32.mrb[26].mxu0 }
0x1093   :  { %v1964_v30 = vadd.f32 %v5157_v28, %v4626_v35  ;;  %5136 = vmatpush3.bf16.msra.mxu1 %v1778_v36  ;;  %v1958_v31 = vpop.f32.mrb[27].mxu0 }
0x1094   :  { %v1959_v39 = vadd.f32 %v4626_v35, %v1958_v31  ;;  %5141 = vmatprep.subr.bf16.mxu1 %v5864_v44 }
0x1096   :  { %v1967_v40 = vmax.f32 %v1959_v39, 0.0  ;;  %5138 = vmatmul.mubr.msk.bf16.vlgmr.msra.gmra.mrb[24].mxu1 %vm78_vm0, %v1777_v7 }
0x1097   :  { %5142 = vmatpush3.bf16.msra.mxu1 %v5596_v37  ;;  %5143 = vmatprep.mubr.msk.bf16.mxu1 %vm5865_vm12, %v5864_v44 }
0x1098   :  { %5173 = vmatprep.mubr.msk.f32.mxu0 %vm396_vm6, %v1967_v40  ;;  %5558 = vmatprep.subr.bf16.mxu1 %v5557_v45 }
0x1169   :  { %v1816_v46 = vpop.f32.mrb[24].mxu1 }
0x116a   :  { %v5139_v49 = vpop.f32.mrb[25].mxu1 }
0x116b   :  { %v1819_v50 = vpop.f32.mrb[26].mxu1 }
0x116c   :  { %v1823_v51 = vpack.c.bf16 %v1819_v50, %v1816_v46  ;;  %v5140_v52 = vpop.f32.mrb[27].mxu1 }
0x116e   :  { %5144 = vmatmul.mubr.msk.bf16.vlgmr.msra.gmra.mrb[28].mxu1 %vm78_vm0, %v1823_v51 }
0x116f   :  { %5560 = vmatpush3.bf16.msra.mxu1 %v5557_v45  ;;  %5166 = vmatprep.mubr.msk.f32.mxu1 %vm229_vm5, %v5976_v55 }
0x1170   :  { %5562 = vmatprep.subr.bf16.mxu1 %v5561_v53 }
0x1173   :  { %5564 = vmatpush3.bf16.msra.mxu1 %v5561_v53 }
0x1174   :  { %5572 = vmatprep.subr.bf16.mxu1 %v6012_v43 }
0x1176   :  { %5167 = vmatmul.mubr.msk.f32.vlgmr.msra.gmra.mrb[32].mxu1 %vm229_vm5, %v5978_v56 }
0x1177   :  { %5574 = vmatpush3.bf16.msra.mxu1 %v6012_v43  ;;  %v5597_v43 = vld [vmem:[#allocation8 + $0x110] sm:$0xff]  }
0x1178   :  { %5191 = vmatprep.subr.bf16.mxu1 %v5864_v44 }
0x1241   :  { %v1867_v54 = vpop.f32.mrb[28].mxu1 }
0x1242   :  { %v6148_v57 = vadd.f32 %v1867_v54, %v6105_v15  ;;  %v5145_v58 = vpop.f32.mrb[29].mxu1  ;;  %v1968_v15 = vmax.f32 %v1964_v30, 0.0 }
0x1243   :  { %v1870_v59 = vpop.f32.mrb[30].mxu1 }
0x1244   :  { %v6151_v60 = vadd.f32 %v1870_v59, %v6107_v18  ;;  %v5146_v62 = vpop.f32.mrb[31].mxu1  ;;  %v5598_v18 = vld [vmem:[#allocation8 + $0x118] sm:$0xff]  }
0x1245   :  { %v5599_v62 = vld [vmem:[#allocation8 + $0x138] sm:$0xff]  }
0x1249   :  { %v5168_v0 = vpop.f32.mrb[32].mxu1 }
0x124a   :  { %v2049_v1 = vadd.f32 %v5168_v0, %v4629_v63  ;;  %v2043_v3 = vpop.f32.mrb[33].mxu1 }
0x124b   :  { %v2044_v4 = vadd.f32 %v4629_v63, %v2043_v3 }
0x124d   :  { %v5565_v6 = vpack.c.bf16 %v2049_v1, %v2044_v4 }
0x124f   :  { %5567 = vmatprep.subr.msk.bf16.mxu0 %vm5990_vm7, %v5565_v6 }
0x1250   :  { %5570 = vmatpush3.bf16.xpose.msk.msra.mxu0 %vm5990_vm7, %v5565_v6 }
0x1251   :  { %5183 = vmatprep.subr.bf16.mxu0 %v5864_v44 }
0x1257   :  { %5174 = vmatmul.mubr.msk.f32.vlgmr.msra.gmra.mrb[32].mxu0 %vm396_vm6, %v1968_v15  ;;  %v5600_v15 = vld [vmem:[#allocation8] sm:$0xff]  }
0x1258   :  { %5184 = vmatpush3.bf16.msra.mxu0 %v5597_v43  ;;  %5187 = vmatprep.mubr.msk.bf16.mxu0 %vm5865_vm12, %v5864_v44 }
0x1259   :  { %5185 = vmatprep.subr.bf16.mxu0 %v5864_v44 }
0x125c   :  { %5186 = vmatpush3.bf16.msra.mxu0 %v5598_v18  ;;  %v5601_v18 = vld [vmem:[#allocation8 + $0x8] sm:$0xff]  }
0x125d   :  { %5203 = vmatprep.subr.bf16.mxu0 %v5864_v44 }
0x125f   :  { %5188 = vmatmul.mubr.msk.bf16.vlgmr.msra.gmra.mrb[36].mxu0 %vm229_vm5, %v6027_v61 }
0x1260   :  { %5207 = vmatprep.mubr.msk.bf16.mxu0 %vm5865_vm12, %v5864_v44  ;;  %5204 = vmatpush3.bf16.msra.mxu0 %v5600_v15  ;;  %v5611_v15 = vld [vmem:[#allocation8 + $0x180] sm:$0xff]  }
0x1261   :  { %5205 = vmatprep.subr.bf16.mxu0 %v5864_v44 }
0x1264   :  { %5206 = vmatpush3.bf16.msra.mxu0 %v5601_v18  ;;  %v5614_v18 = vld [vmem:[#allocation8 + $0x150] sm:$0xff]  }
0x1265   :  { %5219 = vmatprep.subr.bf16.mxu0 %v5864_v44 }
0x132a   :  { %v5175_v2 = vpop.f32.mrb[32].mxu0 }
0x132b   :  { %v2136_v7 = vadd.f32 %v5175_v2, %v6000_v9  ;;  %v2130_v11 = vpop.f32.mrb[33].mxu0 }
0x132c   :  { %v2131_v12 = vadd.f32 %v2130_v11, %v6002_v10 }
0x132d   :  { %v2142_v13 = vsel %vm78_vm0, %v2136_v7, -inf }
0x132e   :  { %2143 = vmax.xlane.f32.xlu1 %v2142_v13  ;;  %v2139_v14 = vsel %vm78_vm0, %v2131_v12, -inf }
0x132f   :  { %2140 = vmax.xlane.f32.xlu0 %v2139_v14 }
0x1332   :  { %v2320_v17 = vpop.f32.mrb[36].mxu0 }
0x1333   :  { %v2321_v19 = vadd.f32 %v4638_v16, %v2320_v17  ;;  %v5189_v20 = vpop.f32.mrb[37].mxu0 }
0x1334   :  { %v2323_v61 = vpop.f32.mrb[38].mxu0 }
0x1335   :  { %v2324_v21 = vadd.f32 %v4638_v16, %v2323_v61  ;;  %v5190_v22 = vpop.f32.mrb[39].mxu0  ;;  %v2327_v23 = vmax.f32 %v2321_v19, 0.0 }
0x1337   :  { %v2328_v24 = vmax.f32 %v2324_v21, 0.0 }
0x1339   :  { %v2330_v25 = vpack.c.bf16 %v2328_v24, %v2327_v23 }
0x13bb   :  { %v2144_v9 = vpop.xlane.xlu1 %2143 }
0x13bc   :  { %vm2146_vm7 = vcmp.ge.f32.partialorder %v2136_v7, %v2144_v9  ;;  %v2141_v26 = vpop.xlane.xlu0 %2140  ;;  %v2162_v28 = vmul.f32 0.35355338, %v2144_v9  ;;  %v4646_v9 = vld [vmem:[#allocation7 + $0xd] ss:$0 sm:$0xff] }
0x13bd   :  { %vm2145_vm9 = vcmp.ge.f32.partialorder %v2131_v12, %v2141_v26  ;;  %v2148_v10 = vsel %vm2146_vm7, -1e+30, %v2136_v7  ;;  %v2161_v37 = vmul.f32 0.35355338, %v2141_v26 }
0x13be   :  { %v2152_v27 = vsel %vm78_vm0, %v2148_v10, -inf  ;;  %v2147_v29 = vsel %vm2145_vm9, -1e+30, %v2131_v12 }
0x13bf   :  { %2153 = vmax.xlane.f32.xlu1 %v2152_v27  ;;  %v2149_v32 = vsel %vm78_vm0, %v2147_v29, -inf }
0x13c0   :  { %2150 = vmax.xlane.f32.xlu0 %v2149_v32 }
0x144c   :  { %v2154_v33 = vpop.xlane.xlu1 %2153 }
0x144d   :  { %vm2156_vm10 = vcmp.ge.f32.partialorder %v2136_v7, %v2154_v33  ;;  %v2151_v35 = vpop.xlane.xlu0 %2150 }
0x144e   :  { %v2158_v36 = vsel %vm2156_vm10, %v2136_v7, -1e+30  ;;  %vm2155_vm11 = vcmp.ge.f32.partialorder %v2131_v12, %v2151_v35  ;;  %v5606_v35 = vld [vmem:[#allocation8 + $0x30] sm:$0xff]  }
0x144f   :  { %v2160_v30 = vmul.f32 0.35355338, %v2158_v36  ;;  %v2157_v31 = vsel %vm2155_vm11, %v2131_v12, -1e+30  ;;  %v4645_v12 = vld [vmem:[#allocation7 + $0xc] ss:$0 sm:$0xff] }
0x1450   :  { %v2159_v39 = vmul.f32 0.35355338, %v2157_v31  ;;  %v5609_v31 = vld [vmem:[#allocation8 + $0x170] sm:$0xff]  }
0x1451   :  { %v2164_v40 = vsub.f32 %v2160_v30, %v2162_v28  ;;  %v5607_v28 = vld [vmem:[#allocation8 + $0x38] sm:$0xff]   ;;  %v5608_v30 = vld [vmem:[#allocation8 + $0x168] sm:$0xff]  }
0x1452   :  { %v2163_v41 = vsub.f32 %v2159_v39, %v2161_v37  ;;  %v5610_v37 = vld [vmem:[#allocation8 + $0x178] sm:$0xff]   ;;  %v5612_v39 = vld [vmem:[#allocation8 + $0x140] sm:$0xff]  }
0x1453   :  { %v2167_v42 = vmul.f32 1.442695, %v2164_v40  ;;  %v5613_v40 = vld [vmem:[#allocation8 + $0x148] sm:$0xff]  }
0x1454   :  { %v2165_v45 = vmul.f32 1.442695, %v2163_v41 }
0x1455   :  { %5688 = vpow2.f32 %v2167_v42  ;;  %v4654_v42 = vld [vmem:[#allocation7 + $0xf] ss:$0 sm:$0xff] }
0x1456   :  { %5690 = vpow2.f32 %v2165_v45 }
0x145f   :  { %v5689_v46 = vpop.eup %5688 }
0x1460   :  { %v5691_v47 = vpop.eup %5690  ;;  %v2172_v48 = vsel %vm78_vm0, %v5689_v46, 0.0 }
0x1461   :  { %2173 = vadd.xlane.f32.xlu1 %v2172_v48  ;;  %v2169_v49 = vsel %vm78_vm0, %v5691_v47, 0.0 }
0x1462   :  { %2170 = vadd.xlane.f32.xlu0 %v2169_v49 }
0x14ee   :  { %v2174_v50 = vpop.xlane.xlu1 %2173 }
0x14ef   :  { %5692 = vrcp.f32 %v2174_v50  ;;  %v2171_v51 = vpop.xlane.xlu0 %2170 }
0x14f0   :  { %5694 = vrcp.f32 %v2171_v51 }
0x14f9   :  { %v5693_v52 = vpop.eup %5692 }
0x14fa   :  { %v5695_v53 = vpop.eup %5694  ;;  %v2178_v58 = vmul.f32 %v5693_v52, %v5689_v46 }
0x14fb   :  { %v2176_v54 = vmul.f32 %v5695_v53, %v5691_v47 }
0x14fd   :  { %5180 = vmatprep.mubr.msk.f32.mxu1 %vm78_vm0, %v2176_v54  ;;  %v2329_v59 = vpack.c.bf16 %v2178_v58, %v2176_v54 }
0x14fe   :  { %5181 = vmatmul.mubr.msk.f32.vlgmr.msra.gmra.mrb[34].mxu1 %vm78_vm0, %v2178_v58  ;;  %v4658_v58 = vld [vmem:[#allocation7 + $0x10] ss:$0 sm:$0xff] }
0x14ff   :  { %5192 = vmatpush3.bf16.msra.mxu1 %v2330_v25  ;;  %5193 = vmatprep.mubr.msk.bf16.mxu1 %vm5865_vm12, %v5864_v44 }
0x1500   :  { %5197 = vmatprep.subr.bf16.mxu1 %v5864_v44 }
0x1502   :  { %5194 = vmatmul.mubr.msk.bf16.vlgmr.msra.gmra.mrb[36].mxu1 %vm78_vm0, %v2329_v59 }
0x1503   :  { %5199 = vmatprep.mubr.msk.bf16.mxu1 %vm5865_vm12, %v5864_v44  ;;  %5198 = vmatpush3.bf16.msra.mxu1 %v5599_v62 }
0x1504   :  { %5211 = vmatprep.subr.bf16.mxu1 %v5864_v44 }
0x15d1   :  { %v5182_v63 = vpop.f32.mrb[34].mxu1 }
0x15d2   :  { %2435 = vst.msk [vmem:[#allocation10 + $0x38] sm:$0xff] %vm396_vm6, %v5182_v63  ;;  %v2251_v0 = vpop.f32.mrb[35].mxu1 }
0x15d3   :  { %2431 = vst.msk [vmem:[#allocation10 + $0x18] sm:$0xff] %vm396_vm6, %v2251_v0 }
0x15d5   :  { %v2368_v1 = vpop.f32.mrb[36].mxu1 }
0x15d6   :  { %v5195_v3 = vpop.f32.mrb[37].mxu1 }
0x15d7   :  { %v2371_v4 = vpop.f32.mrb[38].mxu1 }
0x15d8   :  { %v2375_v6 = vpack.c.bf16 %v2371_v4, %v2368_v1  ;;  %v5196_v43 = vpop.f32.mrb[39].mxu1 }
0x15da   :  { %5200 = vmatmul.mubr.msk.bf16.vlgmr.msra.gmra.mrb[40].mxu1 %vm78_vm0, %v2375_v6 }
0x15db   :  { %5215 = vmatprep.mubr.msk.bf16.mxu1 %vm5865_vm12, %v5864_v44 }
0x16ad   :  { %v2419_v2 = vpop.f32.mrb[40].mxu1 }
0x16ae   :  { %v2426_v7 = vadd.f32 %v2419_v2, %v6148_v57  ;;  %v5201_v11 = vpop.f32.mrb[41].mxu1  ;;  %v5603_v57 = vld [vmem:[#allocation8 + $0x20] sm:$0xff]   ;;  %v5615_v2 = vld [vmem:[#allocation8 + $0x158] sm:$0xff]  }
0x16af   :  { %v2422_v13 = vpop.f32.mrb[42].mxu1 }
0x16b0   :  { %v2436_v14 = vadd.f32 %v2426_v7, %v5976_v55  ;;  %v2427_v16 = vadd.f32 %v2422_v13, %v6151_v60  ;;  %v5202_v17 = vpop.f32.mrb[43].mxu1  ;;  %v5602_v55 = vld [vmem:[#allocation8 + $0x10] sm:$0xff]   ;;  %v5605_v60 = vld [vmem:[#allocation8 + $0x28] sm:$0xff]  }
0x16b1   :  { %5212 = vmatpush3.bf16.msra.mxu1 %v5602_v55  ;;  %v4650_v7 = vld [vmem:[#allocation7 + $0xe] ss:$0 sm:$0xff] }
0x16b2   :  { %v2446_v19 = vadd.f32 %v4645_v12, %v2436_v14  ;;  %v2437_v20 = vadd.f32 %v2427_v16, %v5978_v56  ;;  %5213 = vmatprep.subr.bf16.mxu1 %v5864_v44  ;;  %v5604_v56 = vld [vmem:[#allocation8 + $0x18] sm:$0xff]  }
0x16b4   :  { %v2450_v61 = vmul.f32 0.5, %v2446_v19  ;;  %v2447_v21 = vadd.f32 %v4645_v12, %v2437_v20  ;;  %vm2448_vm13 = vcmp.gt.f32.partialorder %v2446_v19, 0.0 }
0x16b5   :  { %5214 = vmatpush3.bf16.msra.mxu1 %v5604_v56 }
0x16b6   :  { %vm2449_vm14 = vcmp.gt.f32.partialorder %v2447_v21, 0.0  ;;  %v2451_v22 = vmul.f32 0.5, %v2447_v21  ;;  %v2452_v23 = vsel %vm2448_vm13, %v2446_v19, %v2450_v61  ;;  %5227 = vmatprep.subr.bf16.mxu1 %v5864_v44 }
0x16b8   :  { %v2453_v24 = vsel %vm2449_vm14, %v2447_v21, %v2451_v22 }
0x16b9   :  { %v2454_v25 = vpack.c.bf16 %v2453_v24, %v2452_v23 }
0x16bb   :  { %5208 = vmatmul.mubr.msk.bf16.vlgmr.msra.gmra.mrb[40].mxu0 %vm229_vm5, %v2454_v25 }
0x16bc   :  { %5223 = vmatprep.mubr.msk.bf16.mxu0 %vm5865_vm12, %v5864_v44  ;;  %5220 = vmatpush3.bf16.msra.mxu0 %v5603_v57 }
0x16bd   :  { %5221 = vmatprep.subr.bf16.mxu0 %v5864_v44 }
0x16c0   :  { %5222 = vmatpush3.bf16.msra.mxu0 %v5605_v60 }
0x16c1   :  { %5235 = vmatprep.subr.bf16.mxu0 %v5608_v30 }
0x178e   :  { %v2516_v26 = vpop.f32.mrb[40].mxu0 }
0x178f   :  { %v5209_v10 = vpop.f32.mrb[41].mxu0  ;;  %v2517_v29 = vadd.f32 %v4646_v9, %v2516_v26 }
0x1790   :  { %v2519_v27 = vpop.f32.mrb[42].mxu0 }
0x1791   :  { %v2520_v32 = vadd.f32 %v4646_v9, %v2519_v27  ;;  %v5210_v33 = vpop.f32.mrb[43].mxu0  ;;  %v5616_v9 = vld [vmem:[#allocation8 + $0x160] sm:$0xff]  }
0x1793   :  { %v2569_v36 = vpack.c.bf16 %v2520_v32, %v2517_v29 }
0x1795   :  { %5216 = vmatmul.mubr.msk.bf16.vlgmr.msra.gmra.mrb[44].mxu1 %vm229_vm5, %v2569_v36  ;;  %5224 = vmatmul.mubr.msk.bf16.vlgmr.msra.gmra.mrb[44].mxu0 %vm229_vm5, %v2569_v36 }
0x1796   :  { %5228 = vmatpush3.bf16.msra.mxu1 %v5606_v35  ;;  %5231 = vmatprep.mubr.msk.bf16.mxu1 %vm5865_vm12, %v5864_v44 }
0x1797   :  { %5229 = vmatprep.subr.bf16.mxu1 %v5864_v44  ;;  %5236 = vmatpush3.bf16.msra.mxu0 %v5608_v30 }
0x1798   :  { %5237 = vmatprep.subr.bf16.mxu0 %v5609_v31 }
0x179a   :  { %5230 = vmatpush3.bf16.msra.mxu1 %v5607_v28 }
0x179b   :  { %5243 = vmatprep.subr.bf16.mxu1 %v5864_v44  ;;  %5238 = vmatpush3.bf16.msra.mxu0 %v5609_v31 }
0x179c   :  { %5255 = vmatprep.subr.bf16.mxu0 %v5610_v37 }
0x179d   :  { %5232 = vmatmul.mubr.msk.bf16.vlgmr.msra.gmra.mrb[48].mxu1 %vm229_vm5, %v2569_v36 }
0x179e   :  { %5251 = vmatprep.mubr.msk.bf16.mxu1 %vm5865_vm12, %v5864_v44  ;;  %5244 = vmatpush3.bf16.msra.mxu1 %v5612_v39 }
0x179f   :  { %5245 = vmatprep.subr.bf16.mxu1 %v5864_v44 }
0x17a2   :  { %5246 = vmatpush3.bf16.msra.mxu1 %v5613_v40 }
0x17a3   :  { %5247 = vmatprep.subr.bf16.mxu1 %v5864_v44 }
0x17a6   :  { %5248 = vmatpush3.bf16.msra.mxu1 %v5614_v18 }
0x17a7   :  { %5249 = vmatprep.subr.bf16.mxu1 %v5864_v44 }
0x17aa   :  { %5250 = vmatpush3.bf16.msra.mxu1 %v5615_v2 }
0x17ab   :  { %5275 = vmatprep.subr.bf16.mxu1 %v5864_v44 }
0x1868   :  { %v2625_v41 = vpop.f32.mrb[44].mxu1  ;;  %v2686_v45 = vpop.f32.mrb[44].mxu0 }
0x1869   :  { %v5217_v46 = vpop.f32.mrb[45].mxu1  ;;  %v5225_v47 = vpop.f32.mrb[45].mxu0  ;;  %v2687_v50 = vadd.f32 %v4654_v42, %v2686_v45  ;;  %v2626_v11 = vadd.f32 %v4650_v7, %v2625_v41 }
0x186a   :  { %v2628_v48 = vpop.f32.mrb[46].mxu1  ;;  %v2689_v49 = vpop.f32.mrb[46].mxu0 }
0x186b   :  { %v2690_v51 = vadd.f32 %v4654_v42, %v2689_v49  ;;  %v5218_v52 = vpop.f32.mrb[47].mxu1  ;;  %v5226_v53 = vpop.f32.mrb[47].mxu0  ;;  %v2629_v12 = vadd.f32 %v4650_v7, %v2628_v48  ;;  %v6227_v16 = vmax.f32 %v2626_v11, 0.0 }
0x186d   :  { %v2754_v54 = vpack.c.bf16 %v2690_v51, %v2687_v50  ;;  %v6229_v17 = vmax.f32 %v2629_v12, 0.0 }
0x186f   :  { %5239 = vmatprep.mubr.msk.bf16.mxu0 %vm229_vm5, %v2754_v54 }
0x1870   :  { %v2745_v59 = vpop.f32.mrb[48].mxu1 }
0x1871   :  { %v2746_v62 = vadd.f32 %v4658_v58, %v2745_v59  ;;  %v5233_v63 = vpop.f32.mrb[49].mxu1 }
0x1872   :  { %v2748_v0 = vpop.f32.mrb[50].mxu1 }
0x1873   :  { %v2749_v1 = vadd.f32 %v4658_v58, %v2748_v0  ;;  %v5234_v3 = vpop.f32.mrb[51].mxu1  ;;  %v2752_v4 = vmax.f32 %v2746_v62, 0.0 }
0x1875   :  { %v2753_v6 = vmax.f32 %v2749_v1, 0.0 }
0x1877   :  { %v2755_v43 = vpack.c.bf16 %v2753_v6, %v2752_v4  ;;  %v5617_v4 = vld [vmem:[#allocation8 + $0x40] sm:$0xff]   ;;  %v5618_v6 = vld [vmem:[#allocation8 + $0x48] sm:$0xff]  }
0x1879   :  { %5240 = vmatmul.mubr.msk.bf16.vlgmr.msra.gmra.mrb[48].mxu0 %vm229_vm5, %v2755_v43 }
0x187a   :  { %5256 = vmatpush3.bf16.msra.mxu0 %v5610_v37  ;;  %5259 = vmatprep.mubr.msk.bf16.mxu0 %vm229_vm5, %v2754_v54 }
0x187b   :  { %5257 = vmatprep.subr.bf16.mxu0 %v5611_v15 }
0x187e   :  { %5258 = vmatpush3.bf16.msra.mxu0 %v5611_v15  ;;  %v5620_v15 = vld [vmem:[#allocation8 + $0x58] sm:$0xff]  }
0x187f   :  { %5263 = vmatprep.subr.bf16.mxu0 %v5864_v44 }
0x1881   :  { %5260 = vmatmul.mubr.msk.bf16.vlgmr.msra.gmra.mrb[52].mxu0 %vm229_vm5, %v2755_v43  ;;  %v5619_v43 = vld [vmem:[#allocation8 + $0x50] sm:$0xff]  }
0x1882   :  { %5264 = vmatpush3.bf16.msra.mxu0 %v5612_v39  ;;  %5271 = vmatprep.mubr.msk.bf16.mxu0 %vm5865_vm12, %v5864_v44 }
0x1883   :  { %5265 = vmatprep.subr.bf16.mxu0 %v5864_v44 }
0x1886   :  { %5266 = vmatpush3.bf16.msra.mxu0 %v5613_v40 }
0x1887   :  { %5267 = vmatprep.subr.bf16.mxu0 %v5864_v44 }
0x188a   :  { %5268 = vmatpush3.bf16.msra.mxu0 %v5614_v18 }
0x188b   :  { %5269 = vmatprep.subr.bf16.mxu0 %v5864_v44 }
0x188e   :  { %5270 = vmatpush3.bf16.msra.mxu0 %v5615_v2 }
0x188f   :  { %5287 = vmatprep.subr.bf16.mxu0 %v5864_v44 }
0x194c   :  { %v6225_v13 = vpop.f32.mrb[48].mxu0 }
0x194d   :  { %v2808_v14 = vpop.f32.mrb[49].mxu0 }
0x194e   :  { %v6231_v19 = vpop.f32.mrb[50].mxu0  ;;  %v2823_v61 = vmul.f32 %v2808_v14, %v6227_v16 }
0x194f   :  { %v2811_v20 = vpop.f32.mrb[51].mxu0 }
0x1950   :  { %v2824_v21 = vmul.f32 %v2811_v20, %v6229_v17 }
0x1952   :  { %v2825_v22 = vpack.c.bf16 %v2824_v21, %v2823_v61 }
0x1954   :  { %5252 = vmatmul.mubr.msk.bf16.vlgmr.msra.gmra.mrb[52].mxu1 %vm2850_vm15, %v2825_v22  ;;  %v6236_v23 = vpop.f32.mrb[52].mxu0 }
0x1955   :  { %v2943_v24 = vpop.f32.mrb[53].mxu0  ;;  %5277 = vmatprep.mubr.msk.bf16.mxu1 %vm5865_vm12, %v5864_v44  ;;  %5276 = vmatpush3.bf16.msra.mxu1 %v5616_v9 }
0x1956   :  { %v6240_v25 = vpop.f32.mrb[54].mxu0  ;;  %v2958_v57 = vmul.f32 %v2943_v24, %v6227_v16  ;;  %5281 = vmatprep.subr.bf16.mxu1 %v5864_v44 }
0x1957   :  { %v2946_v55 = vpop.f32.mrb[55].mxu0 }
0x1958   :  { %v2959_v56 = vmul.f32 %v2946_v55, %v6229_v17 }
0x195a   :  { %v2960_v60 = vpack.c.bf16 %v2959_v56, %v2958_v57 }
0x195c   :  { %5272 = vmatmul.mubr.msk.bf16.vlgmr.msra.gmra.mrb[56].mxu0 %vm2850_vm15, %v2960_v60 }
0x195d   :  { %5289 = vmatprep.mubr.msk.bf16.mxu0 %vm5865_vm12, %v5864_v44  ;;  %5288 = vmatpush3.bf16.msra.mxu0 %v5616_v9 }
0x195e   :  { %5305 = vmatprep.subr.bf16.mxu0 %v5864_v44 }
0x1a27   :  { %v2888_v26 = vpop.f32.mrb[52].mxu1 }
0x1a28   :  { %v5253_v10 = vpop.f32.mrb[53].mxu1  ;;  %v2895_v33 = vmul.f32 0.25, %v2888_v26 }
0x1a29   :  { %v2891_v27 = vpop.f32.mrb[54].mxu1 }
0x1a2a   :  { %v5254_v29 = vpop.f32.mrb[55].mxu1  ;;  %v2896_v30 = vmul.f32 0.25, %v2891_v27 }
0x1a2f   :  { %v2998_v32 = vpop.f32.mrb[56].mxu0 }
0x1a30   :  { %v3005_v35 = vmul.f32 0.25, %v2998_v32  ;;  %v5273_v36 = vpop.f32.mrb[57].mxu0 }
0x1a31   :  { %v3001_v28 = vpop.f32.mrb[58].mxu0 }
0x1a32   :  { %v3007_v31 = vmax.f32 %v2895_v33, %v3005_v35  ;;  %v3006_v37 = vmul.f32 0.25, %v3001_v28  ;;  %v5274_v39 = vpop.f32.mrb[59].mxu0 }
0x1a34   :  { %v3009_v40 = vsub.f32 %v2895_v33, %v3007_v31  ;;  %v3015_v41 = vsub.f32 %v3005_v35, %v3007_v31  ;;  %v3008_v42 = vmax.f32 %v2896_v30, %v3006_v37 }
0x1a36   :  { %v3011_v45 = vmul.f32 1.442695, %v3009_v40  ;;  %v3017_v46 = vmul.f32 1.442695, %v3015_v41  ;;  %v3010_v47 = vsub.f32 %v2896_v30, %v3008_v42  ;;  %v3016_v48 = vsub.f32 %v3006_v37, %v3008_v42 }
0x1a38   :  { %5696 = vpow2.f32 %v3011_v45  ;;  %v3013_v49 = vmul.f32 1.442695, %v3010_v47  ;;  %v3019_v50 = vmul.f32 1.442695, %v3016_v48 }
0x1a39   :  { %5698 = vpow2.f32 %v3017_v46 }
0x1a3a   :  { %5700 = vpow2.f32 %v3013_v49 }
0x1a3b   :  { %5702 = vpow2.f32 %v3019_v50 }
0x1a42   :  { %v5697_v51 = vpop.eup %5696 }
0x1a43   :  { %v5699_v52 = vpop.eup %5698 }
0x1a44   :  { %v5701_v53 = vpop.eup %5700  ;;  %v3021_v54 = vadd.f32 %v5699_v52, %v5697_v51 }
0x1a45   :  { %v5703_v58 = vpop.eup %5702  ;;  %v3025_v59 = vpack.c.bf16 %v5701_v53, %v5697_v51 }
0x1a46   :  { %v3022_v62 = vadd.f32 %v5703_v58, %v5701_v53  ;;  %v3080_v63 = vpack.c.bf16 %v5703_v58, %v5699_v52  ;;  %5704 = vrcp.f32 %v3021_v54 }
0x1a47   :  { %5278 = vmatmul.mubr.msk.bf16.vlgmr.msra.gmra.mrb[56].mxu1 %vm78_vm0, %v3025_v59 }
0x1a48   :  { %5706 = vrcp.f32 %v3022_v62  ;;  %5282 = vmatpush3.bf16.msra.mxu1 %v5616_v9  ;;  %5283 = vmatprep.mubr.msk.bf16.mxu1 %vm5865_vm12, %v5864_v44  ;;  %v5621_v62 = vld [vmem:[#allocation8 + $0x60] sm:$0xff]  }
0x1a49   :  { %5293 = vmatprep.subr.bf16.mxu1 %v5864_v44 }
0x1a4f   :  { %5284 = vmatmul.mubr.msk.bf16.vlgmr.msra.gmra.mrb[60].mxu1 %vm78_vm0, %v3080_v63  ;;  %v5622_v63 = vld [vmem:[#allocation8 + $0x80] sm:$0xff]  }
0x1a50   :  { %5301 = vmatprep.mubr.msk.bf16.mxu1 %vm5865_vm12, %v5864_v44  ;;  %v5705_v0 = vpop.eup %5704  ;;  %5294 = vmatpush3.bf16.msra.mxu1 %v5617_v4  ;;  %v5626_v4 = vld [vmem:[#allocation8 + $0x90] sm:$0xff]  }
0x1a51   :  { %5295 = vmatprep.subr.bf16.mxu1 %v5864_v44 }
0x1a52   :  { %v5707_v1 = vpop.eup %5706 }
0x1a53   :  { %v3129_v3 = vpack.c.bf16 %v5707_v1, %v5705_v0  ;;  %v5623_v0 = vld [vmem:[#allocation8 + $0x68] sm:$0xff]  }
0x1a54   :  { %5296 = vmatpush3.bf16.msra.mxu1 %v5618_v6  ;;  %v5624_v1 = vld [vmem:[#allocation8 + $0x88] sm:$0xff]   ;;  %v5627_v6 = vld [vmem:[#allocation8 + $0x78] sm:$0xff]  }
0x1a55   :  { %5290 = vmatmul.mubr.msk.bf16.vlgmr.msra.gmra.mrb[60].mxu0 %vm78_vm0, %v3129_v3  ;;  %5297 = vmatprep.subr.bf16.mxu1 %v5864_v44  ;;  %v5625_v3 = vld [vmem:[#allocation8 + $0x70] sm:$0xff]  }
0x1a56   :  { %5313 = vmatprep.mubr.msk.bf16.mxu0 %vm5865_vm12, %v5864_v44  ;;  %5306 = vmatpush3.bf16.msra.mxu0 %v5621_v62 }
0x1a57   :  { %5307 = vmatprep.subr.bf16.mxu0 %v5864_v44 }
0x1a58   :  { %5298 = vmatpush3.bf16.msra.mxu1 %v5619_v43  ;;  %v5628_v43 = vld [vmem:[#allocation8 + $0x98] sm:$0xff]  }
0x1a59   :  { %5299 = vmatprep.subr.bf16.mxu1 %v5864_v44 }
0x1a5a   :  { %5308 = vmatpush3.bf16.msra.mxu0 %v5623_v0 }
0x1a5b   :  { %5309 = vmatprep.subr.bf16.mxu0 %v5864_v44 }
0x1a5c   :  { %5300 = vmatpush3.bf16.msra.mxu1 %v5620_v15 }
0x1a5d   :  { %5317 = vmatprep.subr.bf16.mxu1 %v5864_v44 }
0x1a5e   :  { %5310 = vmatpush3.bf16.msra.mxu0 %v5625_v3 }
0x1a5f   :  { %5311 = vmatprep.subr.bf16.mxu0 %v5864_v44 }
0x1a62   :  { %5312 = vmatpush3.bf16.msra.mxu0 %v5627_v6 }
0x1a63   :  { %5329 = vmatprep.subr.bf16.mxu0 %v5864_v44 }
0x1b1a   :  { %v3069_v18 = vpop.f32.mrb[56].mxu1 }
0x1b1b   :  { %v3076_v2 = vmul.f32 %v6225_v13, %v3069_v18  ;;  %v5279_v7 = vpop.f32.mrb[57].mxu1 }
0x1b1c   :  { %v3072_v11 = vpop.f32.mrb[58].mxu1 }
0x1b1d   :  { %v3077_v12 = vmul.f32 %v6231_v19, %v3072_v11  ;;  %v5280_v14 = vpop.f32.mrb[59].mxu1  ;;  %v4685_v19 = vld [vmem:[#allocation7 + $0x11] ss:$0 sm:$0xff] }
0x1b22   :  { %v3118_v20 = vpop.f32.mrb[60].mxu1 }
0x1b23   :  { %v3125_v61 = vmul.f32 %v6236_v23, %v3118_v20  ;;  %v5285_v21 = vpop.f32.mrb[61].mxu1  ;;  %v4688_v20 = vld [vmem:[#allocation7 + $0x12] ss:$0 sm:$0xff] }
0x1b24   :  { %v3121_v22 = vpop.f32.mrb[62].mxu1 }
0x1b25   :  { %v3126_v24 = vmul.f32 %v6240_v25, %v3121_v22  ;;  %v5286_v55 = vpop.f32.mrb[63].mxu1  ;;  %v3127_v57 = vadd.f32 %v3125_v61, %v3076_v2 }
0x1b26   :  { %v4689_v55 = vld [vmem:[#allocation7 + $0x13] ss:$0 sm:$0xff] }
0x1b27   :  { %v3128_v56 = vadd.f32 %v3126_v24, %v3077_v12 }
0x1b28   :  { %v3167_v60 = vpop.f32.mrb[60].mxu0 }
0x1b29   :  { %v3174_v9 = vmul.f32 %v3167_v60, %v3127_v57  ;;  %v5291_v26 = vpop.f32.mrb[61].mxu0 }
0x1b2a   :  { %v3170_v10 = vpop.f32.mrb[62].mxu0 }
0x1b2b   :  { %v3175_v13 = vmul.f32 %v3170_v10, %v3128_v56  ;;  %v5292_v27 = vpop.f32.mrb[63].mxu0  ;;  %v5630_v10 = vld [vmem:[#allocation8 + $0xa8] sm:$0xff]  }
0x1b2c   :  { %v5632_v27 = vld [vmem:[#allocation8 + $0xb8] sm:$0xff]  }
0x1b2d   :  { %v3176_v29 = vpack.c.bf16 %v3175_v13, %v3174_v9  ;;  %v5629_v9 = vld [vmem:[#allocation8 + $0xa0] sm:$0xff]   ;;  %v5631_v13 = vld [vmem:[#allocation8 + $0xb0] sm:$0xff]  }
0x1b2f   :  { %5302 = vmatmul.mubr.msk.bf16.vlgmr.msra.gmra.mrb[64].mxu1 %vm2850_vm15, %v3176_v29  ;;  %v5633_v29 = vld [vmem:[#allocation8 + $0x1a0] sm:$0xff]  }
0x1b30   :  { %5325 = vmatprep.mubr.msk.bf16.mxu1 %vm5865_vm12, %v5864_v44  ;;  %5318 = vmatpush3.bf16.msra.mxu1 %v5622_v63 }
0x1b31   :  { %5319 = vmatprep.subr.bf16.mxu1 %v5864_v44 }
0x1b34   :  { %5320 = vmatpush3.bf16.msra.mxu1 %v5624_v1 }
0x1b35   :  { %5321 = vmatprep.subr.bf16.mxu1 %v5864_v44 }
0x1b38   :  { %5322 = vmatpush3.bf16.msra.mxu1 %v5626_v4 }
0x1b39   :  { %5323 = vmatprep.subr.bf16.mxu1 %v5864_v44 }
0x1b3c   :  { %5324 = vmatpush3.bf16.msra.mxu1 %v5628_v43 }
0x1b3d   :  { %5341 = vmatprep.subr.bf16.mxu1 %v5633_v29 }
0x1c02   :  { %v3238_v23 = vpop.f32.mrb[64].mxu1 }
0x1c03   :  { %v3245_v32 = vadd.f32 %v3238_v23, %v6227_v16  ;;  %v5303_v25 = vpop.f32.mrb[65].mxu1  ;;  %v5635_v23 = vld [vmem:[#allocation8 + $0x1b0] sm:$0xff]  }
0x1c04   :  { %v3241_v33 = vpop.f32.mrb[66].mxu1 }
0x1c05   :  { %v3253_v35 = vadd.f32 %v4685_v19, %v3245_v32  ;;  %v3246_v36 = vadd.f32 %v3241_v33, %v6229_v17  ;;  %v5304_v28 = vpop.f32.mrb[67].mxu1  ;;  %v5636_v32 = vld [vmem:[#allocation8 + $0x1b8] sm:$0xff]  }
0x1c06   :  { %v4696_v33 = vld [vmem:[#allocation7 + $0x15] ss:$0 sm:$0xff] }
0x1c07   :  { %v3257_v30 = vmul.f32 1.442695, %v3253_v35  ;;  %v3254_v31 = vadd.f32 %v4685_v19, %v3246_v36  ;;  %vm3255_vm1 = vcmp.gt.f32.partialorder %v3253_v35, 0.0  ;;  %v5634_v19 = vld [vmem:[#allocation8 + $0x1a8] sm:$0xff]  }
0x1c09   :  { %5708 = vpow2.f32 %v3257_v30  ;;  %v3259_v37 = vmul.f32 1.442695, %v3254_v31  ;;  %vm3256_vm2 = vcmp.gt.f32.partialorder %v3254_v31, 0.0 }
0x1c0b   :  { %5710 = vpow2.f32 %v3259_v37 }
0x1c13   :  { %v5709_v39 = vpop.eup %5708 }
0x1c14   :  { %v4686_v40 = vadd.f32 -1.0, %v5709_v39 }
0x1c15   :  { %v5711_v41 = vpop.eup %5710 }
0x1c16   :  { %v3263_v42 = vsel %vm3255_vm1, %v3253_v35, %v4686_v40  ;;  %v4687_v45 = vadd.f32 -1.0, %v5711_v41 }
0x1c17   :  { %v3265_v46 = vsel %vm2850_vm15, %v3263_v42, 0.0 }
0x1c18   :  { %3266 = vadd.xlane.f32.xlu0 %v3265_v46  ;;  %v3264_v16 = vsel %vm3256_vm2, %v3254_v31, %v4687_v45  ;;  %v4702_v45 = vld [vmem:[#allocation7 + $0x16] ss:$0 sm:$0xff] }
0x1c19   :  { %v3268_v47 = vsel %vm2850_vm15, %v3264_v16, 0.0 }
0x1c1a   :  { %3269 = vadd.xlane.f32.xlu1 %v3268_v47 }
0x1ca5   :  { %v3267_v17 = vpop.xlane.xlu0 %3266 }
0x1ca6   :  { %v3272_v48 = vmul.f32 0.015625, %v3267_v17 }
0x1ca7   :  { %v3270_v49 = vpop.xlane.xlu1 %3269 }
0x1ca8   :  { %v3274_v50 = vsub.f32 %v3263_v42, %v3272_v48  ;;  %v3273_v51 = vmul.f32 0.015625, %v3270_v49 }
0x1caa   :  { %v3275_v52 = vsub.f32 %v3264_v16, %v3273_v51  ;;  %v3276_v53 = vmul.f32 %v3274_v50, %v3274_v50 }
0x1cac   :  { %v3278_v54 = vsel %vm2850_vm15, %v3276_v53, 0.0  ;;  %v3277_v58 = vmul.f32 %v3275_v52, %v3275_v52  ;;  %v6305_v53 = vld [vmem:[#allocation8 + $0x188] sm:$0xff]  }
0x1cad   :  { %3279 = vadd.xlane.f32.xlu0 %v3278_v54  ;;  %v6311_v54 = vld [vmem:[#allocation8 + $0x190] sm:$0xff]  }
0x1cae   :  { %v3281_v59 = vsel %vm2850_vm15, %v3277_v58, 0.0  ;;  %v5639_v58 = vld [vmem:[#allocation8 + $0x1c0] sm:$0xff]  }
0x1caf   :  { %3282 = vadd.xlane.f32.xlu1 %v3281_v59  ;;  %v4690_v59 = vld [vmem:[#allocation7 + $0x14] ss:$0 sm:$0xff] }
0x1d3a   :  { %v3280_v15 = vpop.xlane.xlu0 %3279 }
0x1d3b   :  { %v3284_v18 = vmul.f32 0.015625, %v3280_v15 }
0x1d3c   :  { %v3283_v2 = vpop.xlane.xlu1 %3282 }
0x1d3d   :  { %v3286_v7 = vadd.f32 1e-05, %v3284_v18  ;;  %v3285_v11 = vmul.f32 0.015625, %v3283_v2 }
0x1d3f   :  { %5712 = vrsqrt.f32 %v3286_v7  ;;  %v3287_v12 = vadd.f32 1e-05, %v3285_v11  ;;  %v5640_v7 = vld [vmem:[#allocation8 + $0x1c8] sm:$0xff]   ;;  %v5641_v11 = vld [vmem:[#allocation8 + $0x1d0] sm:$0xff]  }
0x1d41   :  { %5714 = vrsqrt.f32 %v3287_v12  ;;  %v5642_v12 = vld [vmem:[#allocation8 + $0x1d8] sm:$0xff]  }
0x1d49   :  { %v5713_v14 = vpop.eup %5712 }
0x1d4a   :  { %v3290_v61 = vmul.f32 %v5713_v14, %v3274_v50  ;;  %v5643_v14 = vld [vmem:[#allocation8 + $0x1e0] sm:$0xff]  }
0x1d4b   :  { %v5715_v21 = vpop.eup %5714 }
0x1d4c   :  { %v3300_v22 = vmul.f32 %v4688_v20, %v3290_v61  ;;  %v3291_v24 = vmul.f32 %v5715_v21, %v3275_v52 }
0x1d4e   :  { %v3301_v57 = vmul.f32 %v4688_v20, %v3291_v24  ;;  %v3310_v56 = vadd.f32 %v4689_v55, %v3300_v22 }
0x1d50   :  { %v3311_v60 = vadd.f32 %v4689_v55, %v3301_v57 }
0x1d52   :  { %v3386_v26 = vpack.c.bf16 %v3311_v60, %v3310_v56 }
0x1d54   :  { %5314 = vmatmul.mubr.msk.bf16.vlgmr.msra.gmra.mrb[64].mxu0 %vm2850_vm15, %v3386_v26  ;;  %5326 = vmatmul.mubr.msk.bf16.vlgmr.msra.gmra.mrb[68].mxu1 %vm2850_vm15, %v3386_v26 }
0x1d55   :  { %5330 = vmatpush3.bf16.msra.mxu0 %v5629_v9  ;;  %5337 = vmatprep.mubr.msk.bf16.mxu0 %vm5865_vm12, %v5864_v44 }
0x1d56   :  { %5331 = vmatprep.subr.bf16.mxu0 %v5864_v44  ;;  %5342 = vmatpush3.bf16.msra.mxu1 %v5633_v29  ;;  %v5647_v29 = vld [vmem:[#allocation8 + $0x200] sm:$0xff]  }
0x1d57   :  { %5343 = vmatprep.subr.bf16.mxu1 %v5634_v19 }
0x1d59   :  { %5332 = vmatpush3.bf16.msra.mxu0 %v5630_v10  ;;  %v5644_v10 = vld [vmem:[#allocation8 + $0x1e8] sm:$0xff]  }
0x1d5a   :  { %5333 = vmatprep.subr.bf16.mxu0 %v5864_v44  ;;  %5344 = vmatpush3.bf16.msra.mxu1 %v5634_v19 }
0x1d5b   :  { %5345 = vmatprep.subr.bf16.mxu1 %v5635_v23 }
0x1d5d   :  { %5334 = vmatpush3.bf16.msra.mxu0 %v5631_v13  ;;  %v5645_v13 = vld [vmem:[#allocation8 + $0x1f0] sm:$0xff]  }
0x1d5e   :  { %5335 = vmatprep.subr.bf16.mxu0 %v5864_v44  ;;  %5346 = vmatpush3.bf16.msra.mxu1 %v5635_v23 }
0x1d5f   :  { %5347 = vmatprep.subr.bf16.mxu1 %v5636_v32 }
0x1d61   :  { %5336 = vmatpush3.bf16.msra.mxu0 %v5632_v27  ;;  %v5646_v27 = vld [vmem:[#allocation8 + $0x1f8] sm:$0xff]  }
0x1d62   :  { %5353 = vmatprep.subr.bf16.mxu0 %v5864_v44  ;;  %5348 = vmatpush3.bf16.msra.mxu1 %v5636_v32 }
0x1d63   :  { %5373 = vmatprep.subr.bf16.mxu1 %v5864_v44 }
0x1d64   :  { %5338 = vmatmul.mubr.msk.bf16.vlgmr.msra.gmra.mrb[68].mxu0 %vm2850_vm15, %v3386_v26 }
0x1d65   :  { %5357 = vmatprep.mubr.msk.bf16.mxu0 %vm5865_vm12, %v5864_v44  ;;  %5354 = vmatpush3.bf16.msra.mxu0 %v6305_v53 }
0x1d66   :  { %5355 = vmatprep.subr.bf16.mxu0 %v5864_v44 }
0x1d69   :  { %5356 = vmatpush3.bf16.msra.mxu0 %v6311_v54 }
0x1d6a   :  { %5361 = vmatprep.subr.bf16.mxu0 %v5639_v58 }
0x1e27   :  { %v3454_v25 = vpop.f32.mrb[64].mxu0  ;;  %v3527_v35 = vpop.f32.mrb[68].mxu1 }
0x1e28   :  { %v5315_v36 = vpop.f32.mrb[65].mxu0  ;;  %v5327_v28 = vpop.f32.mrb[69].mxu1  ;;  %v3528_v37 = vadd.f32 %v4696_v33, %v3527_v35  ;;  %v3455_v62 = vadd.f32 %v4690_v59, %v3454_v25 }
0x1e29   :  { %v3457_v30 = vpop.f32.mrb[66].mxu0  ;;  %v3530_v31 = vpop.f32.mrb[70].mxu1 }
0x1e2a   :  { %v3531_v39 = vadd.f32 %v4696_v33, %v3530_v31  ;;  %v5316_v40 = vpop.f32.mrb[67].mxu0  ;;  %v5328_v41 = vpop.f32.mrb[71].mxu1  ;;  %v3458_v63 = vadd.f32 %v4690_v59, %v3457_v30  ;;  %v6317_v3 = vmax.f32 %v3455_v62, 0.0 }
0x1e2c   :  { %v6295_v42 = vpack.c.bf16 %v3531_v39, %v3528_v37  ;;  %v6319_v4 = vmax.f32 %v3458_v63, 0.0 }
0x1e2e   :  { %5349 = vmatprep.mubr.msk.bf16.mxu1 %vm2850_vm15, %v6295_v42 }
0x1e37   :  { %v3598_v46 = vpop.f32.mrb[68].mxu0 }
0x1e38   :  { %v3599_v16 = vadd.f32 %v4702_v45, %v3598_v46  ;;  %v5339_v47 = vpop.f32.mrb[69].mxu0 }
0x1e39   :  { %v3601_v17 = vpop.f32.mrb[70].mxu0  ;;  %v5648_v47 = vld [vmem:[#allocation8 + $0x208] sm:$0xff]  }
0x1e3a   :  { %v3602_v48 = vadd.f32 %v4702_v45, %v3601_v17  ;;  %v5340_v49 = vpop.f32.mrb[71].mxu0  ;;  %v3605_v50 = vmax.f32 %v3599_v16, 0.0  ;;  %v5649_v17 = vld [vmem:[#allocation8 + $0x210] sm:$0xff]  }
0x1e3c   :  { %v3606_v51 = vmax.f32 %v3602_v48, 0.0  ;;  %v5650_v48 = vld [vmem:[#allocation8 + $0x218] sm:$0xff]  }
0x1e3e   :  { %v6299_v52 = vpack.c.bf16 %v3606_v51, %v3605_v50 }
0x1e40   :  { %5350 = vmatmul.mubr.msk.bf16.vlgmr.msra.gmra.mrb[72].mxu1 %vm2850_vm15, %v6299_v52 }
0x1e41   :  { %5377 = vmatprep.mubr.msk.bf16.mxu1 %vm5865_vm12, %v5864_v44  ;;  %5374 = vmatpush3.bf16.msra.mxu1 %v6305_v53 }
0x1e42   :  { %5375 = vmatprep.subr.bf16.mxu1 %v5864_v44 }
0x1e45   :  { %5376 = vmatpush3.bf16.msra.mxu1 %v6311_v54 }
0x1e46   :  { %5381 = vmatprep.subr.bf16.mxu1 %v5643_v14 }
0x1f13   :  { %v6315_v0 = vpop.f32.mrb[72].mxu1 }
0x1f14   :  { %v3673_v1 = vpop.f32.mrb[73].mxu1 }
0x1f15   :  { %v6321_v6 = vpop.f32.mrb[74].mxu1  ;;  %v3688_v15 = vmul.f32 %v3673_v1, %v6317_v3 }
0x1f16   :  { %v3676_v43 = vpop.f32.mrb[75].mxu1 }
0x1f17   :  { %v3689_v18 = vmul.f32 %v3676_v43, %v6319_v4 }
0x1f19   :  { %v3690_v2 = vpack.c.bf16 %v3689_v18, %v3688_v15 }
0x1f1b   :  { %5358 = vmatmul.mubr.msk.bf16.vlgmr.msra.gmra.mrb[72].mxu0 %vm229_vm5, %v3690_v2  ;;  %v6389_v2 = vld [vmem:[#allocation8 + $0x198] sm:$0xff]  }
0x1f1c   :  { %5362 = vmatpush3.bf16.msra.mxu0 %v5639_v58  ;;  %5369 = vmatprep.mubr.msk.bf16.mxu0 %vm2850_vm15, %v6295_v42 }
0x1f1d   :  { %5363 = vmatprep.subr.bf16.mxu0 %v5640_v7 }
0x1f20   :  { %5364 = vmatpush3.bf16.msra.mxu0 %v5640_v7 }
0x1f21   :  { %5365 = vmatprep.subr.bf16.mxu0 %v5641_v11 }
0x1f24   :  { %5366 = vmatpush3.bf16.msra.mxu0 %v5641_v11 }
0x1f25   :  { %5367 = vmatprep.subr.bf16.mxu0 %v5642_v12 }
0x1f28   :  { %5368 = vmatpush3.bf16.msra.mxu0 %v5642_v12 }
0x1f29   :  { %5393 = vmatprep.subr.bf16.mxu0 %v5864_v44 }
0x1f2b   :  { %5370 = vmatmul.mubr.msk.bf16.vlgmr.msra.gmra.mrb[76].mxu0 %vm2850_vm15, %v6299_v52 }
0x1f2c   :  { %5394 = vmatpush3.bf16.msra.mxu0 %v6305_v53  ;;  %5397 = vmatprep.mubr.msk.bf16.mxu0 %vm5865_vm12, %v5864_v44 }
0x1f2d   :  { %5395 = vmatprep.subr.bf16.mxu0 %v5864_v44 }
0x1f30   :  { %5396 = vmatpush3.bf16.msra.mxu0 %v6311_v54 }
0x1f31   :  { %5401 = vmatprep.subr.bf16.mxu0 %v5647_v29 }
0x1fee   :  { %v3740_v20 = vpop.f32.mrb[72].mxu0 }
0x1fef   :  { %v5359_v61 = vpop.f32.mrb[73].mxu0  ;;  %v6354_v23 = vmul.f32 0.25, %v3740_v20 }
0x1ff0   :  { %v3743_v21 = vpop.f32.mrb[74].mxu0 }
0x1ff1   :  { %v5360_v22 = vpop.f32.mrb[75].mxu0  ;;  %v6358_v35 = vmul.f32 0.25, %v3743_v21 }
0x1ffe   :  { %v6336_v24 = vpop.f32.mrb[76].mxu0 }
0x1fff   :  { %v3807_v55 = vpop.f32.mrb[77].mxu0 }
0x2000   :  { %v6338_v57 = vpop.f32.mrb[78].mxu0  ;;  %v3822_v60 = vmul.f32 %v3807_v55, %v6317_v3 }
0x2001   :  { %v3810_v56 = vpop.f32.mrb[79].mxu0 }
0x2002   :  { %v3823_v9 = vmul.f32 %v3810_v56, %v6319_v4 }
0x2004   :  { %v3824_v26 = vpack.c.bf16 %v3823_v9, %v3822_v60 }
0x2006   :  { %5378 = vmatmul.mubr.msk.bf16.vlgmr.msra.gmra.mrb[76].mxu1 %vm229_vm5, %v3824_v26 }
0x2007   :  { %5382 = vmatpush3.bf16.msra.mxu1 %v5643_v14  ;;  %5389 = vmatprep.mubr.msk.bf16.mxu1 %vm2850_vm15, %v6295_v42 }
0x2008   :  { %5383 = vmatprep.subr.bf16.mxu1 %v5644_v10 }
0x200b   :  { %5384 = vmatpush3.bf16.msra.mxu1 %v5644_v10 }
0x200c   :  { %5385 = vmatprep.subr.bf16.mxu1 %v5645_v13 }
0x200f   :  { %5386 = vmatpush3.bf16.msra.mxu1 %v5645_v13 }
0x2010   :  { %5387 = vmatprep.subr.bf16.mxu1 %v5646_v27 }
0x2013   :  { %5388 = vmatpush3.bf16.msra.mxu1 %v5646_v27 }
0x2014   :  { %5413 = vmatprep.subr.bf16.mxu1 %v5864_v44 }
0x2016   :  { %5390 = vmatmul.mubr.msk.bf16.vlgmr.msra.gmra.mrb[80].mxu1 %vm2850_vm15, %v6299_v52 }
0x2017   :  { %5414 = vmatpush3.bf16.msra.mxu1 %v6305_v53  ;;  %5417 = vmatprep.mubr.msk.bf16.mxu1 %vm5865_vm12, %v5864_v44 }
0x2018   :  { %5415 = vmatprep.subr.bf16.mxu1 %v5864_v44 }
0x201b   :  { %5416 = vmatpush3.bf16.msra.mxu1 %v6311_v54 }
0x201c   :  { %5421 = vmatprep.subr.bf16.mxu1 %v5864_v44 }
0x20d9   :  { %v3862_v19 = vpop.f32.mrb[76].mxu1 }
0x20da   :  { %v6356_v32 = vmul.f32 0.25, %v3862_v19  ;;  %v5379_v25 = vpop.f32.mrb[77].mxu1 }
0x20db   :  { %v3865_v33 = vpop.f32.mrb[78].mxu1 }
0x20dc   :  { %v4115_v36 = vmax.f32 %v6354_v23, %v6356_v32  ;;  %v6362_v28 = vmul.f32 0.25, %v3865_v33  ;;  %v5380_v30 = vpop.f32.mrb[79].mxu1 }
0x20de   :  { %v4116_v31 = vmax.f32 %v6358_v35, %v6362_v28 }
0x20e9   :  { %v6366_v37 = vpop.f32.mrb[80].mxu1 }
0x20ea   :  { %v3929_v39 = vpop.f32.mrb[81].mxu1 }
0x20eb   :  { %v6368_v40 = vpop.f32.mrb[82].mxu1  ;;  %v3944_v45 = vmul.f32 %v3929_v39, %v6317_v3 }
0x20ec   :  { %v3932_v41 = vpop.f32.mrb[83].mxu1 }
0x20ed   :  { %v3945_v46 = vmul.f32 %v3932_v41, %v6319_v4 }
0x20ef   :  { %v3946_v16 = vpack.c.bf16 %v3945_v46, %v3944_v45 }
0x20f1   :  { %5398 = vmatmul.mubr.msk.bf16.vlgmr.msra.gmra.mrb[80].mxu0 %vm229_vm5, %v3946_v16 }
0x20f2   :  { %5402 = vmatpush3.bf16.msra.mxu0 %v5647_v29  ;;  %5409 = vmatprep.mubr.msk.bf16.mxu0 %vm2850_vm15, %v6295_v42 }
0x20f3   :  { %5403 = vmatprep.subr.bf16.mxu0 %v5648_v47 }
0x20f6   :  { %5404 = vmatpush3.bf16.msra.mxu0 %v5648_v47 }
0x20f7   :  { %5405 = vmatprep.subr.bf16.mxu0 %v5649_v17 }
0x20fa   :  { %5406 = vmatpush3.bf16.msra.mxu0 %v5649_v17 }
0x20fb   :  { %5407 = vmatprep.subr.bf16.mxu0 %v5650_v48 }
0x20fe   :  { %5408 = vmatpush3.bf16.msra.mxu0 %v5650_v48 }
0x20ff   :  { %5427 = vmatprep.subr.bf16.mxu0 %v5864_v44 }
0x2101   :  { %5410 = vmatmul.mubr.msk.bf16.vlgmr.msra.gmra.mrb[84].mxu0 %vm2850_vm15, %v6299_v52 }
0x2102   :  { %5429 = vmatprep.mubr.msk.bf16.mxu0 %vm5865_vm12, %v5864_v44  ;;  %5428 = vmatpush3.bf16.msra.mxu0 %v6389_v2 }
0x2103   :  { %5439 = vmatprep.subr.bf16.mxu0 %v5864_v44 }
0x21c4   :  { %v3984_v49 = vpop.f32.mrb[80].mxu0 }
0x21c5   :  { %v3991_v50 = vmul.f32 0.25, %v3984_v49  ;;  %v5399_v51 = vpop.f32.mrb[81].mxu0 }
0x21c6   :  { %v3987_v42 = vpop.f32.mrb[82].mxu0 }
0x21c7   :  { %v4117_v53 = vmax.f32 %v4115_v36, %v3991_v50  ;;  %v3992_v54 = vmul.f32 0.25, %v3987_v42  ;;  %v5400_v58 = vpop.f32.mrb[83].mxu0 }
0x21c9   :  { %v4118_v59 = vmax.f32 %v4116_v31, %v3992_v54 }
0x21d4   :  { %v6380_v62 = vpop.f32.mrb[84].mxu0 }
0x21d5   :  { %v4051_v63 = vpop.f32.mrb[85].mxu0 }
0x21d6   :  { %v6382_v1 = vpop.f32.mrb[86].mxu0  ;;  %v4066_v15 = vmul.f32 %v4051_v63, %v6317_v3 }
0x21d7   :  { %v4054_v43 = vpop.f32.mrb[87].mxu0 }
0x21d8   :  { %v4067_v52 = vmul.f32 %v4054_v43, %v6319_v4 }
0x21da   :  { %v4068_v18 = vpack.c.bf16 %v4067_v52, %v4066_v15  ;;  %v5652_v15 = vld [vmem:[#allocation8 + $0xc0] sm:$0xff]   ;;  %v5653_v52 = vld [vmem:[#allocation8 + $0xc8] sm:$0xff]  }
0x21dc   :  { %5418 = vmatmul.mubr.msk.bf16.vlgmr.msra.gmra.mrb[84].mxu1 %vm229_vm5, %v4068_v18 }
0x21dd   :  { %5423 = vmatprep.mubr.msk.bf16.mxu1 %vm5865_vm12, %v5864_v44  ;;  %5422 = vmatpush3.bf16.msra.mxu1 %v6389_v2 }
0x21de   :  { %5433 = vmatprep.subr.bf16.mxu1 %v5864_v44 }
0x22af   :  { %v4106_v7 = vpop.f32.mrb[84].mxu1 }
0x22b0   :  { %v4113_v11 = vmul.f32 0.25, %v4106_v7  ;;  %v5419_v12 = vpop.f32.mrb[85].mxu1 }
0x22b1   :  { %v4109_v14 = vpop.f32.mrb[86].mxu1 }
0x22b2   :  { %v4119_v20 = vmax.f32 %v4117_v53, %v4113_v11  ;;  %v4114_v61 = vmul.f32 0.25, %v4109_v14  ;;  %v5420_v21 = vpop.f32.mrb[87].mxu1 }
0x22b4   :  { %v4121_v22 = vsub.f32 %v6354_v23, %v4119_v20  ;;  %v4127_v55 = vsub.f32 %v6356_v32, %v4119_v20  ;;  %v4133_v56 = vsub.f32 %v3991_v50, %v4119_v20  ;;  %v4139_v60 = vsub.f32 %v4113_v11, %v4119_v20 }
0x22b5   :  { %v4120_v9 = vmax.f32 %v4118_v59, %v4114_v61 }
0x22b6   :  { %v4123_v26 = vmul.f32 1.442695, %v4121_v22  ;;  %v4129_v10 = vmul.f32 1.442695, %v4127_v55  ;;  %v4135_v13 = vmul.f32 1.442695, %v4133_v56 }
0x22b7   :  { %v4141_v27 = vmul.f32 1.442695, %v4139_v60  ;;  %v4122_v29 = vsub.f32 %v6358_v35, %v4120_v9  ;;  %v4128_v19 = vsub.f32 %v6362_v28, %v4120_v9  ;;  %v4134_v25 = vsub.f32 %v3992_v54, %v4120_v9 }
0x22b8   :  { %5716 = vpow2.f32 %v4123_v26  ;;  %v4140_v33 = vsub.f32 %v4114_v61, %v4120_v9 }
0x22b9   :  { %5718 = vpow2.f32 %v4129_v10  ;;  %v4125_v36 = vmul.f32 1.442695, %v4122_v29  ;;  %v4131_v30 = vmul.f32 1.442695, %v4128_v19  ;;  %v4137_v23 = vmul.f32 1.442695, %v4134_v25 }
0x22ba   :  { %5720 = vpow2.f32 %v4135_v13  ;;  %v4143_v32 = vmul.f32 1.442695, %v4140_v33 }
0x22bb   :  { %5722 = vpow2.f32 %v4141_v27 }
0x22bc   :  { %5724 = vpow2.f32 %v4125_v36 }
0x22bd   :  { %5726 = vpow2.f32 %v4131_v30 }
0x22be   :  { %5728 = vpow2.f32 %v4137_v23 }
0x22bf   :  { %5730 = vpow2.f32 %v4143_v32 }
0x22c2   :  { %v5717_v31 = vpop.eup %5716 }
0x22c3   :  { %v5719_v39 = vpop.eup %5718 }
0x22c4   :  { %v5721_v41 = vpop.eup %5720  ;;  %v4145_v35 = vadd.f32 %v5719_v39, %v5717_v31 }
0x22c5   :  { %v5723_v45 = vpop.eup %5722 }
0x22c6   :  { %v5725_v28 = vpop.eup %5724  ;;  %v4147_v46 = vadd.f32 %v5721_v41, %v4145_v35 }
0x22c7   :  { %v5727_v16 = vpop.eup %5726  ;;  %v4153_v47 = vpack.c.bf16 %v5725_v28, %v5717_v31 }
0x22c8   :  { %v5729_v17 = vpop.eup %5728  ;;  %v4149_v48 = vadd.f32 %v5723_v45, %v4147_v46  ;;  %v4146_v49 = vadd.f32 %v5727_v16, %v5725_v28  ;;  %v4208_v50 = vpack.c.bf16 %v5727_v16, %v5719_v39  ;;  %v5654_v28 = vld [vmem:[#allocation8 + $0xd0] sm:$0xff]  }
0x22c9   :  { %v5731_v51 = vpop.eup %5730  ;;  %5424 = vmatmul.mubr.msk.bf16.vlgmr.msra.gmra.mrb[88].mxu1 %vm78_vm0, %v4153_v47  ;;  %v4257_v42 = vpack.c.bf16 %v5729_v17, %v5721_v41  ;;  %v4747_v47 = vld [vmem:[#allocation7 + $0x17] ss:$0 sm:$0xff] }
0x22ca   :  { %v4148_v53 = vadd.f32 %v5729_v17, %v4146_v49  ;;  %5430 = vmatmul.mubr.msk.bf16.vlgmr.msra.gmra.mrb[88].mxu0 %vm78_vm0, %v4208_v50  ;;  %5434 = vmatpush3.bf16.msra.mxu1 %v6389_v2  ;;  %v4306_v54 = vpack.c.bf16 %v5731_v51, %v5723_v45  ;;  %5732 = vrcp.f32 %v4149_v48 }
0x22cb   :  { %5440 = vmatpush3.bf16.msra.mxu0 %v6389_v2  ;;  %5435 = vmatprep.mubr.msk.bf16.mxu1 %vm5865_vm12, %v5864_v44 }
0x22cc   :  { %v4150_v58 = vadd.f32 %v5731_v51, %v4148_v53  ;;  %5441 = vmatprep.mubr.msk.bf16.mxu0 %vm5865_vm12, %v5864_v44  ;;  %5445 = vmatprep.subr.bf16.mxu1 %v5864_v44 }
0x22cd   :  { %5451 = vmatprep.subr.bf16.mxu0 %v5864_v44 }
0x22ce   :  { %5734 = vrcp.f32 %v4150_v58 }
0x22d1   :  { %5436 = vmatmul.mubr.msk.bf16.vlgmr.msra.gmra.mrb[92].mxu1 %vm78_vm0, %v4257_v42 }
0x22d2   :  { %5442 = vmatmul.mubr.msk.bf16.vlgmr.msra.gmra.mrb[92].mxu0 %vm78_vm0, %v4306_v54  ;;  %5446 = vmatpush3.bf16.msra.mxu1 %v6389_v2 }
0x22d3   :  { %5447 = vmatprep.mubr.msk.bf16.mxu1 %vm5865_vm12, %v5864_v44  ;;  %5455 = vmatprep.mubr.msk.bf16.mxu0 %vm5865_vm12, %v5864_v44 }
0x22d4   :  { %5459 = vmatprep.subr.bf16.mxu1 %v5864_v44  ;;  %v5733_v59 = vpop.eup %5732  ;;  %5452 = vmatpush3.bf16.msra.mxu0 %v5652_v15 }
0x22d5   :  { %5453 = vmatprep.subr.bf16.mxu0 %v5864_v44 }
0x22d8   :  { %v5735_v63 = vpop.eup %5734  ;;  %5454 = vmatpush3.bf16.msra.mxu0 %v5653_v52 }
0x22d9   :  { %v4355_v43 = vpack.c.bf16 %v5735_v63, %v5733_v59 }
0x22db   :  { %5448 = vmatmul.mubr.msk.bf16.vlgmr.msra.gmra.mrb[96].mxu1 %vm78_vm0, %v4355_v43 }
0x22dc   :  { %5463 = vmatprep.mubr.msk.bf16.mxu1 %vm5865_vm12, %v5864_v44  ;;  %5460 = vmatpush3.bf16.msra.mxu1 %v5654_v28 }
0x22dd   :  { %5461 = vmatprep.subr.bf16.mxu1 %v5864_v44 }
0x239c   :  { %v4197_v18 = vpop.f32.mrb[88].mxu1 }
0x239d   :  { %v4204_v2 = vmul.f32 %v6315_v0, %v4197_v18  ;;  %v4246_v7 = vpop.f32.mrb[88].mxu0  ;;  %v5425_v11 = vpop.f32.mrb[89].mxu1 }
0x239e   :  { %v4253_v12 = vmul.f32 %v6336_v24, %v4246_v7  ;;  %v5431_v14 = vpop.f32.mrb[89].mxu0  ;;  %v4200_v20 = vpop.f32.mrb[90].mxu1 }
0x239f   :  { %v4205_v61 = vmul.f32 %v6321_v6, %v4200_v20  ;;  %v4249_v21 = vpop.f32.mrb[90].mxu0  ;;  %v5426_v22 = vpop.f32.mrb[91].mxu1 }
0x23a0   :  { %v4255_v55 = vadd.f32 %v4253_v12, %v4204_v2  ;;  %v4254_v56 = vmul.f32 %v6338_v57, %v4249_v21  ;;  %v5432_v60 = vpop.f32.mrb[91].mxu0 }
0x23a2   :  { %v4256_v9 = vadd.f32 %v4254_v56, %v4205_v61 }
0x23a4   :  { %v4295_v26 = vpop.f32.mrb[92].mxu1 }
0x23a5   :  { %v4302_v10 = vmul.f32 %v6366_v37, %v4295_v26  ;;  %v4344_v13 = vpop.f32.mrb[92].mxu0  ;;  %v5437_v0 = vpop.f32.mrb[93].mxu1 }
0x23a6   :  { %v4351_v27 = vmul.f32 %v6380_v62, %v4344_v13  ;;  %v5443_v29 = vpop.f32.mrb[93].mxu0  ;;  %v4298_v24 = vpop.f32.mrb[94].mxu1 }
0x23a7   :  { %v4304_v19 = vadd.f32 %v4302_v10, %v4255_v55  ;;  %v4303_v25 = vmul.f32 %v6368_v40, %v4298_v24  ;;  %v4347_v6 = vpop.f32.mrb[94].mxu0  ;;  %v5438_v33 = vpop.f32.mrb[95].mxu1  ;;  %v5655_v40 = vld [vmem:[#allocation8 + $0xd8] sm:$0xff]  }
0x23a8   :  { %v4352_v36 = vmul.f32 %v6382_v1, %v4347_v6  ;;  %v5444_v30 = vpop.f32.mrb[95].mxu0  ;;  %5462 = vmatpush3.bf16.msra.mxu1 %v5655_v40 }
0x23a9   :  { %v4305_v57 = vadd.f32 %v4303_v25, %v4256_v9  ;;  %v4353_v23 = vadd.f32 %v4351_v27, %v4304_v19 }
0x23ab   :  { %v4354_v32 = vadd.f32 %v4352_v36, %v4305_v57 }
0x23ae   :  { %v4393_v31 = vpop.f32.mrb[96].mxu1 }
0x23af   :  { %v4400_v39 = vmul.f32 %v4393_v31, %v4353_v23  ;;  %v5449_v37 = vpop.f32.mrb[97].mxu1 }
0x23b0   :  { %v4396_v41 = vpop.f32.mrb[98].mxu1 }
0x23b1   :  { %v4401_v35 = vmul.f32 %v4396_v41, %v4354_v32  ;;  %v5450_v45 = vpop.f32.mrb[99].mxu1 }
0x23b3   :  { %v4402_v62 = vpack.c.bf16 %v4401_v35, %v4400_v39 }
0x23b5   :  { %5456 = vmatmul.mubr.msk.bf16.vlgmr.msra.gmra.mrb[96].mxu0 %vm229_vm5, %v4402_v62 }
0x2488   :  { %v4452_v1 = vpop.f32.mrb[96].mxu0 }
0x2489   :  { %v4459_v46 = vadd.f32 %v4452_v1, %v6317_v3  ;;  %v5457_v16 = vpop.f32.mrb[97].mxu0 }
0x248a   :  { %v4455_v17 = vpop.f32.mrb[98].mxu0 }
0x248b   :  { %v4460_v48 = vadd.f32 %v4455_v17, %v6319_v4  ;;  %v5458_v49 = vpop.f32.mrb[99].mxu0  ;;  %v4467_v50 = vadd.f32 %v4747_v47, %v4459_v46 }
0x248d   :  { %v4468_v51 = vadd.f32 %v4747_v47, %v4460_v48 }
0x248f   :  { %v4469_v42 = vpack.c.bf16 %v4468_v51, %v4467_v50 }
0x2491   :  { %5464 = vmatmul.mubr.msk.bf16.vlgmr.msra.gmra.mrb[100].mxu1 %vm229_vm5, %v4469_v42 }
0x2492   :  { %5835 = shalt.err (!%p5832_p8)
}
0x2493   :  { %s5836_s26 = scalar_lea.hbm %s6466_s5, 1024 }
0x2494   :  { %p5837_p9 = scmp.ne.s32.totalorder %s6466_s5, %s5836_s26  ;;  %p5840_p10 = scmp.lt.u32.totalorder %s5836_s26, %s6466_s5 }
0x2496   :  { %p5842_p11 = pnand %p5840_p10, %p5837_p9 }
0x2498   :  { %5845 = shalt.err (!%p5842_p11)
}
0x2499   :  { %4557 = dma.vmem_to_hbm [thread:$0]  %s4552_s22, 1024, %s6466_s5, [#allocation4], %s5856_s30, %s5856_s30, %s5857_s6   ;;  %v4748_v44 = vld [vmem:[#allocation7 + $0x18] ss:$0 sm:$0xff] }
0x2564   :  { %v4531_v3 = vpop.f32.mrb[100].mxu1 }
0x2565   :  { %v4532_v4 = vadd.f32 %v4748_v44, %v4531_v3  ;;  %v5465_v53 = vpop.f32.mrb[101].mxu1 }
0x2566   :  { %v4534_v54 = vpop.f32.mrb[102].mxu1 }
0x2567   :  { %v4538_v58 = vmul.f32 %v4532_v4, %v5968_v34  ;;  %v4535_v59 = vadd.f32 %v4748_v44, %v4534_v54  ;;  %v5466_v63 = vpop.f32.mrb[103].mxu1 }
0x2569   :  { %v4540_v43 = vadd.f32 %v4538_v58, %v5960_v5  ;;  %v4539_v15 = vmul.f32 %v4535_v59, %v5971_v38 }
0x256b   :  { %4542 = vst.msk [vmem:[%s6465_s4] sm:$0xff] %vm396_vm6, %v4540_v43  ;;  %v4541_v52 = vadd.f32 %v4539_v15, %v5963_v8 }
0x256d   :  { %4543 = vst.msk [vmem:[%s6465_s4 + $0x8] sm:$0xff] %vm396_vm6, %v4541_v52 }
0x256e   :  { %5852 = dma.done.wait [#allocation4], 1024  }
0x256f   :  { %5853 = vsyncadd [#allocation4], 4294966272 }
0x2570   :  { %4563 = vsyncpa [#allocation3], 1 }
0x2571   :  { %4564 = vsyncpa [#allocation6], 1 }
0x2572   :  { %4565 = vsyncpa [#allocation9], 1 }
0x2573   :  { %4566 = vsyncpa [#allocation4], 1 }

</bundles_post_ra>
